<compile_context>
chip_gen: v6e
topology: v6e:2x2x1
jax: 0.10.0
libtpu: 0.0.40
codegen_flags: <defaults>
</compile_context>

<pallas_src>
import functools

import numpy as np
import jax
import jax.numpy as jnp
from jax.experimental import pallas as pl
from jax.experimental.pallas import tpu as pltpu

D_MODEL = 32
NHEAD = 4
HEAD_DIM = D_MODEL // NHEAD
DIM_FF = 64
NUM_LAYERS = 2
EPS = 1e-5


# ---------------------------------------------------------------------------
# Shared math (works for both (D,) and (1, D) scale/shift rows).
# ---------------------------------------------------------------------------
def _layernorm(x, w, b):
    mu = jnp.mean(x, axis=-1, keepdims=True)
    var = jnp.mean((x - mu) ** 2, axis=-1, keepdims=True)
    return (x - mu) * jax.lax.rsqrt(var + EPS) * w + b


# ---------------------------------------------------------------------------
# Kernel-side attention core.
#   q: (B*q_len, D) already scaled (1/sqrt(head_dim) folded into Q projection)
#   k, v: (B*kv_len, D); wo_t: (D, D) pre-transposed out-proj weight; bo: (D,)
# Per-head outputs are kept in registers and concatenated (no VMEM scratch).
# Scores use NT dot_general (contract last dims) -> no explicit k transpose.
# ---------------------------------------------------------------------------
def _attention(q, k, v, wo_t, bo, batch, q_len, kv_len):
    outs = []
    for b in range(batch):
        qs = slice(b * q_len, (b + 1) * q_len)
        ks = slice(b * kv_len, (b + 1) * kv_len)
        heads = []
        for h in range(NHEAD):
            hs = slice(h * HEAD_DIM, (h + 1) * HEAD_DIM)
            s = jax.lax.dot_general(
                q[qs, hs], k[ks, hs],
                dimension_numbers=(((1,), (1,)), ((), ())),
                preferred_element_type=jnp.float32)            # (q_len, kv_len)
            s = s - jnp.max(s, axis=-1, keepdims=True)
            p = jnp.exp(s)
            p = p * pl.reciprocal(jnp.sum(p, axis=-1, keepdims=True), approx=True)
            heads.append(jnp.dot(p, v[ks, hs],
                                 preferred_element_type=jnp.float32))
        outs.append(jnp.concatenate(heads, axis=-1))            # (q_len, D)
    o = jnp.concatenate(outs, axis=0)                           # (B*q_len, D)
    return jnp.dot(o, wo_t, preferred_element_type=jnp.float32) + bo


# ---------------------------------------------------------------------------
# Fused decoder kernel: all layers + final norm, batch folded into GEMM M dim.
#
# Packed parameter layout (L = num layers):
#   sa_wqk : (L, D, 2D)    self-attn [Wq^T*scale | Wk^T]
#   sa_bqk : (L, 2D)       self-attn [bq*scale   | bk ]
#   wdd    : (L, 4, D, D)  [sa_Wv^T, sa_Wo^T, ca_Wq^T*scale, ca_Wo^T]
#   ca_wkv : (2, D, L*D)   [cross Wk^T (all layers) | cross Wv^T (all layers)]
#   ca_bkv : (2, L*D)      matching biases
#   w1t    : (L, D, FF)    linear1.weight^T
#   w2t    : (L, FF, D)    linear2.weight^T
#   b1     : (L, FF)       linear1.bias
#   brows  : (L, 11, D)    [sa_bv, sa_bo, ca_bq*scale, ca_bo, b2,
#                           n1w, n1b, n2w, n2b, n3w, n3b]
#   fnorm  : (2, D)        final decoder norm [weight, bias]
# ---------------------------------------------------------------------------
def _decoder_kernel(tgt_ref, mem_ref, qpos_ref, pos_ref,
                    sa_wqk_ref, sa_bqk_ref, wdd_ref, ca_wkv_ref, ca_bkv_ref,
                    w1t_ref, w2t_ref, b1_ref, brows_ref, fnorm_ref,
                    out_ref, *, batch, q_len, kv_len):
    D = D_MODEL
    x = tgt_ref[...]                     # (B*T, D)
    qpos = qpos_ref[...]                 # (B*T, D)
    mem = mem_ref[...]                   # (B*S, D)
    kmem = mem + pos_ref[...]            # cross-attn key input (layer-invariant)

    # Layer-invariant cross-attention K/V projections for ALL layers at once
    # (two wide (B*S, D) @ (D, L*D) GEMMs instead of 2*L tiny ones).
    k_all = jnp.dot(kmem, ca_wkv_ref[0],
                    preferred_element_type=jnp.float32) + ca_bkv_ref[0]   # (B*S, L*D)
    v_all = jnp.dot(mem, ca_wkv_ref[1],
                    preferred_element_type=jnp.float32) + ca_bkv_ref[1]   # (B*S, L*D)

    n_layers = wdd_ref.shape[0]
    for l in range(n_layers):
        # ----- self-attention: q_in == k_in = x + qpos, v_in = x -----
        q_in = x + qpos
        qk = jnp.dot(q_in, sa_wqk_ref[l],
                     preferred_element_type=jnp.float32) + sa_bqk_ref[l]  # (B*T, 2D)
        v = jnp.dot(x, wdd_ref[l, 0],
                    preferred_element_type=jnp.float32) + brows_ref[l, 0]  # (B*T, D)
        sa = _attention(qk[:, :D], qk[:, D:], v,
                        wdd_ref[l, 1], brows_ref[l, 1],
                        batch, q_len, q_len)
        x = _layernorm(x + sa, brows_ref[l, 5], brows_ref[l, 6])

        # ----- cross-attention: q = x + qpos, k = mem + pos, v = mem -----
        q = jnp.dot(x + qpos, wdd_ref[l, 2],
                    preferred_element_type=jnp.float32) + brows_ref[l, 2]  # (B*T, D)
        k = k_all[:, l * D:(l + 1) * D]
        v = v_all[:, l * D:(l + 1) * D]
        ca = _attention(q, k, v, wdd_ref[l, 3], brows_ref[l, 3],
                        batch, q_len, kv_len)
        x = _layernorm(x + ca, brows_ref[l, 7], brows_ref[l, 8])

        # ----- FFN -----
        h = jnp.maximum(jnp.dot(x, w1t_ref[l],
                                preferred_element_type=jnp.float32) + b1_ref[l], 0.0)
        ff = jnp.dot(h, w2t_ref[l],
                     preferred_element_type=jnp.float32) + brows_ref[l, 4]
        x = _layernorm(x + ff, brows_ref[l, 9], brows_ref[l, 10])

    out_ref[...] = _layernorm(x, fnorm_ref[0], fnorm_ref[1])


# ---------------------------------------------------------------------------
# Host-side packing: pre-transpose, fold softmax scale, stack across layers.
# Called ONCE at init (outside the per-call jit).
# ---------------------------------------------------------------------------
def pack_params(params):
    D = D_MODEL
    scale = 1.0 / float(np.sqrt(HEAD_DIM))
    sa_wqk, sa_bqk, wdd, w1t, w2t, b1s, brows = [], [], [], [], [], [], []
    ca_wk_cols, ca_wv_cols, ca_bk_cols, ca_bv_cols = [], [], [], []
    for lp in params["layers"]:
        (sa_wqkv, sa_b, sa_wo, sa_bo,
         ca_wqkv, ca_b, ca_wo, ca_bo,
         w1, b1, w2, b2,
         n1w, n1b, n2w, n2b, n3w, n3b) = lp

        sa_wq_t = sa_wqkv[0:D].T * scale
        sa_wk_t = sa_wqkv[D:2 * D].T
        sa_wv_t = sa_wqkv[2 * D:3 * D].T
        sa_bq = sa_b[0, 0:D] * scale
        sa_bk = sa_b[0, D:2 * D]
        sa_bv = sa_b[0, 2 * D:3 * D]

        ca_wq_t = ca_wqkv[0:D].T * scale
        ca_wk_t = ca_wqkv[D:2 * D].T
        ca_wv_t = ca_wqkv[2 * D:3 * D].T
        ca_bq = ca_b[0, 0:D] * scale
        ca_bk = ca_b[0, D:2 * D]
        ca_bv = ca_b[0, 2 * D:3 * D]

        sa_wqk.append(jnp.concatenate([sa_wq_t, sa_wk_t], axis=1))       # (D, 2D)
        sa_bqk.append(jnp.concatenate([sa_bq, sa_bk], axis=0))           # (2D,)
        wdd.append(jnp.stack([sa_wv_t, sa_wo.T, ca_wq_t, ca_wo.T]))      # (4, D, D)
        ca_wk_cols.append(ca_wk_t)                                       # (D, D)
        ca_wv_cols.append(ca_wv_t)
        ca_bk_cols.append(ca_bk)                                         # (D,)
        ca_bv_cols.append(ca_bv)
        w1t.append(w1.T)                                                 # (D, FF)
        w2t.append(w2.T)                                                 # (FF, D)
        b1s.append(b1[0])                                                # (FF,)
        brows.append(jnp.stack([sa_bv, sa_bo[0], ca_bq, ca_bo[0], b2[0],
                                n1w[0], n1b[0], n2w[0], n2b[0],
                                n3w[0], n3b[0]]))                        # (11, D)

    return {
        "sa_wqk": jnp.stack(sa_wqk),                                     # (L, D, 2D)
        "sa_bqk": jnp.stack(sa_bqk),                                     # (L, 2D)
        "wdd": jnp.stack(wdd),                                           # (L, 4, D, D)
        "ca_wkv": jnp.stack([jnp.concatenate(ca_wk_cols, axis=1),
                             jnp.concatenate(ca_wv_cols, axis=1)]),      # (2, D, L*D)
        "ca_bkv": jnp.stack([jnp.concatenate(ca_bk_cols, axis=0),
                             jnp.concatenate(ca_bv_cols, axis=0)]),      # (2, L*D)
        "w1t": jnp.stack(w1t),                                           # (L, D, FF)
        "w2t": jnp.stack(w2t),                                           # (L, FF, D)
        "b1": jnp.stack(b1s),                                            # (L, FF)
        "brows": jnp.stack(brows),                                       # (L, 11, D)
        "fnorm": jnp.stack([params["norm_w"][0], params["norm_b"][0]]),  # (2, D)
    }


_PARAM_NAMES = ("sa_wqk", "sa_bqk", "wdd", "ca_wkv", "ca_bkv",
                "w1t", "w2t", "b1", "brows", "fnorm")


# ---------------------------------------------------------------------------
# Wrapper: single grid-less fused pallas_call, whole working set in VMEM.
# Takes the PRE-PACKED parameter dict (pack once at init, not per call).
# ---------------------------------------------------------------------------
@jax.jit
def transformer_decoder_pallas(tgt_tbd, memory_sbd, pos_sbd, query_pos_tbd, packed):
    T, B, D = tgt_tbd.shape
    S = memory_sbd.shape[0]

    # batch-major, batch folded into the GEMM M dimension (tiny copies)
    tgt = jnp.transpose(tgt_tbd, (1, 0, 2)).reshape(B * T, D)
    mem = jnp.transpose(memory_sbd, (1, 0, 2)).reshape(B * S, D)
    pos = jnp.transpose(pos_sbd, (1, 0, 2)).reshape(B * S, D)
    qpos = jnp.transpose(query_pos_tbd, (1, 0, 2)).reshape(B * T, D)

    param_list = [packed[k] for k in _PARAM_NAMES]
    n_in = 4 + len(param_list)

    kernel = functools.partial(_decoder_kernel, batch=B, q_len=T, kv_len=S)

    out = pl.pallas_call(
        kernel,
        out_shape=jax.ShapeDtypeStruct((B * T, D), jnp.float32),
        in_specs=[pl.BlockSpec(memory_space=pltpu.MemorySpace.VMEM)
                  for _ in range(n_in)],
        out_specs=pl.BlockSpec(memory_space=pltpu.MemorySpace.VMEM),
    )(tgt, mem, qpos, pos, *param_list)

    # (B*T, D) -> (T, B, D), then unsqueeze(0) like the PyTorch module
    return jnp.transpose(out.reshape(B, T, D), (1, 0, 2))[None]


# ---------------------------------------------------------------------------
# Pure-JAX reference (original PyTorch parameter layout) for verification.
# ---------------------------------------------------------------------------
def _mha_ref(q_in, k_in, v_in, wqkv, bqkv, wo, bo):
    D = q_in.shape[-1]
    hd = D // NHEAD
    wq, wk, wv = wqkv[0:D], wqkv[D:2 * D], wqkv[2 * D:3 * D]
    bq, bk, bv = bqkv[:, 0:D], bqkv[:, D:2 * D], bqkv[:, 2 * D:3 * D]
    q = q_in @ wq.T + bq
    k = k_in @ wk.T + bk
    v = v_in @ wv.T + bv
    scale = 1.0 / float(np.sqrt(hd))
    outs = []
    for h in range(NHEAD):
        sl = slice(h * hd, (h + 1) * hd)
        s = (q[:, sl] * scale) @ k[:, sl].T
        p = jax.nn.softmax(s, axis=-1)
        outs.append(p @ v[:, sl])
    return jnp.concatenate(outs, axis=-1) @ wo.T + bo


def _layer_ref(tgt, mem, qpos, pos,
               sa_wqkv, sa_bqkv, sa_wo, sa_bo,
               ca_wqkv, ca_bqkv, ca_wo, ca_bo,
               w1, b1, w2, b2, n1w, n1b, n2w, n2b, n3w, n3b):
    q = tgt + qpos
    sa = _mha_ref(q, q, tgt, sa_wqkv, sa_bqkv, sa_wo, sa_bo)
    tgt = _layernorm(tgt + sa, n1w, n1b)
    ca = _mha_ref(tgt + qpos, mem + pos, mem, ca_wqkv, ca_bqkv, ca_wo, ca_bo)
    tgt = _layernorm(tgt + ca, n2w, n2b)
    h = jnp.maximum(tgt @ w1.T + b1, 0.0)
    ff = h @ w2.T + b2
    return _layernorm(tgt + ff, n3w, n3b)


def transformer_decoder_ref(tgt_tbd, memory_sbd, pos_sbd, query_pos_tbd, params):
    layer_ref = jax.vmap(_layer_ref, in_axes=(0, 0, 0, 0) + (None,) * 18)
    tgt = jnp.transpose(tgt_tbd, (1, 0, 2))
    mem = jnp.transpose(memory_sbd, (1, 0, 2))
    pos = jnp.transpose(pos_sbd, (1, 0, 2))
    qpos = jnp.transpose(query_pos_tbd, (1, 0, 2))
    out = tgt
    for lp in params["layers"]:
        out = layer_ref(out, mem, qpos, pos, *lp)
    out = jax.vmap(_layernorm, in_axes=(0, None, None))(
        out, params["norm_w"], params["norm_b"])
    return jnp.transpose(out, (1, 0, 2))[None]


# ---------------------------------------------------------------------------
# Deterministic parameter init (PyTorch nn.MultiheadAttention / Linear /
# LayerNorm shapes; biases stored as (1, N) rows).
# ---------------------------------------------------------------------------
def init_params(key):
    def nrm(k, shape, scale=0.05):
        return scale * jax.random.normal(k, shape, jnp.float32)

    layers = []
    for l in range(NUM_LAYERS):
        ks = jax.random.split(jax.random.fold_in(key, l), 12)
        lp = (
            nrm(ks[0], (3 * D_MODEL, D_MODEL)),    # self-attn in_proj_weight
            nrm(ks[1], (1, 3 * D_MODEL)),          # self-attn in_proj_bias
            nrm(ks[2], (D_MODEL, D_MODEL)),        # self-attn out_proj.weight
            nrm(ks[3], (1, D_MODEL)),              # self-attn out_proj.bias
            nrm(ks[4], (3 * D_MODEL, D_MODEL)),    # cross-attn in_proj_weight
            nrm(ks[5], (1, 3 * D_MODEL)),          # cross-attn in_proj_bias
            nrm(ks[6], (D_MODEL, D_MODEL)),        # cross-attn out_proj.weight
            nrm(ks[7], (1, D_MODEL)),              # cross-attn out_proj.bias
            nrm(ks[8], (DIM_FF, D_MODEL)),         # linear1.weight
            nrm(ks[9], (1, DIM_FF)),               # linear1.bias
            nrm(ks[10], (D_MODEL, DIM_FF)),        # linear2.weight
            nrm(ks[11], (1, D_MODEL)),             # linear2.bias
            jnp.ones((1, D_MODEL), jnp.float32),   # norm1.weight
            jnp.zeros((1, D_MODEL), jnp.float32),  # norm1.bias
            jnp.ones((1, D_MODEL), jnp.float32),   # norm2.weight
            jnp.zeros((1, D_MODEL), jnp.float32),  # norm2.bias
            jnp.ones((1, D_MODEL), jnp.float32),   # norm3.weight
            jnp.zeros((1, D_MODEL), jnp.float32),  # norm3.bias
        )
        layers.append(lp)
    return {
        "layers": layers,
        "norm_w": jnp.ones((1, D_MODEL), jnp.float32),   # final decoder norm
        "norm_b": jnp.zeros((1, D_MODEL), jnp.float32),
    }


if __name__ == "__main__":
    T, S, B = 8, 16, 2  # num queries, memory length, batch
    key = jax.random.PRNGKey(0)
    k1, k2, k3, k4, kp = jax.random.split(key, 5)
    tgt = jax.random.normal(k1, (T, B, D_MODEL), jnp.float32)
    memory = jax.random.normal(k2, (S, B, D_MODEL), jnp.float32)
    pos = jax.random.normal(k3, (S, B, D_MODEL), jnp.float32)
    query_pos = jax.random.normal(k4, (T, B, D_MODEL), jnp.float32)
    params = init_params(kp)

    # pack once at init (outside the jitted forward), reuse for every call
    packed = jax.tree_util.tree_map(jax.block_until_ready, pack_params(params))

    out = transformer_decoder_pallas(tgt, memory, pos, query_pos, packed)
    out = jax.block_until_ready(out)
    assert out.shape == (1, T, B, D_MODEL), out.shape

    ref = transformer_decoder_ref(tgt, memory, pos, query_pos, params)
    assert jnp.allclose(out, ref, atol=5e-3, rtol=5e-3), "mismatch vs JAX reference"

    print("KERNEL_OK")
</pallas_src>

<mosaic_0001>
module attributes {stable_mosaic.version = 11 : i64} {
  func.func @_decoder_kernel(%arg0: memref<16x32xf32, #tpu.memory_space<vmem>>, %arg1: memref<32x32xf32, #tpu.memory_space<vmem>>, %arg2: memref<16x32xf32, #tpu.memory_space<vmem>>, %arg3: memref<32x32xf32, #tpu.memory_space<vmem>>, %arg4: memref<2x32x64xf32, #tpu.memory_space<vmem>>, %arg5: memref<2x64xf32, #tpu.memory_space<vmem>>, %arg6: memref<2x4x32x32xf32, #tpu.memory_space<vmem>>, %arg7: memref<2x32x64xf32, #tpu.memory_space<vmem>>, %arg8: memref<2x64xf32, #tpu.memory_space<vmem>>, %arg9: memref<2x32x64xf32, #tpu.memory_space<vmem>>, %arg10: memref<2x64x32xf32, #tpu.memory_space<vmem>>, %arg11: memref<2x64xf32, #tpu.memory_space<vmem>>, %arg12: memref<2x11x32xf32, #tpu.memory_space<vmem>>, %arg13: memref<2x32xf32, #tpu.memory_space<vmem>>, %arg14: memref<16x32xf32, #tpu.memory_space<vmem>>) attributes {dimension_semantics = [], scalar_prefetch = 0 : i64, scratch_operands = 0 : i64, tpu.core_type = #tpu.core_type<tc>} {
    %c0 = arith.constant 0 : index
    %c0_0 = arith.constant 0 : index
    %0 = vector.load %arg0[%c0, %c0_0] : memref<16x32xf32, #tpu.memory_space<vmem>>, vector<16x32xf32>
    %c0_1 = arith.constant 0 : index
    %c0_2 = arith.constant 0 : index
    %1 = vector.load %arg2[%c0_1, %c0_2] : memref<16x32xf32, #tpu.memory_space<vmem>>, vector<16x32xf32>
    %c0_3 = arith.constant 0 : index
    %c0_4 = arith.constant 0 : index
    %2 = vector.load %arg1[%c0_3, %c0_4] : memref<32x32xf32, #tpu.memory_space<vmem>>, vector<32x32xf32>
    %c0_5 = arith.constant 0 : index
    %c0_6 = arith.constant 0 : index
    %3 = vector.load %arg3[%c0_5, %c0_6] : memref<32x32xf32, #tpu.memory_space<vmem>>, vector<32x32xf32>
    %4 = arith.addf %2, %3 : vector<32x32xf32>
    %c0_7 = arith.constant 0 : index
    %c0_8 = arith.constant 0 : index
    %c0_9 = arith.constant 0 : index
    %5 = vector.load %arg7[%c0_7, %c0_8, %c0_9] : memref<2x32x64xf32, #tpu.memory_space<vmem>>, vector<1x32x64xf32>
    %6 = vector.shape_cast %5 : vector<1x32x64xf32> to vector<32x64xf32>
    %cst = arith.constant dense<0.000000e+00> : vector<32x64xf32>
    %7 = tpu.matmul %4, %6, %cst {dimension_numbers = #tpu.dot_dimension_numbers<[1], [0], [0], [1], [0, 0, 1, 1], [], []>} : vector<32x32xf32>, vector<32x64xf32>, vector<32x64xf32> -> vector<32x64xf32>
    %c0_10 = arith.constant 0 : index
    %c0_11 = arith.constant 0 : index
    %8 = vector.load %arg8[%c0_10, %c0_11] : memref<2x64xf32, #tpu.memory_space<vmem>>, vector<1x64xf32>
    %9 = vector.shape_cast %8 : vector<1x64xf32> to vector<64xf32>
    %10 = vector.shape_cast %9 : vector<64xf32> to vector<1x64xf32>
    %11 = vector.broadcast %10 : vector<1x64xf32> to vector<32x64xf32>
    %12 = arith.addf %7, %11 : vector<32x64xf32>
    %c1 = arith.constant 1 : index
    %c0_12 = arith.constant 0 : index
    %c0_13 = arith.constant 0 : index
    %13 = vector.load %arg7[%c1, %c0_12, %c0_13] : memref<2x32x64xf32, #tpu.memory_space<vmem>>, vector<1x32x64xf32>
    %14 = vector.shape_cast %13 : vector<1x32x64xf32> to vector<32x64xf32>
    %cst_14 = arith.constant dense<0.000000e+00> : vector<32x64xf32>
    %15 = tpu.matmul %2, %14, %cst_14 {dimension_numbers = #tpu.dot_dimension_numbers<[1], [0], [0], [1], [0, 0, 1, 1], [], []>} : vector<32x32xf32>, vector<32x64xf32>, vector<32x64xf32> -> vector<32x64xf32>
    %c1_15 = arith.constant 1 : index
    %c0_16 = arith.constant 0 : index
    %16 = vector.load %arg8[%c1_15, %c0_16] : memref<2x64xf32, #tpu.memory_space<vmem>>, vector<1x64xf32>
    %17 = vector.shape_cast %16 : vector<1x64xf32> to vector<64xf32>
    %18 = vector.shape_cast %17 : vector<64xf32> to vector<1x64xf32>
    %19 = vector.broadcast %18 : vector<1x64xf32> to vector<32x64xf32>
    %20 = arith.addf %15, %19 : vector<32x64xf32>
    %21 = arith.addf %0, %1 : vector<16x32xf32>
    %c0_17 = arith.constant 0 : index
    %c0_18 = arith.constant 0 : index
    %c0_19 = arith.constant 0 : index
    %22 = vector.load %arg4[%c0_17, %c0_18, %c0_19] : memref<2x32x64xf32, #tpu.memory_space<vmem>>, vector<1x32x64xf32>
    %23 = vector.shape_cast %22 : vector<1x32x64xf32> to vector<32x64xf32>
    %cst_20 = arith.constant dense<0.000000e+00> : vector<16x64xf32>
    %24 = tpu.matmul %21, %23, %cst_20 {dimension_numbers = #tpu.dot_dimension_numbers<[1], [0], [0], [1], [0, 0, 1, 1], [], []>} : vector<16x32xf32>, vector<32x64xf32>, vector<16x64xf32> -> vector<16x64xf32>
    %c0_21 = arith.constant 0 : index
    %c0_22 = arith.constant 0 : index
    %25 = vector.load %arg5[%c0_21, %c0_22] : memref<2x64xf32, #tpu.memory_space<vmem>>, vector<1x64xf32>
    %26 = vector.shape_cast %25 : vector<1x64xf32> to vector<64xf32>
    %27 = vector.shape_cast %26 : vector<64xf32> to vector<1x64xf32>
    %28 = vector.broadcast %27 : vector<1x64xf32> to vector<16x64xf32>
    %29 = arith.addf %24, %28 : vector<16x64xf32>
    %c0_23 = arith.constant 0 : index
    %c0_24 = arith.constant 0 : index
    %c0_25 = arith.constant 0 : index
    %c0_26 = arith.constant 0 : index
    %30 = vector.load %arg6[%c0_23, %c0_24, %c0_25, %c0_26] : memref<2x4x32x32xf32, #tpu.memory_space<vmem>>, vector<1x1x32x32xf32>
    %31 = vector.shape_cast %30 : vector<1x1x32x32xf32> to vector<32x32xf32>
    %cst_27 = arith.constant dense<0.000000e+00> : vector<16x32xf32>
    %32 = tpu.matmul %0, %31, %cst_27 {dimension_numbers = #tpu.dot_dimension_numbers<[1], [0], [0], [1], [0, 0, 1, 1], [], []>} : vector<16x32xf32>, vector<32x32xf32>, vector<16x32xf32> -> vector<16x32xf32>
    %c0_28 = arith.constant 0 : index
    %c0_29 = arith.constant 0 : index
    %c0_30 = arith.constant 0 : index
    %33 = vector.load %arg12[%c0_28, %c0_29, %c0_30] : memref<2x11x32xf32, #tpu.memory_space<vmem>>, vector<1x1x32xf32>
    %34 = vector.shape_cast %33 : vector<1x1x32xf32> to vector<32xf32>
    %35 = vector.shape_cast %34 : vector<32xf32> to vector<1x32xf32>
    %36 = vector.broadcast %35 : vector<1x32xf32> to vector<16x32xf32>
    %37 = arith.addf %32, %36 : vector<16x32xf32>
    %38 = vector.extract_strided_slice %29 {offsets = [0, 0], sizes = [16, 32], strides = [1, 1]} : vector<16x64xf32> to vector<16x32xf32>
    %39 = vector.extract_strided_slice %29 {offsets = [0, 32], sizes = [16, 32], strides = [1, 1]} : vector<16x64xf32> to vector<16x32xf32>
    %c0_31 = arith.constant 0 : index
    %c1_32 = arith.constant 1 : index
    %c0_33 = arith.constant 0 : index
    %c0_34 = arith.constant 0 : index
    %40 = vector.load %arg6[%c0_31, %c1_32, %c0_33, %c0_34] : memref<2x4x32x32xf32, #tpu.memory_space<vmem>>, vector<1x1x32x32xf32>
    %41 = vector.shape_cast %40 : vector<1x1x32x32xf32> to vector<32x32xf32>
    %c0_35 = arith.constant 0 : index
    %c1_36 = arith.constant 1 : index
    %c0_37 = arith.constant 0 : index
    %42 = vector.load %arg12[%c0_35, %c1_36, %c0_37] : memref<2x11x32xf32, #tpu.memory_space<vmem>>, vector<1x1x32xf32>
    %43 = vector.shape_cast %42 : vector<1x1x32xf32> to vector<32xf32>
    %44 = vector.extract_strided_slice %38 {offsets = [0, 0], sizes = [8, 8], strides = [1, 1]} : vector<16x32xf32> to vector<8x8xf32>
    %45 = vector.extract_strided_slice %39 {offsets = [0, 0], sizes = [8, 8], strides = [1, 1]} : vector<16x32xf32> to vector<8x8xf32>
    %cst_38 = arith.constant dense<0.000000e+00> : vector<8x8xf32>
    %46 = tpu.matmul %44, %45, %cst_38 {dimension_numbers = #tpu.dot_dimension_numbers<[1], [1], [0], [0], [0, 0, 1, 0], [], []>} : vector<8x8xf32>, vector<8x8xf32>, vector<8x8xf32> -> vector<8x8xf32>
    %cst_39 = arith.constant dense<0xFF800000> : vector<8xf32>
    %47 = vector.multi_reduction <maximumf>, %46, %cst_39 [1] : vector<8x8xf32> to vector<8xf32>
    %48 = vector.shape_cast %47 : vector<8xf32> to vector<8x1xf32>
    %49 = vector.broadcast %48 : vector<8x1xf32> to vector<8x8xf32>
    %50 = arith.subf %46, %49 : vector<8x8xf32>
    %51 = math.exp %50 : vector<8x8xf32>
    %cst_40 = arith.constant dense<0.000000e+00> : vector<8xf32>
    %52 = vector.multi_reduction <add>, %51, %cst_40 [1] : vector<8x8xf32> to vector<8xf32>
    %53 = vector.shape_cast %52 : vector<8xf32> to vector<8x1xf32>
    %54 = tpu.reciprocal %53 {approx = true} : vector<8x1xf32> -> vector<8x1xf32>
    %55 = vector.broadcast %54 : vector<8x1xf32> to vector<8x8xf32>
    %56 = arith.mulf %51, %55 : vector<8x8xf32>
    %57 = vector.extract_strided_slice %37 {offsets = [0, 0], sizes = [8, 8], strides = [1, 1]} : vector<16x32xf32> to vector<8x8xf32>
    %cst_41 = arith.constant dense<0.000000e+00> : vector<8x8xf32>
    %58 = tpu.matmul %56, %57, %cst_41 {dimension_numbers = #tpu.dot_dimension_numbers<[1], [0], [0], [1], [0, 0, 1, 1], [], []>} : vector<8x8xf32>, vector<8x8xf32>, vector<8x8xf32> -> vector<8x8xf32>
    %59 = vector.extract_strided_slice %38 {offsets = [0, 8], sizes = [8, 8], strides = [1, 1]} : vector<16x32xf32> to vector<8x8xf32>
    %60 = vector.extract_strided_slice %39 {offsets = [0, 8], sizes = [8, 8], strides = [1, 1]} : vector<16x32xf32> to vector<8x8xf32>
    %cst_42 = arith.constant dense<0.000000e+00> : vector<8x8xf32>
    %61 = tpu.matmul %59, %60, %cst_42 {dimension_numbers = #tpu.dot_dimension_numbers<[1], [1], [0], [0], [0, 0, 1, 0], [], []>} : vector<8x8xf32>, vector<8x8xf32>, vector<8x8xf32> -> vector<8x8xf32>
    %cst_43 = arith.constant dense<0xFF800000> : vector<8xf32>
    %62 = vector.multi_reduction <maximumf>, %61, %cst_43 [1] : vector<8x8xf32> to vector<8xf32>
    %63 = vector.shape_cast %62 : vector<8xf32> to vector<8x1xf32>
    %64 = vector.broadcast %63 : vector<8x1xf32> to vector<8x8xf32>
    %65 = arith.subf %61, %64 : vector<8x8xf32>
    %66 = math.exp %65 : vector<8x8xf32>
    %cst_44 = arith.constant dense<0.000000e+00> : vector<8xf32>
    %67 = vector.multi_reduction <add>, %66, %cst_44 [1] : vector<8x8xf32> to vector<8xf32>
    %68 = vector.shape_cast %67 : vector<8xf32> to vector<8x1xf32>
    %69 = tpu.reciprocal %68 {approx = true} : vector<8x1xf32> -> vector<8x1xf32>
    %70 = vector.broadcast %69 : vector<8x1xf32> to vector<8x8xf32>
    %71 = arith.mulf %66, %70 : vector<8x8xf32>
    %72 = vector.extract_strided_slice %37 {offsets = [0, 8], sizes = [8, 8], strides = [1, 1]} : vector<16x32xf32> to vector<8x8xf32>
    %cst_45 = arith.constant dense<0.000000e+00> : vector<8x8xf32>
    %73 = tpu.matmul %71, %72, %cst_45 {dimension_numbers = #tpu.dot_dimension_numbers<[1], [0], [0], [1], [0, 0, 1, 1], [], []>} : vector<8x8xf32>, vector<8x8xf32>, vector<8x8xf32> -> vector<8x8xf32>
    %74 = vector.extract_strided_slice %38 {offsets = [0, 16], sizes = [8, 8], strides = [1, 1]} : vector<16x32xf32> to vector<8x8xf32>
    %75 = vector.extract_strided_slice %39 {offsets = [0, 16], sizes = [8, 8], strides = [1, 1]} : vector<16x32xf32> to vector<8x8xf32>
    %cst_46 = arith.constant dense<0.000000e+00> : vector<8x8xf32>
    %76 = tpu.matmul %74, %75, %cst_46 {dimension_numbers = #tpu.dot_dimension_numbers<[1], [1], [0], [0], [0, 0, 1, 0], [], []>} : vector<8x8xf32>, vector<8x8xf32>, vector<8x8xf32> -> vector<8x8xf32>
    %cst_47 = arith.constant dense<0xFF800000> : vector<8xf32>
    %77 = vector.multi_reduction <maximumf>, %76, %cst_47 [1] : vector<8x8xf32> to vector<8xf32>
    %78 = vector.shape_cast %77 : vector<8xf32> to vector<8x1xf32>
    %79 = vector.broadcast %78 : vector<8x1xf32> to vector<8x8xf32>
    %80 = arith.subf %76, %79 : vector<8x8xf32>
    %81 = math.exp %80 : vector<8x8xf32>
    %cst_48 = arith.constant dense<0.000000e+00> : vector<8xf32>
    %82 = vector.multi_reduction <add>, %81, %cst_48 [1] : vector<8x8xf32> to vector<8xf32>
    %83 = vector.shape_cast %82 : vector<8xf32> to vector<8x1xf32>
    %84 = tpu.reciprocal %83 {approx = true} : vector<8x1xf32> -> vector<8x1xf32>
    %85 = vector.broadcast %84 : vector<8x1xf32> to vector<8x8xf32>
    %86 = arith.mulf %81, %85 : vector<8x8xf32>
    %87 = vector.extract_strided_slice %37 {offsets = [0, 16], sizes = [8, 8], strides = [1, 1]} : vector<16x32xf32> to vector<8x8xf32>
    %cst_49 = arith.constant dense<0.000000e+00> : vector<8x8xf32>
    %88 = tpu.matmul %86, %87, %cst_49 {dimension_numbers = #tpu.dot_dimension_numbers<[1], [0], [0], [1], [0, 0, 1, 1], [], []>} : vector<8x8xf32>, vector<8x8xf32>, vector<8x8xf32> -> vector<8x8xf32>
    %89 = vector.extract_strided_slice %38 {offsets = [0, 24], sizes = [8, 8], strides = [1, 1]} : vector<16x32xf32> to vector<8x8xf32>
    %90 = vector.extract_strided_slice %39 {offsets = [0, 24], sizes = [8, 8], strides = [1, 1]} : vector<16x32xf32> to vector<8x8xf32>
    %cst_50 = arith.constant dense<0.000000e+00> : vector<8x8xf32>
    %91 = tpu.matmul %89, %90, %cst_50 {dimension_numbers = #tpu.dot_dimension_numbers<[1], [1], [0], [0], [0, 0, 1, 0], [], []>} : vector<8x8xf32>, vector<8x8xf32>, vector<8x8xf32> -> vector<8x8xf32>
    %cst_51 = arith.constant dense<0xFF800000> : vector<8xf32>
    %92 = vector.multi_reduction <maximumf>, %91, %cst_51 [1] : vector<8x8xf32> to vector<8xf32>
    %93 = vector.shape_cast %92 : vector<8xf32> to vector<8x1xf32>
    %94 = vector.broadcast %93 : vector<8x1xf32> to vector<8x8xf32>
    %95 = arith.subf %91, %94 : vector<8x8xf32>
    %96 = math.exp %95 : vector<8x8xf32>
    %cst_52 = arith.constant dense<0.000000e+00> : vector<8xf32>
    %97 = vector.multi_reduction <add>, %96, %cst_52 [1] : vector<8x8xf32> to vector<8xf32>
    %98 = vector.shape_cast %97 : vector<8xf32> to vector<8x1xf32>
    %99 = tpu.reciprocal %98 {approx = true} : vector<8x1xf32> -> vector<8x1xf32>
    %100 = vector.broadcast %99 : vector<8x1xf32> to vector<8x8xf32>
    %101 = arith.mulf %96, %100 : vector<8x8xf32>
    %102 = vector.extract_strided_slice %37 {offsets = [0, 24], sizes = [8, 8], strides = [1, 1]} : vector<16x32xf32> to vector<8x8xf32>
    %cst_53 = arith.constant dense<0.000000e+00> : vector<8x8xf32>
    %103 = tpu.matmul %101, %102, %cst_53 {dimension_numbers = #tpu.dot_dimension_numbers<[1], [0], [0], [1], [0, 0, 1, 1], [], []>} : vector<8x8xf32>, vector<8x8xf32>, vector<8x8xf32> -> vector<8x8xf32>
    %104 = tpu.concatenate %58, %73, %88, %103 in 1 : vector<8x8xf32>, vector<8x8xf32>, vector<8x8xf32>, vector<8x8xf32> -> vector<8x32xf32>
    %105 = vector.extract_strided_slice %38 {offsets = [8, 0], sizes = [8, 8], strides = [1, 1]} : vector<16x32xf32> to vector<8x8xf32>
    %106 = vector.extract_strided_slice %39 {offsets = [8, 0], sizes = [8, 8], strides = [1, 1]} : vector<16x32xf32> to vector<8x8xf32>
    %cst_54 = arith.constant dense<0.000000e+00> : vector<8x8xf32>
    %107 = tpu.matmul %105, %106, %cst_54 {dimension_numbers = #tpu.dot_dimension_numbers<[1], [1], [0], [0], [0, 0, 1, 0], [], []>} : vector<8x8xf32>, vector<8x8xf32>, vector<8x8xf32> -> vector<8x8xf32>
    %cst_55 = arith.constant dense<0xFF800000> : vector<8xf32>
    %108 = vector.multi_reduction <maximumf>, %107, %cst_55 [1] : vector<8x8xf32> to vector<8xf32>
    %109 = vector.shape_cast %108 : vector<8xf32> to vector<8x1xf32>
    %110 = vector.broadcast %109 : vector<8x1xf32> to vector<8x8xf32>
    %111 = arith.subf %107, %110 : vector<8x8xf32>
    %112 = math.exp %111 : vector<8x8xf32>
    %cst_56 = arith.constant dense<0.000000e+00> : vector<8xf32>
    %113 = vector.multi_reduction <add>, %112, %cst_56 [1] : vector<8x8xf32> to vector<8xf32>
    %114 = vector.shape_cast %113 : vector<8xf32> to vector<8x1xf32>
    %115 = tpu.reciprocal %114 {approx = true} : vector<8x1xf32> -> vector<8x1xf32>
    %116 = vector.broadcast %115 : vector<8x1xf32> to vector<8x8xf32>
    %117 = arith.mulf %112, %116 : vector<8x8xf32>
    %118 = vector.extract_strided_slice %37 {offsets = [8, 0], sizes = [8, 8], strides = [1, 1]} : vector<16x32xf32> to vector<8x8xf32>
    %cst_57 = arith.constant dense<0.000000e+00> : vector<8x8xf32>
    %119 = tpu.matmul %117, %118, %cst_57 {dimension_numbers = #tpu.dot_dimension_numbers<[1], [0], [0], [1], [0, 0, 1, 1], [], []>} : vector<8x8xf32>, vector<8x8xf32>, vector<8x8xf32> -> vector<8x8xf32>
    %120 = vector.extract_strided_slice %38 {offsets = [8, 8], sizes = [8, 8], strides = [1, 1]} : vector<16x32xf32> to vector<8x8xf32>
    %121 = vector.extract_strided_slice %39 {offsets = [8, 8], sizes = [8, 8], strides = [1, 1]} : vector<16x32xf32> to vector<8x8xf32>
    %cst_58 = arith.constant dense<0.000000e+00> : vector<8x8xf32>
    %122 = tpu.matmul %120, %121, %cst_58 {dimension_numbers = #tpu.dot_dimension_numbers<[1], [1], [0], [0], [0, 0, 1, 0], [], []>} : vector<8x8xf32>, vector<8x8xf32>, vector<8x8xf32> -> vector<8x8xf32>
    %cst_59 = arith.constant dense<0xFF800000> : vector<8xf32>
    %123 = vector.multi_reduction <maximumf>, %122, %cst_59 [1] : vector<8x8xf32> to vector<8xf32>
    %124 = vector.shape_cast %123 : vector<8xf32> to vector<8x1xf32>
    %125 = vector.broadcast %124 : vector<8x1xf32> to vector<8x8xf32>
    %126 = arith.subf %122, %125 : vector<8x8xf32>
    %127 = math.exp %126 : vector<8x8xf32>
    %cst_60 = arith.constant dense<0.000000e+00> : vector<8xf32>
    %128 = vector.multi_reduction <add>, %127, %cst_60 [1] : vector<8x8xf32> to vector<8xf32>
    %129 = vector.shape_cast %128 : vector<8xf32> to vector<8x1xf32>
    %130 = tpu.reciprocal %129 {approx = true} : vector<8x1xf32> -> vector<8x1xf32>
    %131 = vector.broadcast %130 : vector<8x1xf32> to vector<8x8xf32>
    %132 = arith.mulf %127, %131 : vector<8x8xf32>
    %133 = vector.extract_strided_slice %37 {offsets = [8, 8], sizes = [8, 8], strides = [1, 1]} : vector<16x32xf32> to vector<8x8xf32>
    %cst_61 = arith.constant dense<0.000000e+00> : vector<8x8xf32>
    %134 = tpu.matmul %132, %133, %cst_61 {dimension_numbers = #tpu.dot_dimension_numbers<[1], [0], [0], [1], [0, 0, 1, 1], [], []>} : vector<8x8xf32>, vector<8x8xf32>, vector<8x8xf32> -> vector<8x8xf32>
    %135 = vector.extract_strided_slice %38 {offsets = [8, 16], sizes = [8, 8], strides = [1, 1]} : vector<16x32xf32> to vector<8x8xf32>
    %136 = vector.extract_strided_slice %39 {offsets = [8, 16], sizes = [8, 8], strides = [1, 1]} : vector<16x32xf32> to vector<8x8xf32>
    %cst_62 = arith.constant dense<0.000000e+00> : vector<8x8xf32>
    %137 = tpu.matmul %135, %136, %cst_62 {dimension_numbers = #tpu.dot_dimension_numbers<[1], [1], [0], [0], [0, 0, 1, 0], [], []>} : vector<8x8xf32>, vector<8x8xf32>, vector<8x8xf32> -> vector<8x8xf32>
    %cst_63 = arith.constant dense<0xFF800000> : vector<8xf32>
    %138 = vector.multi_reduction <maximumf>, %137, %cst_63 [1] : vector<8x8xf32> to vector<8xf32>
    %139 = vector.shape_cast %138 : vector<8xf32> to vector<8x1xf32>
    %140 = vector.broadcast %139 : vector<8x1xf32> to vector<8x8xf32>
    %141 = arith.subf %137, %140 : vector<8x8xf32>
    %142 = math.exp %141 : vector<8x8xf32>
    %cst_64 = arith.constant dense<0.000000e+00> : vector<8xf32>
    %143 = vector.multi_reduction <add>, %142, %cst_64 [1] : vector<8x8xf32> to vector<8xf32>
    %144 = vector.shape_cast %143 : vector<8xf32> to vector<8x1xf32>
    %145 = tpu.reciprocal %144 {approx = true} : vector<8x1xf32> -> vector<8x1xf32>
    %146 = vector.broadcast %145 : vector<8x1xf32> to vector<8x8xf32>
    %147 = arith.mulf %142, %146 : vector<8x8xf32>
    %148 = vector.extract_strided_slice %37 {offsets = [8, 16], sizes = [8, 8], strides = [1, 1]} : vector<16x32xf32> to vector<8x8xf32>
    %cst_65 = arith.constant dense<0.000000e+00> : vector<8x8xf32>
    %149 = tpu.matmul %147, %148, %cst_65 {dimension_numbers = #tpu.dot_dimension_numbers<[1], [0], [0], [1], [0, 0, 1, 1], [], []>} : vector<8x8xf32>, vector<8x8xf32>, vector<8x8xf32> -> vector<8x8xf32>
    %150 = vector.extract_strided_slice %38 {offsets = [8, 24], sizes = [8, 8], strides = [1, 1]} : vector<16x32xf32> to vector<8x8xf32>
    %151 = vector.extract_strided_slice %39 {offsets = [8, 24], sizes = [8, 8], strides = [1, 1]} : vector<16x32xf32> to vector<8x8xf32>
    %cst_66 = arith.constant dense<0.000000e+00> : vector<8x8xf32>
    %152 = tpu.matmul %150, %151, %cst_66 {dimension_numbers = #tpu.dot_dimension_numbers<[1], [1], [0], [0], [0, 0, 1, 0], [], []>} : vector<8x8xf32>, vector<8x8xf32>, vector<8x8xf32> -> vector<8x8xf32>
    %cst_67 = arith.constant dense<0xFF800000> : vector<8xf32>
    %153 = vector.multi_reduction <maximumf>, %152, %cst_67 [1] : vector<8x8xf32> to vector<8xf32>
    %154 = vector.shape_cast %153 : vector<8xf32> to vector<8x1xf32>
    %155 = vector.broadcast %154 : vector<8x1xf32> to vector<8x8xf32>
    %156 = arith.subf %152, %155 : vector<8x8xf32>
    %157 = math.exp %156 : vector<8x8xf32>
    %cst_68 = arith.constant dense<0.000000e+00> : vector<8xf32>
    %158 = vector.multi_reduction <add>, %157, %cst_68 [1] : vector<8x8xf32> to vector<8xf32>
    %159 = vector.shape_cast %158 : vector<8xf32> to vector<8x1xf32>
    %160 = tpu.reciprocal %159 {approx = true} : vector<8x1xf32> -> vector<8x1xf32>
    %161 = vector.broadcast %160 : vector<8x1xf32> to vector<8x8xf32>
    %162 = arith.mulf %157, %161 : vector<8x8xf32>
    %163 = vector.extract_strided_slice %37 {offsets = [8, 24], sizes = [8, 8], strides = [1, 1]} : vector<16x32xf32> to vector<8x8xf32>
    %cst_69 = arith.constant dense<0.000000e+00> : vector<8x8xf32>
    %164 = tpu.matmul %162, %163, %cst_69 {dimension_numbers = #tpu.dot_dimension_numbers<[1], [0], [0], [1], [0, 0, 1, 1], [], []>} : vector<8x8xf32>, vector<8x8xf32>, vector<8x8xf32> -> vector<8x8xf32>
    %165 = tpu.concatenate %119, %134, %149, %164 in 1 : vector<8x8xf32>, vector<8x8xf32>, vector<8x8xf32>, vector<8x8xf32> -> vector<8x32xf32>
    %166 = tpu.concatenate %104, %165 in 0 : vector<8x32xf32>, vector<8x32xf32> -> vector<16x32xf32>
    %cst_70 = arith.constant dense<0.000000e+00> : vector<16x32xf32>
    %167 = tpu.matmul %166, %41, %cst_70 {dimension_numbers = #tpu.dot_dimension_numbers<[1], [0], [0], [1], [0, 0, 1, 1], [], []>} : vector<16x32xf32>, vector<32x32xf32>, vector<16x32xf32> -> vector<16x32xf32>
    %168 = vector.shape_cast %43 : vector<32xf32> to vector<1x32xf32>
    %169 = vector.broadcast %168 : vector<1x32xf32> to vector<16x32xf32>
    %170 = arith.addf %167, %169 : vector<16x32xf32>
    %171 = arith.addf %0, %170 : vector<16x32xf32>
    %c0_71 = arith.constant 0 : index
    %c5 = arith.constant 5 : index
    %c0_72 = arith.constant 0 : index
    %172 = vector.load %arg12[%c0_71, %c5, %c0_72] : memref<2x11x32xf32, #tpu.memory_space<vmem>>, vector<1x1x32xf32>
    %173 = vector.shape_cast %172 : vector<1x1x32xf32> to vector<32xf32>
    %c0_73 = arith.constant 0 : index
    %c6 = arith.constant 6 : index
    %c0_74 = arith.constant 0 : index
    %174 = vector.load %arg12[%c0_73, %c6, %c0_74] : memref<2x11x32xf32, #tpu.memory_space<vmem>>, vector<1x1x32xf32>
    %175 = vector.shape_cast %174 : vector<1x1x32xf32> to vector<32xf32>
    %cst_75 = arith.constant dense<0.000000e+00> : vector<16xf32>
    %176 = vector.multi_reduction <add>, %171, %cst_75 [1] : vector<16x32xf32> to vector<16xf32>
    %177 = vector.shape_cast %176 : vector<16xf32> to vector<16x1xf32>
    %cst_76 = arith.constant 3.200000e+01 : f32
    %178 = vector.broadcast %cst_76 : f32 to vector<16x1xf32>
    %179 = arith.divf %177, %178 : vector<16x1xf32>
    %180 = vector.broadcast %179 : vector<16x1xf32> to vector<16x32xf32>
    %181 = arith.subf %171, %180 : vector<16x32xf32>
    %182 = arith.mulf %181, %181 : vector<16x32xf32>
    %cst_77 = arith.constant dense<0.000000e+00> : vector<16xf32>
    %183 = vector.multi_reduction <add>, %182, %cst_77 [1] : vector<16x32xf32> to vector<16xf32>
    %184 = vector.shape_cast %183 : vector<16xf32> to vector<16x1xf32>
    %cst_78 = arith.constant 3.200000e+01 : f32
    %185 = vector.broadcast %cst_78 : f32 to vector<16x1xf32>
    %186 = arith.divf %184, %185 : vector<16x1xf32>
    %187 = vector.broadcast %179 : vector<16x1xf32> to vector<16x32xf32>
    %188 = arith.subf %171, %187 : vector<16x32xf32>
    %cst_79 = arith.constant 9.99999974E-6 : f32
    %189 = vector.broadcast %cst_79 : f32 to vector<16x1xf32>
    %190 = arith.addf %186, %189 : vector<16x1xf32>
    %191 = math.rsqrt %190 : vector<16x1xf32>
    %192 = vector.broadcast %191 : vector<16x1xf32> to vector<16x32xf32>
    %193 = arith.mulf %188, %192 : vector<16x32xf32>
    %194 = vector.shape_cast %173 : vector<32xf32> to vector<1x32xf32>
    %195 = vector.broadcast %194 : vector<1x32xf32> to vector<16x32xf32>
    %196 = arith.mulf %193, %195 : vector<16x32xf32>
    %197 = vector.shape_cast %175 : vector<32xf32> to vector<1x32xf32>
    %198 = vector.broadcast %197 : vector<1x32xf32> to vector<16x32xf32>
    %199 = arith.addf %196, %198 : vector<16x32xf32>
    %200 = arith.addf %199, %1 : vector<16x32xf32>
    %c0_80 = arith.constant 0 : index
    %c2 = arith.constant 2 : index
    %c0_81 = arith.constant 0 : index
    %c0_82 = arith.constant 0 : index
    %201 = vector.load %arg6[%c0_80, %c2, %c0_81, %c0_82] : memref<2x4x32x32xf32, #tpu.memory_space<vmem>>, vector<1x1x32x32xf32>
    %202 = vector.shape_cast %201 : vector<1x1x32x32xf32> to vector<32x32xf32>
    %cst_83 = arith.constant dense<0.000000e+00> : vector<16x32xf32>
    %203 = tpu.matmul %200, %202, %cst_83 {dimension_numbers = #tpu.dot_dimension_numbers<[1], [0], [0], [1], [0, 0, 1, 1], [], []>} : vector<16x32xf32>, vector<32x32xf32>, vector<16x32xf32> -> vector<16x32xf32>
    %c0_84 = arith.constant 0 : index
    %c2_85 = arith.constant 2 : index
    %c0_86 = arith.constant 0 : index
    %204 = vector.load %arg12[%c0_84, %c2_85, %c0_86] : memref<2x11x32xf32, #tpu.memory_space<vmem>>, vector<1x1x32xf32>
    %205 = vector.shape_cast %204 : vector<1x1x32xf32> to vector<32xf32>
    %206 = vector.shape_cast %205 : vector<32xf32> to vector<1x32xf32>
    %207 = vector.broadcast %206 : vector<1x32xf32> to vector<16x32xf32>
    %208 = arith.addf %203, %207 : vector<16x32xf32>
    %209 = vector.extract_strided_slice %12 {offsets = [0, 0], sizes = [32, 32], strides = [1, 1]} : vector<32x64xf32> to vector<32x32xf32>
    %210 = vector.extract_strided_slice %20 {offsets = [0, 0], sizes = [32, 32], strides = [1, 1]} : vector<32x64xf32> to vector<32x32xf32>
    %c0_87 = arith.constant 0 : index
    %c3 = arith.constant 3 : index
    %c0_88 = arith.constant 0 : index
    %c0_89 = arith.constant 0 : index
    %211 = vector.load %arg6[%c0_87, %c3, %c0_88, %c0_89] : memref<2x4x32x32xf32, #tpu.memory_space<vmem>>, vector<1x1x32x32xf32>
    %212 = vector.shape_cast %211 : vector<1x1x32x32xf32> to vector<32x32xf32>
    %c0_90 = arith.constant 0 : index
    %c3_91 = arith.constant 3 : index
    %c0_92 = arith.constant 0 : index
    %213 = vector.load %arg12[%c0_90, %c3_91, %c0_92] : memref<2x11x32xf32, #tpu.memory_space<vmem>>, vector<1x1x32xf32>
    %214 = vector.shape_cast %213 : vector<1x1x32xf32> to vector<32xf32>
    %215 = vector.extract_strided_slice %208 {offsets = [0, 0], sizes = [8, 8], strides = [1, 1]} : vector<16x32xf32> to vector<8x8xf32>
    %216 = vector.extract_strided_slice %209 {offsets = [0, 0], sizes = [16, 8], strides = [1, 1]} : vector<32x32xf32> to vector<16x8xf32>
    %cst_93 = arith.constant dense<0.000000e+00> : vector<8x16xf32>
    %217 = tpu.matmul %215, %216, %cst_93 {dimension_numbers = #tpu.dot_dimension_numbers<[1], [1], [0], [0], [0, 0, 1, 0], [], []>} : vector<8x8xf32>, vector<16x8xf32>, vector<8x16xf32> -> vector<8x16xf32>
    %cst_94 = arith.constant dense<0xFF800000> : vector<8xf32>
    %218 = vector.multi_reduction <maximumf>, %217, %cst_94 [1] : vector<8x16xf32> to vector<8xf32>
    %219 = vector.shape_cast %218 : vector<8xf32> to vector<8x1xf32>
    %220 = vector.broadcast %219 : vector<8x1xf32> to vector<8x16xf32>
    %221 = arith.subf %217, %220 : vector<8x16xf32>
    %222 = math.exp %221 : vector<8x16xf32>
    %cst_95 = arith.constant dense<0.000000e+00> : vector<8xf32>
    %223 = vector.multi_reduction <add>, %222, %cst_95 [1] : vector<8x16xf32> to vector<8xf32>
    %224 = vector.shape_cast %223 : vector<8xf32> to vector<8x1xf32>
    %225 = tpu.reciprocal %224 {approx = true} : vector<8x1xf32> -> vector<8x1xf32>
    %226 = vector.broadcast %225 : vector<8x1xf32> to vector<8x16xf32>
    %227 = arith.mulf %222, %226 : vector<8x16xf32>
    %228 = vector.extract_strided_slice %210 {offsets = [0, 0], sizes = [16, 8], strides = [1, 1]} : vector<32x32xf32> to vector<16x8xf32>
    %cst_96 = arith.constant dense<0.000000e+00> : vector<8x8xf32>
    %229 = tpu.matmul %227, %228, %cst_96 {dimension_numbers = #tpu.dot_dimension_numbers<[1], [0], [0], [1], [0, 0, 1, 1], [], []>} : vector<8x16xf32>, vector<16x8xf32>, vector<8x8xf32> -> vector<8x8xf32>
    %230 = vector.extract_strided_slice %208 {offsets = [0, 8], sizes = [8, 8], strides = [1, 1]} : vector<16x32xf32> to vector<8x8xf32>
    %231 = vector.extract_strided_slice %209 {offsets = [0, 8], sizes = [16, 8], strides = [1, 1]} : vector<32x32xf32> to vector<16x8xf32>
    %cst_97 = arith.constant dense<0.000000e+00> : vector<8x16xf32>
    %232 = tpu.matmul %230, %231, %cst_97 {dimension_numbers = #tpu.dot_dimension_numbers<[1], [1], [0], [0], [0, 0, 1, 0], [], []>} : vector<8x8xf32>, vector<16x8xf32>, vector<8x16xf32> -> vector<8x16xf32>
    %cst_98 = arith.constant dense<0xFF800000> : vector<8xf32>
    %233 = vector.multi_reduction <maximumf>, %232, %cst_98 [1] : vector<8x16xf32> to vector<8xf32>
    %234 = vector.shape_cast %233 : vector<8xf32> to vector<8x1xf32>
    %235 = vector.broadcast %234 : vector<8x1xf32> to vector<8x16xf32>
    %236 = arith.subf %232, %235 : vector<8x16xf32>
    %237 = math.exp %236 : vector<8x16xf32>
    %cst_99 = arith.constant dense<0.000000e+00> : vector<8xf32>
    %238 = vector.multi_reduction <add>, %237, %cst_99 [1] : vector<8x16xf32> to vector<8xf32>
    %239 = vector.shape_cast %238 : vector<8xf32> to vector<8x1xf32>
    %240 = tpu.reciprocal %239 {approx = true} : vector<8x1xf32> -> vector<8x1xf32>
    %241 = vector.broadcast %240 : vector<8x1xf32> to vector<8x16xf32>
    %242 = arith.mulf %237, %241 : vector<8x16xf32>
    %243 = vector.extract_strided_slice %210 {offsets = [0, 8], sizes = [16, 8], strides = [1, 1]} : vector<32x32xf32> to vector<16x8xf32>
    %cst_100 = arith.constant dense<0.000000e+00> : vector<8x8xf32>
    %244 = tpu.matmul %242, %243, %cst_100 {dimension_numbers = #tpu.dot_dimension_numbers<[1], [0], [0], [1], [0, 0, 1, 1], [], []>} : vector<8x16xf32>, vector<16x8xf32>, vector<8x8xf32> -> vector<8x8xf32>
    %245 = vector.extract_strided_slice %208 {offsets = [0, 16], sizes = [8, 8], strides = [1, 1]} : vector<16x32xf32> to vector<8x8xf32>
    %246 = vector.extract_strided_slice %209 {offsets = [0, 16], sizes = [16, 8], strides = [1, 1]} : vector<32x32xf32> to vector<16x8xf32>
    %cst_101 = arith.constant dense<0.000000e+00> : vector<8x16xf32>
    %247 = tpu.matmul %245, %246, %cst_101 {dimension_numbers = #tpu.dot_dimension_numbers<[1], [1], [0], [0], [0, 0, 1, 0], [], []>} : vector<8x8xf32>, vector<16x8xf32>, vector<8x16xf32> -> vector<8x16xf32>
    %cst_102 = arith.constant dense<0xFF800000> : vector<8xf32>
    %248 = vector.multi_reduction <maximumf>, %247, %cst_102 [1] : vector<8x16xf32> to vector<8xf32>
    %249 = vector.shape_cast %248 : vector<8xf32> to vector<8x1xf32>
    %250 = vector.broadcast %249 : vector<8x1xf32> to vector<8x16xf32>
    %251 = arith.subf %247, %250 : vector<8x16xf32>
    %252 = math.exp %251 : vector<8x16xf32>
    %cst_103 = arith.constant dense<0.000000e+00> : vector<8xf32>
    %253 = vector.multi_reduction <add>, %252, %cst_103 [1] : vector<8x16xf32> to vector<8xf32>
    %254 = vector.shape_cast %253 : vector<8xf32> to vector<8x1xf32>
    %255 = tpu.reciprocal %254 {approx = true} : vector<8x1xf32> -> vector<8x1xf32>
    %256 = vector.broadcast %255 : vector<8x1xf32> to vector<8x16xf32>
    %257 = arith.mulf %252, %256 : vector<8x16xf32>
    %258 = vector.extract_strided_slice %210 {offsets = [0, 16], sizes = [16, 8], strides = [1, 1]} : vector<32x32xf32> to vector<16x8xf32>
    %cst_104 = arith.constant dense<0.000000e+00> : vector<8x8xf32>
    %259 = tpu.matmul %257, %258, %cst_104 {dimension_numbers = #tpu.dot_dimension_numbers<[1], [0], [0], [1], [0, 0, 1, 1], [], []>} : vector<8x16xf32>, vector<16x8xf32>, vector<8x8xf32> -> vector<8x8xf32>
    %260 = vector.extract_strided_slice %208 {offsets = [0, 24], sizes = [8, 8], strides = [1, 1]} : vector<16x32xf32> to vector<8x8xf32>
    %261 = vector.extract_strided_slice %209 {offsets = [0, 24], sizes = [16, 8], strides = [1, 1]} : vector<32x32xf32> to vector<16x8xf32>
    %cst_105 = arith.constant dense<0.000000e+00> : vector<8x16xf32>
    %262 = tpu.matmul %260, %261, %cst_105 {dimension_numbers = #tpu.dot_dimension_numbers<[1], [1], [0], [0], [0, 0, 1, 0], [], []>} : vector<8x8xf32>, vector<16x8xf32>, vector<8x16xf32> -> vector<8x16xf32>
    %cst_106 = arith.constant dense<0xFF800000> : vector<8xf32>
    %263 = vector.multi_reduction <maximumf>, %262, %cst_106 [1] : vector<8x16xf32> to vector<8xf32>
    %264 = vector.shape_cast %263 : vector<8xf32> to vector<8x1xf32>
    %265 = vector.broadcast %264 : vector<8x1xf32> to vector<8x16xf32>
    %266 = arith.subf %262, %265 : vector<8x16xf32>
    %267 = math.exp %266 : vector<8x16xf32>
    %cst_107 = arith.constant dense<0.000000e+00> : vector<8xf32>
    %268 = vector.multi_reduction <add>, %267, %cst_107 [1] : vector<8x16xf32> to vector<8xf32>
    %269 = vector.shape_cast %268 : vector<8xf32> to vector<8x1xf32>
    %270 = tpu.reciprocal %269 {approx = true} : vector<8x1xf32> -> vector<8x1xf32>
    %271 = vector.broadcast %270 : vector<8x1xf32> to vector<8x16xf32>
    %272 = arith.mulf %267, %271 : vector<8x16xf32>
    %273 = vector.extract_strided_slice %210 {offsets = [0, 24], sizes = [16, 8], strides = [1, 1]} : vector<32x32xf32> to vector<16x8xf32>
    %cst_108 = arith.constant dense<0.000000e+00> : vector<8x8xf32>
    %274 = tpu.matmul %272, %273, %cst_108 {dimension_numbers = #tpu.dot_dimension_numbers<[1], [0], [0], [1], [0, 0, 1, 1], [], []>} : vector<8x16xf32>, vector<16x8xf32>, vector<8x8xf32> -> vector<8x8xf32>
    %275 = tpu.concatenate %229, %244, %259, %274 in 1 : vector<8x8xf32>, vector<8x8xf32>, vector<8x8xf32>, vector<8x8xf32> -> vector<8x32xf32>
    %276 = vector.extract_strided_slice %208 {offsets = [8, 0], sizes = [8, 8], strides = [1, 1]} : vector<16x32xf32> to vector<8x8xf32>
    %277 = vector.extract_strided_slice %209 {offsets = [16, 0], sizes = [16, 8], strides = [1, 1]} : vector<32x32xf32> to vector<16x8xf32>
    %cst_109 = arith.constant dense<0.000000e+00> : vector<8x16xf32>
    %278 = tpu.matmul %276, %277, %cst_109 {dimension_numbers = #tpu.dot_dimension_numbers<[1], [1], [0], [0], [0, 0, 1, 0], [], []>} : vector<8x8xf32>, vector<16x8xf32>, vector<8x16xf32> -> vector<8x16xf32>
    %cst_110 = arith.constant dense<0xFF800000> : vector<8xf32>
    %279 = vector.multi_reduction <maximumf>, %278, %cst_110 [1] : vector<8x16xf32> to vector<8xf32>
    %280 = vector.shape_cast %279 : vector<8xf32> to vector<8x1xf32>
    %281 = vector.broadcast %280 : vector<8x1xf32> to vector<8x16xf32>
    %282 = arith.subf %278, %281 : vector<8x16xf32>
    %283 = math.exp %282 : vector<8x16xf32>
    %cst_111 = arith.constant dense<0.000000e+00> : vector<8xf32>
    %284 = vector.multi_reduction <add>, %283, %cst_111 [1] : vector<8x16xf32> to vector<8xf32>
    %285 = vector.shape_cast %284 : vector<8xf32> to vector<8x1xf32>
    %286 = tpu.reciprocal %285 {approx = true} : vector<8x1xf32> -> vector<8x1xf32>
    %287 = vector.broadcast %286 : vector<8x1xf32> to vector<8x16xf32>
    %288 = arith.mulf %283, %287 : vector<8x16xf32>
    %289 = vector.extract_strided_slice %210 {offsets = [16, 0], sizes = [16, 8], strides = [1, 1]} : vector<32x32xf32> to vector<16x8xf32>
    %cst_112 = arith.constant dense<0.000000e+00> : vector<8x8xf32>
    %290 = tpu.matmul %288, %289, %cst_112 {dimension_numbers = #tpu.dot_dimension_numbers<[1], [0], [0], [1], [0, 0, 1, 1], [], []>} : vector<8x16xf32>, vector<16x8xf32>, vector<8x8xf32> -> vector<8x8xf32>
    %291 = vector.extract_strided_slice %208 {offsets = [8, 8], sizes = [8, 8], strides = [1, 1]} : vector<16x32xf32> to vector<8x8xf32>
    %292 = vector.extract_strided_slice %209 {offsets = [16, 8], sizes = [16, 8], strides = [1, 1]} : vector<32x32xf32> to vector<16x8xf32>
    %cst_113 = arith.constant dense<0.000000e+00> : vector<8x16xf32>
    %293 = tpu.matmul %291, %292, %cst_113 {dimension_numbers = #tpu.dot_dimension_numbers<[1], [1], [0], [0], [0, 0, 1, 0], [], []>} : vector<8x8xf32>, vector<16x8xf32>, vector<8x16xf32> -> vector<8x16xf32>
    %cst_114 = arith.constant dense<0xFF800000> : vector<8xf32>
    %294 = vector.multi_reduction <maximumf>, %293, %cst_114 [1] : vector<8x16xf32> to vector<8xf32>
    %295 = vector.shape_cast %294 : vector<8xf32> to vector<8x1xf32>
    %296 = vector.broadcast %295 : vector<8x1xf32> to vector<8x16xf32>
    %297 = arith.subf %293, %296 : vector<8x16xf32>
    %298 = math.exp %297 : vector<8x16xf32>
    %cst_115 = arith.constant dense<0.000000e+00> : vector<8xf32>
    %299 = vector.multi_reduction <add>, %298, %cst_115 [1] : vector<8x16xf32> to vector<8xf32>
    %300 = vector.shape_cast %299 : vector<8xf32> to vector<8x1xf32>
    %301 = tpu.reciprocal %300 {approx = true} : vector<8x1xf32> -> vector<8x1xf32>
    %302 = vector.broadcast %301 : vector<8x1xf32> to vector<8x16xf32>
    %303 = arith.mulf %298, %302 : vector<8x16xf32>
    %304 = vector.extract_strided_slice %210 {offsets = [16, 8], sizes = [16, 8], strides = [1, 1]} : vector<32x32xf32> to vector<16x8xf32>
    %cst_116 = arith.constant dense<0.000000e+00> : vector<8x8xf32>
    %305 = tpu.matmul %303, %304, %cst_116 {dimension_numbers = #tpu.dot_dimension_numbers<[1], [0], [0], [1], [0, 0, 1, 1], [], []>} : vector<8x16xf32>, vector<16x8xf32>, vector<8x8xf32> -> vector<8x8xf32>
    %306 = vector.extract_strided_slice %208 {offsets = [8, 16], sizes = [8, 8], strides = [1, 1]} : vector<16x32xf32> to vector<8x8xf32>
    %307 = vector.extract_strided_slice %209 {offsets = [16, 16], sizes = [16, 8], strides = [1, 1]} : vector<32x32xf32> to vector<16x8xf32>
    %cst_117 = arith.constant dense<0.000000e+00> : vector<8x16xf32>
    %308 = tpu.matmul %306, %307, %cst_117 {dimension_numbers = #tpu.dot_dimension_numbers<[1], [1], [0], [0], [0, 0, 1, 0], [], []>} : vector<8x8xf32>, vector<16x8xf32>, vector<8x16xf32> -> vector<8x16xf32>
    %cst_118 = arith.constant dense<0xFF800000> : vector<8xf32>
    %309 = vector.multi_reduction <maximumf>, %308, %cst_118 [1] : vector<8x16xf32> to vector<8xf32>
    %310 = vector.shape_cast %309 : vector<8xf32> to vector<8x1xf32>
    %311 = vector.broadcast %310 : vector<8x1xf32> to vector<8x16xf32>
    %312 = arith.subf %308, %311 : vector<8x16xf32>
    %313 = math.exp %312 : vector<8x16xf32>
    %cst_119 = arith.constant dense<0.000000e+00> : vector<8xf32>
    %314 = vector.multi_reduction <add>, %313, %cst_119 [1] : vector<8x16xf32> to vector<8xf32>
    %315 = vector.shape_cast %314 : vector<8xf32> to vector<8x1xf32>
    %316 = tpu.reciprocal %315 {approx = true} : vector<8x1xf32> -> vector<8x1xf32>
    %317 = vector.broadcast %316 : vector<8x1xf32> to vector<8x16xf32>
    %318 = arith.mulf %313, %317 : vector<8x16xf32>
    %319 = vector.extract_strided_slice %210 {offsets = [16, 16], sizes = [16, 8], strides = [1, 1]} : vector<32x32xf32> to vector<16x8xf32>
    %cst_120 = arith.constant dense<0.000000e+00> : vector<8x8xf32>
    %320 = tpu.matmul %318, %319, %cst_120 {dimension_numbers = #tpu.dot_dimension_numbers<[1], [0], [0], [1], [0, 0, 1, 1], [], []>} : vector<8x16xf32>, vector<16x8xf32>, vector<8x8xf32> -> vector<8x8xf32>
    %321 = vector.extract_strided_slice %208 {offsets = [8, 24], sizes = [8, 8], strides = [1, 1]} : vector<16x32xf32> to vector<8x8xf32>
    %322 = vector.extract_strided_slice %209 {offsets = [16, 24], sizes = [16, 8], strides = [1, 1]} : vector<32x32xf32> to vector<16x8xf32>
    %cst_121 = arith.constant dense<0.000000e+00> : vector<8x16xf32>
    %323 = tpu.matmul %321, %322, %cst_121 {dimension_numbers = #tpu.dot_dimension_numbers<[1], [1], [0], [0], [0, 0, 1, 0], [], []>} : vector<8x8xf32>, vector<16x8xf32>, vector<8x16xf32> -> vector<8x16xf32>
    %cst_122 = arith.constant dense<0xFF800000> : vector<8xf32>
    %324 = vector.multi_reduction <maximumf>, %323, %cst_122 [1] : vector<8x16xf32> to vector<8xf32>
    %325 = vector.shape_cast %324 : vector<8xf32> to vector<8x1xf32>
    %326 = vector.broadcast %325 : vector<8x1xf32> to vector<8x16xf32>
    %327 = arith.subf %323, %326 : vector<8x16xf32>
    %328 = math.exp %327 : vector<8x16xf32>
    %cst_123 = arith.constant dense<0.000000e+00> : vector<8xf32>
    %329 = vector.multi_reduction <add>, %328, %cst_123 [1] : vector<8x16xf32> to vector<8xf32>
    %330 = vector.shape_cast %329 : vector<8xf32> to vector<8x1xf32>
    %331 = tpu.reciprocal %330 {approx = true} : vector<8x1xf32> -> vector<8x1xf32>
    %332 = vector.broadcast %331 : vector<8x1xf32> to vector<8x16xf32>
    %333 = arith.mulf %328, %332 : vector<8x16xf32>
    %334 = vector.extract_strided_slice %210 {offsets = [16, 24], sizes = [16, 8], strides = [1, 1]} : vector<32x32xf32> to vector<16x8xf32>
    %cst_124 = arith.constant dense<0.000000e+00> : vector<8x8xf32>
    %335 = tpu.matmul %333, %334, %cst_124 {dimension_numbers = #tpu.dot_dimension_numbers<[1], [0], [0], [1], [0, 0, 1, 1], [], []>} : vector<8x16xf32>, vector<16x8xf32>, vector<8x8xf32> -> vector<8x8xf32>
    %336 = tpu.concatenate %290, %305, %320, %335 in 1 : vector<8x8xf32>, vector<8x8xf32>, vector<8x8xf32>, vector<8x8xf32> -> vector<8x32xf32>
    %337 = tpu.concatenate %275, %336 in 0 : vector<8x32xf32>, vector<8x32xf32> -> vector<16x32xf32>
    %cst_125 = arith.constant dense<0.000000e+00> : vector<16x32xf32>
    %338 = tpu.matmul %337, %212, %cst_125 {dimension_numbers = #tpu.dot_dimension_numbers<[1], [0], [0], [1], [0, 0, 1, 1], [], []>} : vector<16x32xf32>, vector<32x32xf32>, vector<16x32xf32> -> vector<16x32xf32>
    %339 = vector.shape_cast %214 : vector<32xf32> to vector<1x32xf32>
    %340 = vector.broadcast %339 : vector<1x32xf32> to vector<16x32xf32>
    %341 = arith.addf %338, %340 : vector<16x32xf32>
    %342 = arith.addf %199, %341 : vector<16x32xf32>
    %c0_126 = arith.constant 0 : index
    %c7 = arith.constant 7 : index
    %c0_127 = arith.constant 0 : index
    %343 = vector.load %arg12[%c0_126, %c7, %c0_127] : memref<2x11x32xf32, #tpu.memory_space<vmem>>, vector<1x1x32xf32>
    %344 = vector.shape_cast %343 : vector<1x1x32xf32> to vector<32xf32>
    %c0_128 = arith.constant 0 : index
    %c8 = arith.constant 8 : index
    %c0_129 = arith.constant 0 : index
    %345 = vector.load %arg12[%c0_128, %c8, %c0_129] : memref<2x11x32xf32, #tpu.memory_space<vmem>>, vector<1x1x32xf32>
    %346 = vector.shape_cast %345 : vector<1x1x32xf32> to vector<32xf32>
    %cst_130 = arith.constant dense<0.000000e+00> : vector<16xf32>
    %347 = vector.multi_reduction <add>, %342, %cst_130 [1] : vector<16x32xf32> to vector<16xf32>
    %348 = vector.shape_cast %347 : vector<16xf32> to vector<16x1xf32>
    %cst_131 = arith.constant 3.200000e+01 : f32
    %349 = vector.broadcast %cst_131 : f32 to vector<16x1xf32>
    %350 = arith.divf %348, %349 : vector<16x1xf32>
    %351 = vector.broadcast %350 : vector<16x1xf32> to vector<16x32xf32>
    %352 = arith.subf %342, %351 : vector<16x32xf32>
    %353 = arith.mulf %352, %352 : vector<16x32xf32>
    %cst_132 = arith.constant dense<0.000000e+00> : vector<16xf32>
    %354 = vector.multi_reduction <add>, %353, %cst_132 [1] : vector<16x32xf32> to vector<16xf32>
    %355 = vector.shape_cast %354 : vector<16xf32> to vector<16x1xf32>
    %cst_133 = arith.constant 3.200000e+01 : f32
    %356 = vector.broadcast %cst_133 : f32 to vector<16x1xf32>
    %357 = arith.divf %355, %356 : vector<16x1xf32>
    %358 = vector.broadcast %350 : vector<16x1xf32> to vector<16x32xf32>
    %359 = arith.subf %342, %358 : vector<16x32xf32>
    %cst_134 = arith.constant 9.99999974E-6 : f32
    %360 = vector.broadcast %cst_134 : f32 to vector<16x1xf32>
    %361 = arith.addf %357, %360 : vector<16x1xf32>
    %362 = math.rsqrt %361 : vector<16x1xf32>
    %363 = vector.broadcast %362 : vector<16x1xf32> to vector<16x32xf32>
    %364 = arith.mulf %359, %363 : vector<16x32xf32>
    %365 = vector.shape_cast %344 : vector<32xf32> to vector<1x32xf32>
    %366 = vector.broadcast %365 : vector<1x32xf32> to vector<16x32xf32>
    %367 = arith.mulf %364, %366 : vector<16x32xf32>
    %368 = vector.shape_cast %346 : vector<32xf32> to vector<1x32xf32>
    %369 = vector.broadcast %368 : vector<1x32xf32> to vector<16x32xf32>
    %370 = arith.addf %367, %369 : vector<16x32xf32>
    %c0_135 = arith.constant 0 : index
    %c0_136 = arith.constant 0 : index
    %c0_137 = arith.constant 0 : index
    %371 = vector.load %arg9[%c0_135, %c0_136, %c0_137] : memref<2x32x64xf32, #tpu.memory_space<vmem>>, vector<1x32x64xf32>
    %372 = vector.shape_cast %371 : vector<1x32x64xf32> to vector<32x64xf32>
    %cst_138 = arith.constant dense<0.000000e+00> : vector<16x64xf32>
    %373 = tpu.matmul %370, %372, %cst_138 {dimension_numbers = #tpu.dot_dimension_numbers<[1], [0], [0], [1], [0, 0, 1, 1], [], []>} : vector<16x32xf32>, vector<32x64xf32>, vector<16x64xf32> -> vector<16x64xf32>
    %c0_139 = arith.constant 0 : index
    %c0_140 = arith.constant 0 : index
    %374 = vector.load %arg11[%c0_139, %c0_140] : memref<2x64xf32, #tpu.memory_space<vmem>>, vector<1x64xf32>
    %375 = vector.shape_cast %374 : vector<1x64xf32> to vector<64xf32>
    %376 = vector.shape_cast %375 : vector<64xf32> to vector<1x64xf32>
    %377 = vector.broadcast %376 : vector<1x64xf32> to vector<16x64xf32>
    %378 = arith.addf %373, %377 : vector<16x64xf32>
    %cst_141 = arith.constant 0.000000e+00 : f32
    %379 = vector.broadcast %cst_141 : f32 to vector<16x64xf32>
    %380 = arith.maximumf %378, %379 : vector<16x64xf32>
    %c0_142 = arith.constant 0 : index
    %c0_143 = arith.constant 0 : index
    %c0_144 = arith.constant 0 : index
    %381 = vector.load %arg10[%c0_142, %c0_143, %c0_144] : memref<2x64x32xf32, #tpu.memory_space<vmem>>, vector<1x64x32xf32>
    %382 = vector.shape_cast %381 : vector<1x64x32xf32> to vector<64x32xf32>
    %cst_145 = arith.constant dense<0.000000e+00> : vector<16x32xf32>
    %383 = tpu.matmul %380, %382, %cst_145 {dimension_numbers = #tpu.dot_dimension_numbers<[1], [0], [0], [1], [0, 0, 1, 1], [], []>} : vector<16x64xf32>, vector<64x32xf32>, vector<16x32xf32> -> vector<16x32xf32>
    %c0_146 = arith.constant 0 : index
    %c4 = arith.constant 4 : index
    %c0_147 = arith.constant 0 : index
    %384 = vector.load %arg12[%c0_146, %c4, %c0_147] : memref<2x11x32xf32, #tpu.memory_space<vmem>>, vector<1x1x32xf32>
    %385 = vector.shape_cast %384 : vector<1x1x32xf32> to vector<32xf32>
    %386 = vector.shape_cast %385 : vector<32xf32> to vector<1x32xf32>
    %387 = vector.broadcast %386 : vector<1x32xf32> to vector<16x32xf32>
    %388 = arith.addf %383, %387 : vector<16x32xf32>
    %389 = arith.addf %370, %388 : vector<16x32xf32>
    %c0_148 = arith.constant 0 : index
    %c9 = arith.constant 9 : index
    %c0_149 = arith.constant 0 : index
    %390 = vector.load %arg12[%c0_148, %c9, %c0_149] : memref<2x11x32xf32, #tpu.memory_space<vmem>>, vector<1x1x32xf32>
    %391 = vector.shape_cast %390 : vector<1x1x32xf32> to vector<32xf32>
    %c0_150 = arith.constant 0 : index
    %c10 = arith.constant 10 : index
    %c0_151 = arith.constant 0 : index
    %392 = vector.load %arg12[%c0_150, %c10, %c0_151] : memref<2x11x32xf32, #tpu.memory_space<vmem>>, vector<1x1x32xf32>
    %393 = vector.shape_cast %392 : vector<1x1x32xf32> to vector<32xf32>
    %cst_152 = arith.constant dense<0.000000e+00> : vector<16xf32>
    %394 = vector.multi_reduction <add>, %389, %cst_152 [1] : vector<16x32xf32> to vector<16xf32>
    %395 = vector.shape_cast %394 : vector<16xf32> to vector<16x1xf32>
    %cst_153 = arith.constant 3.200000e+01 : f32
    %396 = vector.broadcast %cst_153 : f32 to vector<16x1xf32>
    %397 = arith.divf %395, %396 : vector<16x1xf32>
    %398 = vector.broadcast %397 : vector<16x1xf32> to vector<16x32xf32>
    %399 = arith.subf %389, %398 : vector<16x32xf32>
    %400 = arith.mulf %399, %399 : vector<16x32xf32>
    %cst_154 = arith.constant dense<0.000000e+00> : vector<16xf32>
    %401 = vector.multi_reduction <add>, %400, %cst_154 [1] : vector<16x32xf32> to vector<16xf32>
    %402 = vector.shape_cast %401 : vector<16xf32> to vector<16x1xf32>
    %cst_155 = arith.constant 3.200000e+01 : f32
    %403 = vector.broadcast %cst_155 : f32 to vector<16x1xf32>
    %404 = arith.divf %402, %403 : vector<16x1xf32>
    %405 = vector.broadcast %397 : vector<16x1xf32> to vector<16x32xf32>
    %406 = arith.subf %389, %405 : vector<16x32xf32>
    %cst_156 = arith.constant 9.99999974E-6 : f32
    %407 = vector.broadcast %cst_156 : f32 to vector<16x1xf32>
    %408 = arith.addf %404, %407 : vector<16x1xf32>
    %409 = math.rsqrt %408 : vector<16x1xf32>
    %410 = vector.broadcast %409 : vector<16x1xf32> to vector<16x32xf32>
    %411 = arith.mulf %406, %410 : vector<16x32xf32>
    %412 = vector.shape_cast %391 : vector<32xf32> to vector<1x32xf32>
    %413 = vector.broadcast %412 : vector<1x32xf32> to vector<16x32xf32>
    %414 = arith.mulf %411, %413 : vector<16x32xf32>
    %415 = vector.shape_cast %393 : vector<32xf32> to vector<1x32xf32>
    %416 = vector.broadcast %415 : vector<1x32xf32> to vector<16x32xf32>
    %417 = arith.addf %414, %416 : vector<16x32xf32>
    %418 = arith.addf %417, %1 : vector<16x32xf32>
    %c1_157 = arith.constant 1 : index
    %c0_158 = arith.constant 0 : index
    %c0_159 = arith.constant 0 : index
    %419 = vector.load %arg4[%c1_157, %c0_158, %c0_159] : memref<2x32x64xf32, #tpu.memory_space<vmem>>, vector<1x32x64xf32>
    %420 = vector.shape_cast %419 : vector<1x32x64xf32> to vector<32x64xf32>
    %cst_160 = arith.constant dense<0.000000e+00> : vector<16x64xf32>
    %421 = tpu.matmul %418, %420, %cst_160 {dimension_numbers = #tpu.dot_dimension_numbers<[1], [0], [0], [1], [0, 0, 1, 1], [], []>} : vector<16x32xf32>, vector<32x64xf32>, vector<16x64xf32> -> vector<16x64xf32>
    %c1_161 = arith.constant 1 : index
    %c0_162 = arith.constant 0 : index
    %422 = vector.load %arg5[%c1_161, %c0_162] : memref<2x64xf32, #tpu.memory_space<vmem>>, vector<1x64xf32>
    %423 = vector.shape_cast %422 : vector<1x64xf32> to vector<64xf32>
    %424 = vector.shape_cast %423 : vector<64xf32> to vector<1x64xf32>
    %425 = vector.broadcast %424 : vector<1x64xf32> to vector<16x64xf32>
    %426 = arith.addf %421, %425 : vector<16x64xf32>
    %c1_163 = arith.constant 1 : index
    %c0_164 = arith.constant 0 : index
    %c0_165 = arith.constant 0 : index
    %c0_166 = arith.constant 0 : index
    %427 = vector.load %arg6[%c1_163, %c0_164, %c0_165, %c0_166] : memref<2x4x32x32xf32, #tpu.memory_space<vmem>>, vector<1x1x32x32xf32>
    %428 = vector.shape_cast %427 : vector<1x1x32x32xf32> to vector<32x32xf32>
    %cst_167 = arith.constant dense<0.000000e+00> : vector<16x32xf32>
    %429 = tpu.matmul %417, %428, %cst_167 {dimension_numbers = #tpu.dot_dimension_numbers<[1], [0], [0], [1], [0, 0, 1, 1], [], []>} : vector<16x32xf32>, vector<32x32xf32>, vector<16x32xf32> -> vector<16x32xf32>
    %c1_168 = arith.constant 1 : index
    %c0_169 = arith.constant 0 : index
    %c0_170 = arith.constant 0 : index
    %430 = vector.load %arg12[%c1_168, %c0_169, %c0_170] : memref<2x11x32xf32, #tpu.memory_space<vmem>>, vector<1x1x32xf32>
    %431 = vector.shape_cast %430 : vector<1x1x32xf32> to vector<32xf32>
    %432 = vector.shape_cast %431 : vector<32xf32> to vector<1x32xf32>
    %433 = vector.broadcast %432 : vector<1x32xf32> to vector<16x32xf32>
    %434 = arith.addf %429, %433 : vector<16x32xf32>
    %435 = vector.extract_strided_slice %426 {offsets = [0, 0], sizes = [16, 32], strides = [1, 1]} : vector<16x64xf32> to vector<16x32xf32>
    %436 = vector.extract_strided_slice %426 {offsets = [0, 32], sizes = [16, 32], strides = [1, 1]} : vector<16x64xf32> to vector<16x32xf32>
    %c1_171 = arith.constant 1 : index
    %c1_172 = arith.constant 1 : index
    %c0_173 = arith.constant 0 : index
    %c0_174 = arith.constant 0 : index
    %437 = vector.load %arg6[%c1_171, %c1_172, %c0_173, %c0_174] : memref<2x4x32x32xf32, #tpu.memory_space<vmem>>, vector<1x1x32x32xf32>
    %438 = vector.shape_cast %437 : vector<1x1x32x32xf32> to vector<32x32xf32>
    %c1_175 = arith.constant 1 : index
    %c1_176 = arith.constant 1 : index
    %c0_177 = arith.constant 0 : index
    %439 = vector.load %arg12[%c1_175, %c1_176, %c0_177] : memref<2x11x32xf32, #tpu.memory_space<vmem>>, vector<1x1x32xf32>
    %440 = vector.shape_cast %439 : vector<1x1x32xf32> to vector<32xf32>
    %441 = vector.extract_strided_slice %435 {offsets = [0, 0], sizes = [8, 8], strides = [1, 1]} : vector<16x32xf32> to vector<8x8xf32>
    %442 = vector.extract_strided_slice %436 {offsets = [0, 0], sizes = [8, 8], strides = [1, 1]} : vector<16x32xf32> to vector<8x8xf32>
    %cst_178 = arith.constant dense<0.000000e+00> : vector<8x8xf32>
    %443 = tpu.matmul %441, %442, %cst_178 {dimension_numbers = #tpu.dot_dimension_numbers<[1], [1], [0], [0], [0, 0, 1, 0], [], []>} : vector<8x8xf32>, vector<8x8xf32>, vector<8x8xf32> -> vector<8x8xf32>
    %cst_179 = arith.constant dense<0xFF800000> : vector<8xf32>
    %444 = vector.multi_reduction <maximumf>, %443, %cst_179 [1] : vector<8x8xf32> to vector<8xf32>
    %445 = vector.shape_cast %444 : vector<8xf32> to vector<8x1xf32>
    %446 = vector.broadcast %445 : vector<8x1xf32> to vector<8x8xf32>
    %447 = arith.subf %443, %446 : vector<8x8xf32>
    %448 = math.exp %447 : vector<8x8xf32>
    %cst_180 = arith.constant dense<0.000000e+00> : vector<8xf32>
    %449 = vector.multi_reduction <add>, %448, %cst_180 [1] : vector<8x8xf32> to vector<8xf32>
    %450 = vector.shape_cast %449 : vector<8xf32> to vector<8x1xf32>
    %451 = tpu.reciprocal %450 {approx = true} : vector<8x1xf32> -> vector<8x1xf32>
    %452 = vector.broadcast %451 : vector<8x1xf32> to vector<8x8xf32>
    %453 = arith.mulf %448, %452 : vector<8x8xf32>
    %454 = vector.extract_strided_slice %434 {offsets = [0, 0], sizes = [8, 8], strides = [1, 1]} : vector<16x32xf32> to vector<8x8xf32>
    %cst_181 = arith.constant dense<0.000000e+00> : vector<8x8xf32>
    %455 = tpu.matmul %453, %454, %cst_181 {dimension_numbers = #tpu.dot_dimension_numbers<[1], [0], [0], [1], [0, 0, 1, 1], [], []>} : vector<8x8xf32>, vector<8x8xf32>, vector<8x8xf32> -> vector<8x8xf32>
    %456 = vector.extract_strided_slice %435 {offsets = [0, 8], sizes = [8, 8], strides = [1, 1]} : vector<16x32xf32> to vector<8x8xf32>
    %457 = vector.extract_strided_slice %436 {offsets = [0, 8], sizes = [8, 8], strides = [1, 1]} : vector<16x32xf32> to vector<8x8xf32>
    %cst_182 = arith.constant dense<0.000000e+00> : vector<8x8xf32>
    %458 = tpu.matmul %456, %457, %cst_182 {dimension_numbers = #tpu.dot_dimension_numbers<[1], [1], [0], [0], [0, 0, 1, 0], [], []>} : vector<8x8xf32>, vector<8x8xf32>, vector<8x8xf32> -> vector<8x8xf32>
    %cst_183 = arith.constant dense<0xFF800000> : vector<8xf32>
    %459 = vector.multi_reduction <maximumf>, %458, %cst_183 [1] : vector<8x8xf32> to vector<8xf32>
    %460 = vector.shape_cast %459 : vector<8xf32> to vector<8x1xf32>
    %461 = vector.broadcast %460 : vector<8x1xf32> to vector<8x8xf32>
    %462 = arith.subf %458, %461 : vector<8x8xf32>
    %463 = math.exp %462 : vector<8x8xf32>
    %cst_184 = arith.constant dense<0.000000e+00> : vector<8xf32>
    %464 = vector.multi_reduction <add>, %463, %cst_184 [1] : vector<8x8xf32> to vector<8xf32>
    %465 = vector.shape_cast %464 : vector<8xf32> to vector<8x1xf32>
    %466 = tpu.reciprocal %465 {approx = true} : vector<8x1xf32> -> vector<8x1xf32>
    %467 = vector.broadcast %466 : vector<8x1xf32> to vector<8x8xf32>
    %468 = arith.mulf %463, %467 : vector<8x8xf32>
    %469 = vector.extract_strided_slice %434 {offsets = [0, 8], sizes = [8, 8], strides = [1, 1]} : vector<16x32xf32> to vector<8x8xf32>
    %cst_185 = arith.constant dense<0.000000e+00> : vector<8x8xf32>
    %470 = tpu.matmul %468, %469, %cst_185 {dimension_numbers = #tpu.dot_dimension_numbers<[1], [0], [0], [1], [0, 0, 1, 1], [], []>} : vector<8x8xf32>, vector<8x8xf32>, vector<8x8xf32> -> vector<8x8xf32>
    %471 = vector.extract_strided_slice %435 {offsets = [0, 16], sizes = [8, 8], strides = [1, 1]} : vector<16x32xf32> to vector<8x8xf32>
    %472 = vector.extract_strided_slice %436 {offsets = [0, 16], sizes = [8, 8], strides = [1, 1]} : vector<16x32xf32> to vector<8x8xf32>
    %cst_186 = arith.constant dense<0.000000e+00> : vector<8x8xf32>
    %473 = tpu.matmul %471, %472, %cst_186 {dimension_numbers = #tpu.dot_dimension_numbers<[1], [1], [0], [0], [0, 0, 1, 0], [], []>} : vector<8x8xf32>, vector<8x8xf32>, vector<8x8xf32> -> vector<8x8xf32>
    %cst_187 = arith.constant dense<0xFF800000> : vector<8xf32>
    %474 = vector.multi_reduction <maximumf>, %473, %cst_187 [1] : vector<8x8xf32> to vector<8xf32>
    %475 = vector.shape_cast %474 : vector<8xf32> to vector<8x1xf32>
    %476 = vector.broadcast %475 : vector<8x1xf32> to vector<8x8xf32>
    %477 = arith.subf %473, %476 : vector<8x8xf32>
    %478 = math.exp %477 : vector<8x8xf32>
    %cst_188 = arith.constant dense<0.000000e+00> : vector<8xf32>
    %479 = vector.multi_reduction <add>, %478, %cst_188 [1] : vector<8x8xf32> to vector<8xf32>
    %480 = vector.shape_cast %479 : vector<8xf32> to vector<8x1xf32>
    %481 = tpu.reciprocal %480 {approx = true} : vector<8x1xf32> -> vector<8x1xf32>
    %482 = vector.broadcast %481 : vector<8x1xf32> to vector<8x8xf32>
    %483 = arith.mulf %478, %482 : vector<8x8xf32>
    %484 = vector.extract_strided_slice %434 {offsets = [0, 16], sizes = [8, 8], strides = [1, 1]} : vector<16x32xf32> to vector<8x8xf32>
    %cst_189 = arith.constant dense<0.000000e+00> : vector<8x8xf32>
    %485 = tpu.matmul %483, %484, %cst_189 {dimension_numbers = #tpu.dot_dimension_numbers<[1], [0], [0], [1], [0, 0, 1, 1], [], []>} : vector<8x8xf32>, vector<8x8xf32>, vector<8x8xf32> -> vector<8x8xf32>
    %486 = vector.extract_strided_slice %435 {offsets = [0, 24], sizes = [8, 8], strides = [1, 1]} : vector<16x32xf32> to vector<8x8xf32>
    %487 = vector.extract_strided_slice %436 {offsets = [0, 24], sizes = [8, 8], strides = [1, 1]} : vector<16x32xf32> to vector<8x8xf32>
    %cst_190 = arith.constant dense<0.000000e+00> : vector<8x8xf32>
    %488 = tpu.matmul %486, %487, %cst_190 {dimension_numbers = #tpu.dot_dimension_numbers<[1], [1], [0], [0], [0, 0, 1, 0], [], []>} : vector<8x8xf32>, vector<8x8xf32>, vector<8x8xf32> -> vector<8x8xf32>
    %cst_191 = arith.constant dense<0xFF800000> : vector<8xf32>
    %489 = vector.multi_reduction <maximumf>, %488, %cst_191 [1] : vector<8x8xf32> to vector<8xf32>
    %490 = vector.shape_cast %489 : vector<8xf32> to vector<8x1xf32>
    %491 = vector.broadcast %490 : vector<8x1xf32> to vector<8x8xf32>
    %492 = arith.subf %488, %491 : vector<8x8xf32>
    %493 = math.exp %492 : vector<8x8xf32>
    %cst_192 = arith.constant dense<0.000000e+00> : vector<8xf32>
    %494 = vector.multi_reduction <add>, %493, %cst_192 [1] : vector<8x8xf32> to vector<8xf32>
    %495 = vector.shape_cast %494 : vector<8xf32> to vector<8x1xf32>
    %496 = tpu.reciprocal %495 {approx = true} : vector<8x1xf32> -> vector<8x1xf32>
    %497 = vector.broadcast %496 : vector<8x1xf32> to vector<8x8xf32>
    %498 = arith.mulf %493, %497 : vector<8x8xf32>
    %499 = vector.extract_strided_slice %434 {offsets = [0, 24], sizes = [8, 8], strides = [1, 1]} : vector<16x32xf32> to vector<8x8xf32>
    %cst_193 = arith.constant dense<0.000000e+00> : vector<8x8xf32>
    %500 = tpu.matmul %498, %499, %cst_193 {dimension_numbers = #tpu.dot_dimension_numbers<[1], [0], [0], [1], [0, 0, 1, 1], [], []>} : vector<8x8xf32>, vector<8x8xf32>, vector<8x8xf32> -> vector<8x8xf32>
    %501 = tpu.concatenate %455, %470, %485, %500 in 1 : vector<8x8xf32>, vector<8x8xf32>, vector<8x8xf32>, vector<8x8xf32> -> vector<8x32xf32>
    %502 = vector.extract_strided_slice %435 {offsets = [8, 0], sizes = [8, 8], strides = [1, 1]} : vector<16x32xf32> to vector<8x8xf32>
    %503 = vector.extract_strided_slice %436 {offsets = [8, 0], sizes = [8, 8], strides = [1, 1]} : vector<16x32xf32> to vector<8x8xf32>
    %cst_194 = arith.constant dense<0.000000e+00> : vector<8x8xf32>
    %504 = tpu.matmul %502, %503, %cst_194 {dimension_numbers = #tpu.dot_dimension_numbers<[1], [1], [0], [0], [0, 0, 1, 0], [], []>} : vector<8x8xf32>, vector<8x8xf32>, vector<8x8xf32> -> vector<8x8xf32>
    %cst_195 = arith.constant dense<0xFF800000> : vector<8xf32>
    %505 = vector.multi_reduction <maximumf>, %504, %cst_195 [1] : vector<8x8xf32> to vector<8xf32>
    %506 = vector.shape_cast %505 : vector<8xf32> to vector<8x1xf32>
    %507 = vector.broadcast %506 : vector<8x1xf32> to vector<8x8xf32>
    %508 = arith.subf %504, %507 : vector<8x8xf32>
    %509 = math.exp %508 : vector<8x8xf32>
    %cst_196 = arith.constant dense<0.000000e+00> : vector<8xf32>
    %510 = vector.multi_reduction <add>, %509, %cst_196 [1] : vector<8x8xf32> to vector<8xf32>
    %511 = vector.shape_cast %510 : vector<8xf32> to vector<8x1xf32>
    %512 = tpu.reciprocal %511 {approx = true} : vector<8x1xf32> -> vector<8x1xf32>
    %513 = vector.broadcast %512 : vector<8x1xf32> to vector<8x8xf32>
    %514 = arith.mulf %509, %513 : vector<8x8xf32>
    %515 = vector.extract_strided_slice %434 {offsets = [8, 0], sizes = [8, 8], strides = [1, 1]} : vector<16x32xf32> to vector<8x8xf32>
    %cst_197 = arith.constant dense<0.000000e+00> : vector<8x8xf32>
    %516 = tpu.matmul %514, %515, %cst_197 {dimension_numbers = #tpu.dot_dimension_numbers<[1], [0], [0], [1], [0, 0, 1, 1], [], []>} : vector<8x8xf32>, vector<8x8xf32>, vector<8x8xf32> -> vector<8x8xf32>
    %517 = vector.extract_strided_slice %435 {offsets = [8, 8], sizes = [8, 8], strides = [1, 1]} : vector<16x32xf32> to vector<8x8xf32>
    %518 = vector.extract_strided_slice %436 {offsets = [8, 8], sizes = [8, 8], strides = [1, 1]} : vector<16x32xf32> to vector<8x8xf32>
    %cst_198 = arith.constant dense<0.000000e+00> : vector<8x8xf32>
    %519 = tpu.matmul %517, %518, %cst_198 {dimension_numbers = #tpu.dot_dimension_numbers<[1], [1], [0], [0], [0, 0, 1, 0], [], []>} : vector<8x8xf32>, vector<8x8xf32>, vector<8x8xf32> -> vector<8x8xf32>
    %cst_199 = arith.constant dense<0xFF800000> : vector<8xf32>
    %520 = vector.multi_reduction <maximumf>, %519, %cst_199 [1] : vector<8x8xf32> to vector<8xf32>
    %521 = vector.shape_cast %520 : vector<8xf32> to vector<8x1xf32>
    %522 = vector.broadcast %521 : vector<8x1xf32> to vector<8x8xf32>
    %523 = arith.subf %519, %522 : vector<8x8xf32>
    %524 = math.exp %523 : vector<8x8xf32>
    %cst_200 = arith.constant dense<0.000000e+00> : vector<8xf32>
    %525 = vector.multi_reduction <add>, %524, %cst_200 [1] : vector<8x8xf32> to vector<8xf32>
    %526 = vector.shape_cast %525 : vector<8xf32> to vector<8x1xf32>
    %527 = tpu.reciprocal %526 {approx = true} : vector<8x1xf32> -> vector<8x1xf32>
    %528 = vector.broadcast %527 : vector<8x1xf32> to vector<8x8xf32>
    %529 = arith.mulf %524, %528 : vector<8x8xf32>
    %530 = vector.extract_strided_slice %434 {offsets = [8, 8], sizes = [8, 8], strides = [1, 1]} : vector<16x32xf32> to vector<8x8xf32>
    %cst_201 = arith.constant dense<0.000000e+00> : vector<8x8xf32>
    %531 = tpu.matmul %529, %530, %cst_201 {dimension_numbers = #tpu.dot_dimension_numbers<[1], [0], [0], [1], [0, 0, 1, 1], [], []>} : vector<8x8xf32>, vector<8x8xf32>, vector<8x8xf32> -> vector<8x8xf32>
    %532 = vector.extract_strided_slice %435 {offsets = [8, 16], sizes = [8, 8], strides = [1, 1]} : vector<16x32xf32> to vector<8x8xf32>
    %533 = vector.extract_strided_slice %436 {offsets = [8, 16], sizes = [8, 8], strides = [1, 1]} : vector<16x32xf32> to vector<8x8xf32>
    %cst_202 = arith.constant dense<0.000000e+00> : vector<8x8xf32>
    %534 = tpu.matmul %532, %533, %cst_202 {dimension_numbers = #tpu.dot_dimension_numbers<[1], [1], [0], [0], [0, 0, 1, 0], [], []>} : vector<8x8xf32>, vector<8x8xf32>, vector<8x8xf32> -> vector<8x8xf32>
    %cst_203 = arith.constant dense<0xFF800000> : vector<8xf32>
    %535 = vector.multi_reduction <maximumf>, %534, %cst_203 [1] : vector<8x8xf32> to vector<8xf32>
    %536 = vector.shape_cast %535 : vector<8xf32> to vector<8x1xf32>
    %537 = vector.broadcast %536 : vector<8x1xf32> to vector<8x8xf32>
    %538 = arith.subf %534, %537 : vector<8x8xf32>
    %539 = math.exp %538 : vector<8x8xf32>
    %cst_204 = arith.constant dense<0.000000e+00> : vector<8xf32>
    %540 = vector.multi_reduction <add>, %539, %cst_204 [1] : vector<8x8xf32> to vector<8xf32>
    %541 = vector.shape_cast %540 : vector<8xf32> to vector<8x1xf32>
    %542 = tpu.reciprocal %541 {approx = true} : vector<8x1xf32> -> vector<8x1xf32>
    %543 = vector.broadcast %542 : vector<8x1xf32> to vector<8x8xf32>
    %544 = arith.mulf %539, %543 : vector<8x8xf32>
    %545 = vector.extract_strided_slice %434 {offsets = [8, 16], sizes = [8, 8], strides = [1, 1]} : vector<16x32xf32> to vector<8x8xf32>
    %cst_205 = arith.constant dense<0.000000e+00> : vector<8x8xf32>
    %546 = tpu.matmul %544, %545, %cst_205 {dimension_numbers = #tpu.dot_dimension_numbers<[1], [0], [0], [1], [0, 0, 1, 1], [], []>} : vector<8x8xf32>, vector<8x8xf32>, vector<8x8xf32> -> vector<8x8xf32>
    %547 = vector.extract_strided_slice %435 {offsets = [8, 24], sizes = [8, 8], strides = [1, 1]} : vector<16x32xf32> to vector<8x8xf32>
    %548 = vector.extract_strided_slice %436 {offsets = [8, 24], sizes = [8, 8], strides = [1, 1]} : vector<16x32xf32> to vector<8x8xf32>
    %cst_206 = arith.constant dense<0.000000e+00> : vector<8x8xf32>
    %549 = tpu.matmul %547, %548, %cst_206 {dimension_numbers = #tpu.dot_dimension_numbers<[1], [1], [0], [0], [0, 0, 1, 0], [], []>} : vector<8x8xf32>, vector<8x8xf32>, vector<8x8xf32> -> vector<8x8xf32>
    %cst_207 = arith.constant dense<0xFF800000> : vector<8xf32>
    %550 = vector.multi_reduction <maximumf>, %549, %cst_207 [1] : vector<8x8xf32> to vector<8xf32>
    %551 = vector.shape_cast %550 : vector<8xf32> to vector<8x1xf32>
    %552 = vector.broadcast %551 : vector<8x1xf32> to vector<8x8xf32>
    %553 = arith.subf %549, %552 : vector<8x8xf32>
    %554 = math.exp %553 : vector<8x8xf32>
    %cst_208 = arith.constant dense<0.000000e+00> : vector<8xf32>
    %555 = vector.multi_reduction <add>, %554, %cst_208 [1] : vector<8x8xf32> to vector<8xf32>
    %556 = vector.shape_cast %555 : vector<8xf32> to vector<8x1xf32>
    %557 = tpu.reciprocal %556 {approx = true} : vector<8x1xf32> -> vector<8x1xf32>
    %558 = vector.broadcast %557 : vector<8x1xf32> to vector<8x8xf32>
    %559 = arith.mulf %554, %558 : vector<8x8xf32>
    %560 = vector.extract_strided_slice %434 {offsets = [8, 24], sizes = [8, 8], strides = [1, 1]} : vector<16x32xf32> to vector<8x8xf32>
    %cst_209 = arith.constant dense<0.000000e+00> : vector<8x8xf32>
    %561 = tpu.matmul %559, %560, %cst_209 {dimension_numbers = #tpu.dot_dimension_numbers<[1], [0], [0], [1], [0, 0, 1, 1], [], []>} : vector<8x8xf32>, vector<8x8xf32>, vector<8x8xf32> -> vector<8x8xf32>
    %562 = tpu.concatenate %516, %531, %546, %561 in 1 : vector<8x8xf32>, vector<8x8xf32>, vector<8x8xf32>, vector<8x8xf32> -> vector<8x32xf32>
    %563 = tpu.concatenate %501, %562 in 0 : vector<8x32xf32>, vector<8x32xf32> -> vector<16x32xf32>
    %cst_210 = arith.constant dense<0.000000e+00> : vector<16x32xf32>
    %564 = tpu.matmul %563, %438, %cst_210 {dimension_numbers = #tpu.dot_dimension_numbers<[1], [0], [0], [1], [0, 0, 1, 1], [], []>} : vector<16x32xf32>, vector<32x32xf32>, vector<16x32xf32> -> vector<16x32xf32>
    %565 = vector.shape_cast %440 : vector<32xf32> to vector<1x32xf32>
    %566 = vector.broadcast %565 : vector<1x32xf32> to vector<16x32xf32>
    %567 = arith.addf %564, %566 : vector<16x32xf32>
    %568 = arith.addf %417, %567 : vector<16x32xf32>
    %c1_211 = arith.constant 1 : index
    %c5_212 = arith.constant 5 : index
    %c0_213 = arith.constant 0 : index
    %569 = vector.load %arg12[%c1_211, %c5_212, %c0_213] : memref<2x11x32xf32, #tpu.memory_space<vmem>>, vector<1x1x32xf32>
    %570 = vector.shape_cast %569 : vector<1x1x32xf32> to vector<32xf32>
    %c1_214 = arith.constant 1 : index
    %c6_215 = arith.constant 6 : index
    %c0_216 = arith.constant 0 : index
    %571 = vector.load %arg12[%c1_214, %c6_215, %c0_216] : memref<2x11x32xf32, #tpu.memory_space<vmem>>, vector<1x1x32xf32>
    %572 = vector.shape_cast %571 : vector<1x1x32xf32> to vector<32xf32>
    %cst_217 = arith.constant dense<0.000000e+00> : vector<16xf32>
    %573 = vector.multi_reduction <add>, %568, %cst_217 [1] : vector<16x32xf32> to vector<16xf32>
    %574 = vector.shape_cast %573 : vector<16xf32> to vector<16x1xf32>
    %cst_218 = arith.constant 3.200000e+01 : f32
    %575 = vector.broadcast %cst_218 : f32 to vector<16x1xf32>
    %576 = arith.divf %574, %575 : vector<16x1xf32>
    %577 = vector.broadcast %576 : vector<16x1xf32> to vector<16x32xf32>
    %578 = arith.subf %568, %577 : vector<16x32xf32>
    %579 = arith.mulf %578, %578 : vector<16x32xf32>
    %cst_219 = arith.constant dense<0.000000e+00> : vector<16xf32>
    %580 = vector.multi_reduction <add>, %579, %cst_219 [1] : vector<16x32xf32> to vector<16xf32>
    %581 = vector.shape_cast %580 : vector<16xf32> to vector<16x1xf32>
    %cst_220 = arith.constant 3.200000e+01 : f32
    %582 = vector.broadcast %cst_220 : f32 to vector<16x1xf32>
    %583 = arith.divf %581, %582 : vector<16x1xf32>
    %584 = vector.broadcast %576 : vector<16x1xf32> to vector<16x32xf32>
    %585 = arith.subf %568, %584 : vector<16x32xf32>
    %cst_221 = arith.constant 9.99999974E-6 : f32
    %586 = vector.broadcast %cst_221 : f32 to vector<16x1xf32>
    %587 = arith.addf %583, %586 : vector<16x1xf32>
    %588 = math.rsqrt %587 : vector<16x1xf32>
    %589 = vector.broadcast %588 : vector<16x1xf32> to vector<16x32xf32>
    %590 = arith.mulf %585, %589 : vector<16x32xf32>
    %591 = vector.shape_cast %570 : vector<32xf32> to vector<1x32xf32>
    %592 = vector.broadcast %591 : vector<1x32xf32> to vector<16x32xf32>
    %593 = arith.mulf %590, %592 : vector<16x32xf32>
    %594 = vector.shape_cast %572 : vector<32xf32> to vector<1x32xf32>
    %595 = vector.broadcast %594 : vector<1x32xf32> to vector<16x32xf32>
    %596 = arith.addf %593, %595 : vector<16x32xf32>
    %597 = arith.addf %596, %1 : vector<16x32xf32>
    %c1_222 = arith.constant 1 : index
    %c2_223 = arith.constant 2 : index
    %c0_224 = arith.constant 0 : index
    %c0_225 = arith.constant 0 : index
    %598 = vector.load %arg6[%c1_222, %c2_223, %c0_224, %c0_225] : memref<2x4x32x32xf32, #tpu.memory_space<vmem>>, vector<1x1x32x32xf32>
    %599 = vector.shape_cast %598 : vector<1x1x32x32xf32> to vector<32x32xf32>
    %cst_226 = arith.constant dense<0.000000e+00> : vector<16x32xf32>
    %600 = tpu.matmul %597, %599, %cst_226 {dimension_numbers = #tpu.dot_dimension_numbers<[1], [0], [0], [1], [0, 0, 1, 1], [], []>} : vector<16x32xf32>, vector<32x32xf32>, vector<16x32xf32> -> vector<16x32xf32>
    %c1_227 = arith.constant 1 : index
    %c2_228 = arith.constant 2 : index
    %c0_229 = arith.constant 0 : index
    %601 = vector.load %arg12[%c1_227, %c2_228, %c0_229] : memref<2x11x32xf32, #tpu.memory_space<vmem>>, vector<1x1x32xf32>
    %602 = vector.shape_cast %601 : vector<1x1x32xf32> to vector<32xf32>
    %603 = vector.shape_cast %602 : vector<32xf32> to vector<1x32xf32>
    %604 = vector.broadcast %603 : vector<1x32xf32> to vector<16x32xf32>
    %605 = arith.addf %600, %604 : vector<16x32xf32>
    %606 = vector.extract_strided_slice %12 {offsets = [0, 32], sizes = [32, 32], strides = [1, 1]} : vector<32x64xf32> to vector<32x32xf32>
    %607 = vector.extract_strided_slice %20 {offsets = [0, 32], sizes = [32, 32], strides = [1, 1]} : vector<32x64xf32> to vector<32x32xf32>
    %c1_230 = arith.constant 1 : index
    %c3_231 = arith.constant 3 : index
    %c0_232 = arith.constant 0 : index
    %c0_233 = arith.constant 0 : index
    %608 = vector.load %arg6[%c1_230, %c3_231, %c0_232, %c0_233] : memref<2x4x32x32xf32, #tpu.memory_space<vmem>>, vector<1x1x32x32xf32>
    %609 = vector.shape_cast %608 : vector<1x1x32x32xf32> to vector<32x32xf32>
    %c1_234 = arith.constant 1 : index
    %c3_235 = arith.constant 3 : index
    %c0_236 = arith.constant 0 : index
    %610 = vector.load %arg12[%c1_234, %c3_235, %c0_236] : memref<2x11x32xf32, #tpu.memory_space<vmem>>, vector<1x1x32xf32>
    %611 = vector.shape_cast %610 : vector<1x1x32xf32> to vector<32xf32>
    %612 = vector.extract_strided_slice %605 {offsets = [0, 0], sizes = [8, 8], strides = [1, 1]} : vector<16x32xf32> to vector<8x8xf32>
    %613 = vector.extract_strided_slice %606 {offsets = [0, 0], sizes = [16, 8], strides = [1, 1]} : vector<32x32xf32> to vector<16x8xf32>
    %cst_237 = arith.constant dense<0.000000e+00> : vector<8x16xf32>
    %614 = tpu.matmul %612, %613, %cst_237 {dimension_numbers = #tpu.dot_dimension_numbers<[1], [1], [0], [0], [0, 0, 1, 0], [], []>} : vector<8x8xf32>, vector<16x8xf32>, vector<8x16xf32> -> vector<8x16xf32>
    %cst_238 = arith.constant dense<0xFF800000> : vector<8xf32>
    %615 = vector.multi_reduction <maximumf>, %614, %cst_238 [1] : vector<8x16xf32> to vector<8xf32>
    %616 = vector.shape_cast %615 : vector<8xf32> to vector<8x1xf32>
    %617 = vector.broadcast %616 : vector<8x1xf32> to vector<8x16xf32>
    %618 = arith.subf %614, %617 : vector<8x16xf32>
    %619 = math.exp %618 : vector<8x16xf32>
    %cst_239 = arith.constant dense<0.000000e+00> : vector<8xf32>
    %620 = vector.multi_reduction <add>, %619, %cst_239 [1] : vector<8x16xf32> to vector<8xf32>
    %621 = vector.shape_cast %620 : vector<8xf32> to vector<8x1xf32>
    %622 = tpu.reciprocal %621 {approx = true} : vector<8x1xf32> -> vector<8x1xf32>
    %623 = vector.broadcast %622 : vector<8x1xf32> to vector<8x16xf32>
    %624 = arith.mulf %619, %623 : vector<8x16xf32>
    %625 = vector.extract_strided_slice %607 {offsets = [0, 0], sizes = [16, 8], strides = [1, 1]} : vector<32x32xf32> to vector<16x8xf32>
    %cst_240 = arith.constant dense<0.000000e+00> : vector<8x8xf32>
    %626 = tpu.matmul %624, %625, %cst_240 {dimension_numbers = #tpu.dot_dimension_numbers<[1], [0], [0], [1], [0, 0, 1, 1], [], []>} : vector<8x16xf32>, vector<16x8xf32>, vector<8x8xf32> -> vector<8x8xf32>
    %627 = vector.extract_strided_slice %605 {offsets = [0, 8], sizes = [8, 8], strides = [1, 1]} : vector<16x32xf32> to vector<8x8xf32>
    %628 = vector.extract_strided_slice %606 {offsets = [0, 8], sizes = [16, 8], strides = [1, 1]} : vector<32x32xf32> to vector<16x8xf32>
    %cst_241 = arith.constant dense<0.000000e+00> : vector<8x16xf32>
    %629 = tpu.matmul %627, %628, %cst_241 {dimension_numbers = #tpu.dot_dimension_numbers<[1], [1], [0], [0], [0, 0, 1, 0], [], []>} : vector<8x8xf32>, vector<16x8xf32>, vector<8x16xf32> -> vector<8x16xf32>
    %cst_242 = arith.constant dense<0xFF800000> : vector<8xf32>
    %630 = vector.multi_reduction <maximumf>, %629, %cst_242 [1] : vector<8x16xf32> to vector<8xf32>
    %631 = vector.shape_cast %630 : vector<8xf32> to vector<8x1xf32>
    %632 = vector.broadcast %631 : vector<8x1xf32> to vector<8x16xf32>
    %633 = arith.subf %629, %632 : vector<8x16xf32>
    %634 = math.exp %633 : vector<8x16xf32>
    %cst_243 = arith.constant dense<0.000000e+00> : vector<8xf32>
    %635 = vector.multi_reduction <add>, %634, %cst_243 [1] : vector<8x16xf32> to vector<8xf32>
    %636 = vector.shape_cast %635 : vector<8xf32> to vector<8x1xf32>
    %637 = tpu.reciprocal %636 {approx = true} : vector<8x1xf32> -> vector<8x1xf32>
    %638 = vector.broadcast %637 : vector<8x1xf32> to vector<8x16xf32>
    %639 = arith.mulf %634, %638 : vector<8x16xf32>
    %640 = vector.extract_strided_slice %607 {offsets = [0, 8], sizes = [16, 8], strides = [1, 1]} : vector<32x32xf32> to vector<16x8xf32>
    %cst_244 = arith.constant dense<0.000000e+00> : vector<8x8xf32>
    %641 = tpu.matmul %639, %640, %cst_244 {dimension_numbers = #tpu.dot_dimension_numbers<[1], [0], [0], [1], [0, 0, 1, 1], [], []>} : vector<8x16xf32>, vector<16x8xf32>, vector<8x8xf32> -> vector<8x8xf32>
    %642 = vector.extract_strided_slice %605 {offsets = [0, 16], sizes = [8, 8], strides = [1, 1]} : vector<16x32xf32> to vector<8x8xf32>
    %643 = vector.extract_strided_slice %606 {offsets = [0, 16], sizes = [16, 8], strides = [1, 1]} : vector<32x32xf32> to vector<16x8xf32>
    %cst_245 = arith.constant dense<0.000000e+00> : vector<8x16xf32>
    %644 = tpu.matmul %642, %643, %cst_245 {dimension_numbers = #tpu.dot_dimension_numbers<[1], [1], [0], [0], [0, 0, 1, 0], [], []>} : vector<8x8xf32>, vector<16x8xf32>, vector<8x16xf32> -> vector<8x16xf32>
    %cst_246 = arith.constant dense<0xFF800000> : vector<8xf32>
    %645 = vector.multi_reduction <maximumf>, %644, %cst_246 [1] : vector<8x16xf32> to vector<8xf32>
    %646 = vector.shape_cast %645 : vector<8xf32> to vector<8x1xf32>
    %647 = vector.broadcast %646 : vector<8x1xf32> to vector<8x16xf32>
    %648 = arith.subf %644, %647 : vector<8x16xf32>
    %649 = math.exp %648 : vector<8x16xf32>
    %cst_247 = arith.constant dense<0.000000e+00> : vector<8xf32>
    %650 = vector.multi_reduction <add>, %649, %cst_247 [1] : vector<8x16xf32> to vector<8xf32>
    %651 = vector.shape_cast %650 : vector<8xf32> to vector<8x1xf32>
    %652 = tpu.reciprocal %651 {approx = true} : vector<8x1xf32> -> vector<8x1xf32>
    %653 = vector.broadcast %652 : vector<8x1xf32> to vector<8x16xf32>
    %654 = arith.mulf %649, %653 : vector<8x16xf32>
    %655 = vector.extract_strided_slice %607 {offsets = [0, 16], sizes = [16, 8], strides = [1, 1]} : vector<32x32xf32> to vector<16x8xf32>
    %cst_248 = arith.constant dense<0.000000e+00> : vector<8x8xf32>
    %656 = tpu.matmul %654, %655, %cst_248 {dimension_numbers = #tpu.dot_dimension_numbers<[1], [0], [0], [1], [0, 0, 1, 1], [], []>} : vector<8x16xf32>, vector<16x8xf32>, vector<8x8xf32> -> vector<8x8xf32>
    %657 = vector.extract_strided_slice %605 {offsets = [0, 24], sizes = [8, 8], strides = [1, 1]} : vector<16x32xf32> to vector<8x8xf32>
    %658 = vector.extract_strided_slice %606 {offsets = [0, 24], sizes = [16, 8], strides = [1, 1]} : vector<32x32xf32> to vector<16x8xf32>
    %cst_249 = arith.constant dense<0.000000e+00> : vector<8x16xf32>
    %659 = tpu.matmul %657, %658, %cst_249 {dimension_numbers = #tpu.dot_dimension_numbers<[1], [1], [0], [0], [0, 0, 1, 0], [], []>} : vector<8x8xf32>, vector<16x8xf32>, vector<8x16xf32> -> vector<8x16xf32>
    %cst_250 = arith.constant dense<0xFF800000> : vector<8xf32>
    %660 = vector.multi_reduction <maximumf>, %659, %cst_250 [1] : vector<8x16xf32> to vector<8xf32>
    %661 = vector.shape_cast %660 : vector<8xf32> to vector<8x1xf32>
    %662 = vector.broadcast %661 : vector<8x1xf32> to vector<8x16xf32>
    %663 = arith.subf %659, %662 : vector<8x16xf32>
    %664 = math.exp %663 : vector<8x16xf32>
    %cst_251 = arith.constant dense<0.000000e+00> : vector<8xf32>
    %665 = vector.multi_reduction <add>, %664, %cst_251 [1] : vector<8x16xf32> to vector<8xf32>
    %666 = vector.shape_cast %665 : vector<8xf32> to vector<8x1xf32>
    %667 = tpu.reciprocal %666 {approx = true} : vector<8x1xf32> -> vector<8x1xf32>
    %668 = vector.broadcast %667 : vector<8x1xf32> to vector<8x16xf32>
    %669 = arith.mulf %664, %668 : vector<8x16xf32>
    %670 = vector.extract_strided_slice %607 {offsets = [0, 24], sizes = [16, 8], strides = [1, 1]} : vector<32x32xf32> to vector<16x8xf32>
    %cst_252 = arith.constant dense<0.000000e+00> : vector<8x8xf32>
    %671 = tpu.matmul %669, %670, %cst_252 {dimension_numbers = #tpu.dot_dimension_numbers<[1], [0], [0], [1], [0, 0, 1, 1], [], []>} : vector<8x16xf32>, vector<16x8xf32>, vector<8x8xf32> -> vector<8x8xf32>
    %672 = tpu.concatenate %626, %641, %656, %671 in 1 : vector<8x8xf32>, vector<8x8xf32>, vector<8x8xf32>, vector<8x8xf32> -> vector<8x32xf32>
    %673 = vector.extract_strided_slice %605 {offsets = [8, 0], sizes = [8, 8], strides = [1, 1]} : vector<16x32xf32> to vector<8x8xf32>
    %674 = vector.extract_strided_slice %606 {offsets = [16, 0], sizes = [16, 8], strides = [1, 1]} : vector<32x32xf32> to vector<16x8xf32>
    %cst_253 = arith.constant dense<0.000000e+00> : vector<8x16xf32>
    %675 = tpu.matmul %673, %674, %cst_253 {dimension_numbers = #tpu.dot_dimension_numbers<[1], [1], [0], [0], [0, 0, 1, 0], [], []>} : vector<8x8xf32>, vector<16x8xf32>, vector<8x16xf32> -> vector<8x16xf32>
    %cst_254 = arith.constant dense<0xFF800000> : vector<8xf32>
    %676 = vector.multi_reduction <maximumf>, %675, %cst_254 [1] : vector<8x16xf32> to vector<8xf32>
    %677 = vector.shape_cast %676 : vector<8xf32> to vector<8x1xf32>
    %678 = vector.broadcast %677 : vector<8x1xf32> to vector<8x16xf32>
    %679 = arith.subf %675, %678 : vector<8x16xf32>
    %680 = math.exp %679 : vector<8x16xf32>
    %cst_255 = arith.constant dense<0.000000e+00> : vector<8xf32>
    %681 = vector.multi_reduction <add>, %680, %cst_255 [1] : vector<8x16xf32> to vector<8xf32>
    %682 = vector.shape_cast %681 : vector<8xf32> to vector<8x1xf32>
    %683 = tpu.reciprocal %682 {approx = true} : vector<8x1xf32> -> vector<8x1xf32>
    %684 = vector.broadcast %683 : vector<8x1xf32> to vector<8x16xf32>
    %685 = arith.mulf %680, %684 : vector<8x16xf32>
    %686 = vector.extract_strided_slice %607 {offsets = [16, 0], sizes = [16, 8], strides = [1, 1]} : vector<32x32xf32> to vector<16x8xf32>
    %cst_256 = arith.constant dense<0.000000e+00> : vector<8x8xf32>
    %687 = tpu.matmul %685, %686, %cst_256 {dimension_numbers = #tpu.dot_dimension_numbers<[1], [0], [0], [1], [0, 0, 1, 1], [], []>} : vector<8x16xf32>, vector<16x8xf32>, vector<8x8xf32> -> vector<8x8xf32>
    %688 = vector.extract_strided_slice %605 {offsets = [8, 8], sizes = [8, 8], strides = [1, 1]} : vector<16x32xf32> to vector<8x8xf32>
    %689 = vector.extract_strided_slice %606 {offsets = [16, 8], sizes = [16, 8], strides = [1, 1]} : vector<32x32xf32> to vector<16x8xf32>
    %cst_257 = arith.constant dense<0.000000e+00> : vector<8x16xf32>
    %690 = tpu.matmul %688, %689, %cst_257 {dimension_numbers = #tpu.dot_dimension_numbers<[1], [1], [0], [0], [0, 0, 1, 0], [], []>} : vector<8x8xf32>, vector<16x8xf32>, vector<8x16xf32> -> vector<8x16xf32>
    %cst_258 = arith.constant dense<0xFF800000> : vector<8xf32>
    %691 = vector.multi_reduction <maximumf>, %690, %cst_258 [1] : vector<8x16xf32> to vector<8xf32>
    %692 = vector.shape_cast %691 : vector<8xf32> to vector<8x1xf32>
    %693 = vector.broadcast %692 : vector<8x1xf32> to vector<8x16xf32>
    %694 = arith.subf %690, %693 : vector<8x16xf32>
    %695 = math.exp %694 : vector<8x16xf32>
    %cst_259 = arith.constant dense<0.000000e+00> : vector<8xf32>
    %696 = vector.multi_reduction <add>, %695, %cst_259 [1] : vector<8x16xf32> to vector<8xf32>
    %697 = vector.shape_cast %696 : vector<8xf32> to vector<8x1xf32>
    %698 = tpu.reciprocal %697 {approx = true} : vector<8x1xf32> -> vector<8x1xf32>
    %699 = vector.broadcast %698 : vector<8x1xf32> to vector<8x16xf32>
    %700 = arith.mulf %695, %699 : vector<8x16xf32>
    %701 = vector.extract_strided_slice %607 {offsets = [16, 8], sizes = [16, 8], strides = [1, 1]} : vector<32x32xf32> to vector<16x8xf32>
    %cst_260 = arith.constant dense<0.000000e+00> : vector<8x8xf32>
    %702 = tpu.matmul %700, %701, %cst_260 {dimension_numbers = #tpu.dot_dimension_numbers<[1], [0], [0], [1], [0, 0, 1, 1], [], []>} : vector<8x16xf32>, vector<16x8xf32>, vector<8x8xf32> -> vector<8x8xf32>
    %703 = vector.extract_strided_slice %605 {offsets = [8, 16], sizes = [8, 8], strides = [1, 1]} : vector<16x32xf32> to vector<8x8xf32>
    %704 = vector.extract_strided_slice %606 {offsets = [16, 16], sizes = [16, 8], strides = [1, 1]} : vector<32x32xf32> to vector<16x8xf32>
    %cst_261 = arith.constant dense<0.000000e+00> : vector<8x16xf32>
    %705 = tpu.matmul %703, %704, %cst_261 {dimension_numbers = #tpu.dot_dimension_numbers<[1], [1], [0], [0], [0, 0, 1, 0], [], []>} : vector<8x8xf32>, vector<16x8xf32>, vector<8x16xf32> -> vector<8x16xf32>
    %cst_262 = arith.constant dense<0xFF800000> : vector<8xf32>
    %706 = vector.multi_reduction <maximumf>, %705, %cst_262 [1] : vector<8x16xf32> to vector<8xf32>
    %707 = vector.shape_cast %706 : vector<8xf32> to vector<8x1xf32>
    %708 = vector.broadcast %707 : vector<8x1xf32> to vector<8x16xf32>
    %709 = arith.subf %705, %708 : vector<8x16xf32>
    %710 = math.exp %709 : vector<8x16xf32>
    %cst_263 = arith.constant dense<0.000000e+00> : vector<8xf32>
    %711 = vector.multi_reduction <add>, %710, %cst_263 [1] : vector<8x16xf32> to vector<8xf32>
    %712 = vector.shape_cast %711 : vector<8xf32> to vector<8x1xf32>
    %713 = tpu.reciprocal %712 {approx = true} : vector<8x1xf32> -> vector<8x1xf32>
    %714 = vector.broadcast %713 : vector<8x1xf32> to vector<8x16xf32>
    %715 = arith.mulf %710, %714 : vector<8x16xf32>
    %716 = vector.extract_strided_slice %607 {offsets = [16, 16], sizes = [16, 8], strides = [1, 1]} : vector<32x32xf32> to vector<16x8xf32>
    %cst_264 = arith.constant dense<0.000000e+00> : vector<8x8xf32>
    %717 = tpu.matmul %715, %716, %cst_264 {dimension_numbers = #tpu.dot_dimension_numbers<[1], [0], [0], [1], [0, 0, 1, 1], [], []>} : vector<8x16xf32>, vector<16x8xf32>, vector<8x8xf32> -> vector<8x8xf32>
    %718 = vector.extract_strided_slice %605 {offsets = [8, 24], sizes = [8, 8], strides = [1, 1]} : vector<16x32xf32> to vector<8x8xf32>
    %719 = vector.extract_strided_slice %606 {offsets = [16, 24], sizes = [16, 8], strides = [1, 1]} : vector<32x32xf32> to vector<16x8xf32>
    %cst_265 = arith.constant dense<0.000000e+00> : vector<8x16xf32>
    %720 = tpu.matmul %718, %719, %cst_265 {dimension_numbers = #tpu.dot_dimension_numbers<[1], [1], [0], [0], [0, 0, 1, 0], [], []>} : vector<8x8xf32>, vector<16x8xf32>, vector<8x16xf32> -> vector<8x16xf32>
    %cst_266 = arith.constant dense<0xFF800000> : vector<8xf32>
    %721 = vector.multi_reduction <maximumf>, %720, %cst_266 [1] : vector<8x16xf32> to vector<8xf32>
    %722 = vector.shape_cast %721 : vector<8xf32> to vector<8x1xf32>
    %723 = vector.broadcast %722 : vector<8x1xf32> to vector<8x16xf32>
    %724 = arith.subf %720, %723 : vector<8x16xf32>
    %725 = math.exp %724 : vector<8x16xf32>
    %cst_267 = arith.constant dense<0.000000e+00> : vector<8xf32>
    %726 = vector.multi_reduction <add>, %725, %cst_267 [1] : vector<8x16xf32> to vector<8xf32>
    %727 = vector.shape_cast %726 : vector<8xf32> to vector<8x1xf32>
    %728 = tpu.reciprocal %727 {approx = true} : vector<8x1xf32> -> vector<8x1xf32>
    %729 = vector.broadcast %728 : vector<8x1xf32> to vector<8x16xf32>
    %730 = arith.mulf %725, %729 : vector<8x16xf32>
    %731 = vector.extract_strided_slice %607 {offsets = [16, 24], sizes = [16, 8], strides = [1, 1]} : vector<32x32xf32> to vector<16x8xf32>
    %cst_268 = arith.constant dense<0.000000e+00> : vector<8x8xf32>
    %732 = tpu.matmul %730, %731, %cst_268 {dimension_numbers = #tpu.dot_dimension_numbers<[1], [0], [0], [1], [0, 0, 1, 1], [], []>} : vector<8x16xf32>, vector<16x8xf32>, vector<8x8xf32> -> vector<8x8xf32>
    %733 = tpu.concatenate %687, %702, %717, %732 in 1 : vector<8x8xf32>, vector<8x8xf32>, vector<8x8xf32>, vector<8x8xf32> -> vector<8x32xf32>
    %734 = tpu.concatenate %672, %733 in 0 : vector<8x32xf32>, vector<8x32xf32> -> vector<16x32xf32>
    %cst_269 = arith.constant dense<0.000000e+00> : vector<16x32xf32>
    %735 = tpu.matmul %734, %609, %cst_269 {dimension_numbers = #tpu.dot_dimension_numbers<[1], [0], [0], [1], [0, 0, 1, 1], [], []>} : vector<16x32xf32>, vector<32x32xf32>, vector<16x32xf32> -> vector<16x32xf32>
    %736 = vector.shape_cast %611 : vector<32xf32> to vector<1x32xf32>
    %737 = vector.broadcast %736 : vector<1x32xf32> to vector<16x32xf32>
    %738 = arith.addf %735, %737 : vector<16x32xf32>
    %739 = arith.addf %596, %738 : vector<16x32xf32>
    %c1_270 = arith.constant 1 : index
    %c7_271 = arith.constant 7 : index
    %c0_272 = arith.constant 0 : index
    %740 = vector.load %arg12[%c1_270, %c7_271, %c0_272] : memref<2x11x32xf32, #tpu.memory_space<vmem>>, vector<1x1x32xf32>
    %741 = vector.shape_cast %740 : vector<1x1x32xf32> to vector<32xf32>
    %c1_273 = arith.constant 1 : index
    %c8_274 = arith.constant 8 : index
    %c0_275 = arith.constant 0 : index
    %742 = vector.load %arg12[%c1_273, %c8_274, %c0_275] : memref<2x11x32xf32, #tpu.memory_space<vmem>>, vector<1x1x32xf32>
    %743 = vector.shape_cast %742 : vector<1x1x32xf32> to vector<32xf32>
    %cst_276 = arith.constant dense<0.000000e+00> : vector<16xf32>
    %744 = vector.multi_reduction <add>, %739, %cst_276 [1] : vector<16x32xf32> to vector<16xf32>
    %745 = vector.shape_cast %744 : vector<16xf32> to vector<16x1xf32>
    %cst_277 = arith.constant 3.200000e+01 : f32
    %746 = vector.broadcast %cst_277 : f32 to vector<16x1xf32>
    %747 = arith.divf %745, %746 : vector<16x1xf32>
    %748 = vector.broadcast %747 : vector<16x1xf32> to vector<16x32xf32>
    %749 = arith.subf %739, %748 : vector<16x32xf32>
    %750 = arith.mulf %749, %749 : vector<16x32xf32>
    %cst_278 = arith.constant dense<0.000000e+00> : vector<16xf32>
    %751 = vector.multi_reduction <add>, %750, %cst_278 [1] : vector<16x32xf32> to vector<16xf32>
    %752 = vector.shape_cast %751 : vector<16xf32> to vector<16x1xf32>
    %cst_279 = arith.constant 3.200000e+01 : f32
    %753 = vector.broadcast %cst_279 : f32 to vector<16x1xf32>
    %754 = arith.divf %752, %753 : vector<16x1xf32>
    %755 = vector.broadcast %747 : vector<16x1xf32> to vector<16x32xf32>
    %756 = arith.subf %739, %755 : vector<16x32xf32>
    %cst_280 = arith.constant 9.99999974E-6 : f32
    %757 = vector.broadcast %cst_280 : f32 to vector<16x1xf32>
    %758 = arith.addf %754, %757 : vector<16x1xf32>
    %759 = math.rsqrt %758 : vector<16x1xf32>
    %760 = vector.broadcast %759 : vector<16x1xf32> to vector<16x32xf32>
    %761 = arith.mulf %756, %760 : vector<16x32xf32>
    %762 = vector.shape_cast %741 : vector<32xf32> to vector<1x32xf32>
    %763 = vector.broadcast %762 : vector<1x32xf32> to vector<16x32xf32>
    %764 = arith.mulf %761, %763 : vector<16x32xf32>
    %765 = vector.shape_cast %743 : vector<32xf32> to vector<1x32xf32>
    %766 = vector.broadcast %765 : vector<1x32xf32> to vector<16x32xf32>
    %767 = arith.addf %764, %766 : vector<16x32xf32>
    %c1_281 = arith.constant 1 : index
    %c0_282 = arith.constant 0 : index
    %c0_283 = arith.constant 0 : index
    %768 = vector.load %arg9[%c1_281, %c0_282, %c0_283] : memref<2x32x64xf32, #tpu.memory_space<vmem>>, vector<1x32x64xf32>
    %769 = vector.shape_cast %768 : vector<1x32x64xf32> to vector<32x64xf32>
    %cst_284 = arith.constant dense<0.000000e+00> : vector<16x64xf32>
    %770 = tpu.matmul %767, %769, %cst_284 {dimension_numbers = #tpu.dot_dimension_numbers<[1], [0], [0], [1], [0, 0, 1, 1], [], []>} : vector<16x32xf32>, vector<32x64xf32>, vector<16x64xf32> -> vector<16x64xf32>
    %c1_285 = arith.constant 1 : index
    %c0_286 = arith.constant 0 : index
    %771 = vector.load %arg11[%c1_285, %c0_286] : memref<2x64xf32, #tpu.memory_space<vmem>>, vector<1x64xf32>
    %772 = vector.shape_cast %771 : vector<1x64xf32> to vector<64xf32>
    %773 = vector.shape_cast %772 : vector<64xf32> to vector<1x64xf32>
    %774 = vector.broadcast %773 : vector<1x64xf32> to vector<16x64xf32>
    %775 = arith.addf %770, %774 : vector<16x64xf32>
    %cst_287 = arith.constant 0.000000e+00 : f32
    %776 = vector.broadcast %cst_287 : f32 to vector<16x64xf32>
    %777 = arith.maximumf %775, %776 : vector<16x64xf32>
    %c1_288 = arith.constant 1 : index
    %c0_289 = arith.constant 0 : index
    %c0_290 = arith.constant 0 : index
    %778 = vector.load %arg10[%c1_288, %c0_289, %c0_290] : memref<2x64x32xf32, #tpu.memory_space<vmem>>, vector<1x64x32xf32>
    %779 = vector.shape_cast %778 : vector<1x64x32xf32> to vector<64x32xf32>
    %cst_291 = arith.constant dense<0.000000e+00> : vector<16x32xf32>
    %780 = tpu.matmul %777, %779, %cst_291 {dimension_numbers = #tpu.dot_dimension_numbers<[1], [0], [0], [1], [0, 0, 1, 1], [], []>} : vector<16x64xf32>, vector<64x32xf32>, vector<16x32xf32> -> vector<16x32xf32>
    %c1_292 = arith.constant 1 : index
    %c4_293 = arith.constant 4 : index
    %c0_294 = arith.constant 0 : index
    %781 = vector.load %arg12[%c1_292, %c4_293, %c0_294] : memref<2x11x32xf32, #tpu.memory_space<vmem>>, vector<1x1x32xf32>
    %782 = vector.shape_cast %781 : vector<1x1x32xf32> to vector<32xf32>
    %783 = vector.shape_cast %782 : vector<32xf32> to vector<1x32xf32>
    %784 = vector.broadcast %783 : vector<1x32xf32> to vector<16x32xf32>
    %785 = arith.addf %780, %784 : vector<16x32xf32>
    %786 = arith.addf %767, %785 : vector<16x32xf32>
    %c1_295 = arith.constant 1 : index
    %c9_296 = arith.constant 9 : index
    %c0_297 = arith.constant 0 : index
    %787 = vector.load %arg12[%c1_295, %c9_296, %c0_297] : memref<2x11x32xf32, #tpu.memory_space<vmem>>, vector<1x1x32xf32>
    %788 = vector.shape_cast %787 : vector<1x1x32xf32> to vector<32xf32>
    %c1_298 = arith.constant 1 : index
    %c10_299 = arith.constant 10 : index
    %c0_300 = arith.constant 0 : index
    %789 = vector.load %arg12[%c1_298, %c10_299, %c0_300] : memref<2x11x32xf32, #tpu.memory_space<vmem>>, vector<1x1x32xf32>
    %790 = vector.shape_cast %789 : vector<1x1x32xf32> to vector<32xf32>
    %cst_301 = arith.constant dense<0.000000e+00> : vector<16xf32>
    %791 = vector.multi_reduction <add>, %786, %cst_301 [1] : vector<16x32xf32> to vector<16xf32>
    %792 = vector.shape_cast %791 : vector<16xf32> to vector<16x1xf32>
    %cst_302 = arith.constant 3.200000e+01 : f32
    %793 = vector.broadcast %cst_302 : f32 to vector<16x1xf32>
    %794 = arith.divf %792, %793 : vector<16x1xf32>
    %795 = vector.broadcast %794 : vector<16x1xf32> to vector<16x32xf32>
    %796 = arith.subf %786, %795 : vector<16x32xf32>
    %797 = arith.mulf %796, %796 : vector<16x32xf32>
    %cst_303 = arith.constant dense<0.000000e+00> : vector<16xf32>
    %798 = vector.multi_reduction <add>, %797, %cst_303 [1] : vector<16x32xf32> to vector<16xf32>
    %799 = vector.shape_cast %798 : vector<16xf32> to vector<16x1xf32>
    %cst_304 = arith.constant 3.200000e+01 : f32
    %800 = vector.broadcast %cst_304 : f32 to vector<16x1xf32>
    %801 = arith.divf %799, %800 : vector<16x1xf32>
    %802 = vector.broadcast %794 : vector<16x1xf32> to vector<16x32xf32>
    %803 = arith.subf %786, %802 : vector<16x32xf32>
    %cst_305 = arith.constant 9.99999974E-6 : f32
    %804 = vector.broadcast %cst_305 : f32 to vector<16x1xf32>
    %805 = arith.addf %801, %804 : vector<16x1xf32>
    %806 = math.rsqrt %805 : vector<16x1xf32>
    %807 = vector.broadcast %806 : vector<16x1xf32> to vector<16x32xf32>
    %808 = arith.mulf %803, %807 : vector<16x32xf32>
    %809 = vector.shape_cast %788 : vector<32xf32> to vector<1x32xf32>
    %810 = vector.broadcast %809 : vector<1x32xf32> to vector<16x32xf32>
    %811 = arith.mulf %808, %810 : vector<16x32xf32>
    %812 = vector.shape_cast %790 : vector<32xf32> to vector<1x32xf32>
    %813 = vector.broadcast %812 : vector<1x32xf32> to vector<16x32xf32>
    %814 = arith.addf %811, %813 : vector<16x32xf32>
    %c0_306 = arith.constant 0 : index
    %c0_307 = arith.constant 0 : index
    %815 = vector.load %arg13[%c0_306, %c0_307] : memref<2x32xf32, #tpu.memory_space<vmem>>, vector<1x32xf32>
    %816 = vector.shape_cast %815 : vector<1x32xf32> to vector<32xf32>
    %c1_308 = arith.constant 1 : index
    %c0_309 = arith.constant 0 : index
    %817 = vector.load %arg13[%c1_308, %c0_309] : memref<2x32xf32, #tpu.memory_space<vmem>>, vector<1x32xf32>
    %818 = vector.shape_cast %817 : vector<1x32xf32> to vector<32xf32>
    %cst_310 = arith.constant dense<0.000000e+00> : vector<16xf32>
    %819 = vector.multi_reduction <add>, %814, %cst_310 [1] : vector<16x32xf32> to vector<16xf32>
    %820 = vector.shape_cast %819 : vector<16xf32> to vector<16x1xf32>
    %cst_311 = arith.constant 3.200000e+01 : f32
    %821 = vector.broadcast %cst_311 : f32 to vector<16x1xf32>
    %822 = arith.divf %820, %821 : vector<16x1xf32>
    %823 = vector.broadcast %822 : vector<16x1xf32> to vector<16x32xf32>
    %824 = arith.subf %814, %823 : vector<16x32xf32>
    %825 = arith.mulf %824, %824 : vector<16x32xf32>
    %cst_312 = arith.constant dense<0.000000e+00> : vector<16xf32>
    %826 = vector.multi_reduction <add>, %825, %cst_312 [1] : vector<16x32xf32> to vector<16xf32>
    %827 = vector.shape_cast %826 : vector<16xf32> to vector<16x1xf32>
    %cst_313 = arith.constant 3.200000e+01 : f32
    %828 = vector.broadcast %cst_313 : f32 to vector<16x1xf32>
    %829 = arith.divf %827, %828 : vector<16x1xf32>
    %830 = vector.broadcast %822 : vector<16x1xf32> to vector<16x32xf32>
    %831 = arith.subf %814, %830 : vector<16x32xf32>
    %cst_314 = arith.constant 9.99999974E-6 : f32
    %832 = vector.broadcast %cst_314 : f32 to vector<16x1xf32>
    %833 = arith.addf %829, %832 : vector<16x1xf32>
    %834 = math.rsqrt %833 : vector<16x1xf32>
    %835 = vector.broadcast %834 : vector<16x1xf32> to vector<16x32xf32>
    %836 = arith.mulf %831, %835 : vector<16x32xf32>
    %837 = vector.shape_cast %816 : vector<32xf32> to vector<1x32xf32>
    %838 = vector.broadcast %837 : vector<1x32xf32> to vector<16x32xf32>
    %839 = arith.mulf %836, %838 : vector<16x32xf32>
    %840 = vector.shape_cast %818 : vector<32xf32> to vector<1x32xf32>
    %841 = vector.broadcast %840 : vector<1x32xf32> to vector<16x32xf32>
    %842 = arith.addf %839, %841 : vector<16x32xf32>
    %c0_315 = arith.constant 0 : index
    %c0_316 = arith.constant 0 : index
    %843 = vector.load %arg14[%c0_315, %c0_316] : memref<16x32xf32, #tpu.memory_space<vmem>>, vector<16x32xf32>
    tpu.vector_store %arg14[%c0_315, %c0_316], %842 {strides = array<i32>} : memref<16x32xf32, #tpu.memory_space<vmem>>, vector<16x32xf32>,
    return
  }
}

</mosaic_0001>

<bundles_post_ra>
// kernel: transformer_decoder_pallas.1
= control target key start
LH: loop header
LB: loop body
LE: loop exit
PB: predicated region body
PF: predicated region fallthrough
CT: control target
= control target key end

     0   :  { %vm72_vm0 = vcmask 261120   ;;  %v8612_v10 = vmov 0.0   ;;  %vm8613_vm1 = vmmov 0   ;;  %s8614_s30 = smov 120   ;;  %s8615_s15 = smov 96   ;;  %vm468_vm2 = vcmask 64512   ;;  %s9943_s4 = inlined_call_operand.vmem [shape: f32[2,32,64], index: 4, kind: input, shape index: {}]   ;;  %s9944_s0 = inlined_call_operand.vmem [shape: f32[16,32], index: 0, kind: input, shape index: {}]   ;;  %s9945_s2 = inlined_call_operand.vmem [shape: f32[16,32], index: 2, kind: input, shape index: {}]   ;;  %s9946_s5 = inlined_call_operand.vmem [shape: f32[2,64], index: 5, kind: input, shape index: {}]   ;;  %s9947_s7 = inlined_call_operand.vmem [shape: f32[2,32,64], index: 7, kind: input, shape index: {}]   ;;  %s9948_s1 = inlined_call_operand.vmem [shape: f32[32,32], index: 1, kind: input, shape index: {}]   ;;  %s9949_s3 = inlined_call_operand.vmem [shape: f32[32,32], index: 3, kind: input, shape index: {}]   ;;  %s9950_s6 = inlined_call_operand.vmem [shape: f32[2,4,32,32], index: 6, kind: input, shape index: {}]   ;;  %s9951_s8 = inlined_call_operand.vmem [shape: f32[2,64], index: 8, kind: input, shape index: {}]   ;;  %s9952_s12 = inlined_call_operand.vmem [shape: f32[2,11,32], index: 12, kind: input, shape index: {}]   ;;  %s9953_s9 = inlined_call_operand.vmem [shape: f32[2,32,64], index: 9, kind: input, shape index: {}]   ;;  %s9954_s10 = inlined_call_operand.vmem [shape: f32[2,64,32], index: 10, kind: input, shape index: {}]   ;;  %s9955_s11 = inlined_call_operand.vmem [shape: f32[2,64], index: 11, kind: input, shape index: {}]   ;;  %s9956_s13 = inlined_call_operand.vmem [shape: f32[2,32], index: 13, kind: input, shape index: {}]   ;;  %s9957_s14 = inlined_call_operand.vmem [shape: f32[16,32], index: 14, kind: output, shape index: {}]  }
   0x1   :  { %v282_v0 = vld [vmem:[%s9943_s4 + $0x18] sm:$0xff]  ;;  %v281_v1 = vld [vmem:[%s9943_s4 + $0x10] sm:$0xff]  ;;  %v280_v2 = vld [vmem:[%s9943_s4 + $0x8] sm:$0xff]  ;;  %s8616_s16 = smov 80   ;;  %s8617_s17 = smov 88   ;;  %vm1136_vm3 = vcmask 130048  }
   0x2   :  { %7888 = vmatprep.subr.mxu0 %v282_v0  ;;  %v8711_v3 = vld [vmem:[%s9944_s0] sm:$0xff]  ;;  %v8716_v4 = vld [vmem:[%s9944_s0 + $0x8] sm:$0xff]  ;;  %s8618_s18 = smov 72   ;;  %s8619_s19 = smov 112   ;;  %v66_v16 = vld [vmem:[%s9947_s7 + $0x18] sm:$0xff]  ;;  %vm1138_vm4 = vcmask 195584  }
   0x3   :  { %7889 = vmatpush3.msra.mxu0 %v282_v0  ;;  %v8721_v5 = vld [vmem:[%s9945_s2] sm:$0xff]  ;;  %v8726_v6 = vld [vmem:[%s9945_s2 + $0x8] sm:$0xff]  ;;  %s8620_s20 = smov 104   ;;  %v65_v17 = vld [vmem:[%s9947_s7 + $0x10] sm:$0xff]  ;;  %7860 = vmatprep.subr.mxu1 %v66_v16  ;;  %s8622_s22 = smov 16   ;;  %vm3663_vm5 = vcmask 523264  }
   0x4   :  { %7890 = vmatprep.subr.mxu0 %v281_v1  ;;  %v277_v7 = vadd.f32 %v8721_v5, %v8711_v3  ;;  %v279_v8 = vld [vmem:[%s9943_s4] sm:$0xff]  ;;  %v278_v9 = vadd.f32 %v8726_v6, %v8716_v4  ;;  %7861 = vmatpush3.msra.mxu1 %v66_v16  ;;  %v64_v21 = vld [vmem:[%s9947_s7 + $0x8] sm:$0xff]  ;;  %v53_v24 = vld [vmem:[%s9948_s1 + $0x10] sm:$0xff]  ;;  %s8623_s23 = smov 24  }
   0x5   :  { %7891 = vmatpush3.msra.mxu0 %v281_v1  ;;  %v7369_v12 = vld [vmem:[%s9946_s5] ss:$0 sm:$0xff]  ;;  %7862 = vmatprep.subr.mxu1 %v65_v17  ;;  %v52_v22 = vld [vmem:[%s9948_s1 + $0x8] sm:$0xff]  ;;  %v57_v25 = vld [vmem:[%s9949_s3 + $0x10] sm:$0xff] }
   0x6   :  { %7892 = vmatprep.subr.mxu0 %v280_v2  ;;  %7896 = vmatprep.mubr.msk.f32.mxu0 %vm72_vm0, %v277_v7  ;;  %v51_v18 = vld [vmem:[%s9948_s1] sm:$0xff]  ;;  %v56_v23 = vld [vmem:[%s9949_s3 + $0x8] sm:$0xff]  ;;  %v7363_v28 = vld [vmem:[%s9947_s7 + $0x38] sm:$0xff]  ;;  %v61_v29 = vadd.f32 %v57_v25, %v53_v24 }
   0x7   :  { %7893 = vmatpush3.msra.mxu0 %v280_v2  ;;  %v55_v19 = vld [vmem:[%s9949_s3] sm:$0xff]  ;;  %7863 = vmatpush3.msra.mxu1 %v65_v17  ;;  %v60_v27 = vadd.f32 %v56_v23, %v52_v22  ;;  %v54_v30 = vld [vmem:[%s9948_s1 + $0x18] sm:$0xff]  ;;  %v7362_v32 = vld [vmem:[%s9947_s7 + $0x30] sm:$0xff] }
   0x8   :  { %7894 = vmatprep.subr.mxu0 %v279_v8  ;;  %v59_v20 = vadd.f32 %v55_v19, %v51_v18  ;;  %v63_v26 = vld [vmem:[%s9947_s7] sm:$0xff]  ;;  %7864 = vmatprep.subr.mxu1 %v64_v21  ;;  %v58_v31 = vld [vmem:[%s9949_s3 + $0x18] sm:$0xff]  ;;  %v7361_v34 = vld [vmem:[%s9947_s7 + $0x28] sm:$0xff] }
   0x9   :  { %7895 = vmatpush3.msra.mxu0 %v279_v8  ;;  %7865 = vmatpush3.msra.mxu1 %v64_v21  ;;  %v62_v33 = vadd.f32 %v58_v31, %v54_v30  ;;  %v7360_v35 = vld [vmem:[%s9947_s7 + $0x20] sm:$0xff]  ;;  %v372_v36 = vld [vmem:[%s9950_s6 + $0x18] sm:$0xff]  ;;  %v371_v37 = vld [vmem:[%s9950_s6 + $0x10] sm:$0xff] }
   0xa   :  { %7897 = vmatmul.mubr.msk.f32.vlgmr.msra.gmra.mxu0 %vm72_vm0, %v278_v9  ;;  %7910 = vmatprep.subr.mxu0 %v8612_v10  ;;  %v370_v38 = vld [vmem:[%s9950_s6 + $0x8] sm:$0xff]  ;;  %v369_v39 = vld [vmem:[%s9950_s6] sm:$0xff] }
   0xb   :  { %7912 = vmatprep.mubr.msk.f32.mxu0 %vm8613_vm1, %v8612_v10  ;;  %7868 = vmatprep.mubr.msk.f32.mxu1 %vm72_vm0, %v59_v20  ;;  %v8896_v56 = vld [vmem:[%s9951_s8] ss:$0 sm:$0xff]  ;;  %v7364_v60 = vld [vmem:[%s9951_s8 + $0x1] ss:$0 sm:$0xff]  ;;  %s8621_s8 = smov 8  }
   0xc   :  { %7866 = vmatprep.subr.mxu1 %v63_v26  ;;  %v7372_v9 = vld [vmem:[%s9952_s12] ss:$0 sm:$0xff] }
   0xd   :  { %7867 = vmatpush3.msra.mxu1 %v63_v26 }
   0xe   :  { %7869 = vmatmul.mubr.msk.f32.vlgmr.msra.gmra.mxu1 %vm72_vm0, %v60_v27  ;;  %7874 = vmatprep.subr.mxu1 %v7363_v28 }
   0xf   :  { %7875 = vmatpush3.msra.mxu1 %v7363_v28  ;;  %7871 = vmatprep.mubr.msk.f32.mxu1 %vm72_vm0, %v61_v29 }
  0x10   :  { %7876 = vmatprep.subr.mxu1 %v7362_v32 }
  0x11   :  { %7877 = vmatpush3.msra.mxu1 %v7362_v32 }
  0x12   :  { %7872 = vmatmul.mubr.msk.f32.gmra.mxu1 %vm72_vm0, %v62_v33  ;;  %7878 = vmatprep.subr.mxu1 %v7361_v34 }
  0x13   :  { %7879 = vmatpush3.msra.mxu1 %v7361_v34  ;;  %7882 = vmatprep.mubr.msk.f32.mxu1 %vm72_vm0, %v51_v18 }
  0x14   :  { %7880 = vmatprep.subr.mxu1 %v7360_v35 }
  0x15   :  { %7881 = vmatpush3.msra.mxu1 %v7360_v35 }
  0x16   :  { %7883 = vmatmul.mubr.msk.f32.vlgmr.msra.gmra.mxu1 %vm72_vm0, %v52_v22  ;;  %7899 = vmatprep.subr.mxu1 %v372_v36 }
  0x17   :  { %7900 = vmatpush3.msra.mxu1 %v372_v36  ;;  %7885 = vmatprep.mubr.msk.f32.mxu1 %vm72_vm0, %v53_v24 }
  0x18   :  { %7901 = vmatprep.subr.mxu1 %v371_v37 }
  0x19   :  { %7902 = vmatpush3.msra.mxu1 %v371_v37 }
  0x1a   :  { %7886 = vmatmul.mubr.msk.f32.gmra.mxu1 %vm72_vm0, %v54_v30  ;;  %7903 = vmatprep.subr.mxu1 %v370_v38 }
  0x1b   :  { %7904 = vmatpush3.msra.mxu1 %v370_v38  ;;  %7907 = vmatprep.mubr.msk.f32.mxu1 %vm72_vm0, %v8711_v3 }
  0x1c   :  { %7905 = vmatprep.subr.mxu1 %v369_v39 }
  0x1d   :  { %7906 = vmatpush3.msra.mxu1 %v369_v39 }
  0x1e   :  { %7908 = vmatmul.mubr.msk.f32.vlgmr.msra.gmra.mxu1 %vm72_vm0, %v8716_v4  ;;  %7915 = vmatprep.subr.mxu1 %v8612_v10 }
  0x1f   :  { %7917 = vmatprep.mubr.msk.f32.mxu1 %vm8613_vm1, %v8612_v10 }
  0xca   :  { %v7898_v11 = vpop.f32.mrf.mxu0 }
  0xcb   :  { %v8757_v15 = vadd.f32 %v7898_v11, %v7369_v12 }
  0xcc   :  { %v360_v13 = vpop.f32.mrf.mxu0 }
  0xcd   :  { %v8743_v14 = vadd.f32 %v7369_v12, %v360_v13 }
  0xce   :  { %v8889_v54 = vpop.f32.mrf.mxu1 }
  0xcf   :  { %627 = vrot.lane.b32.xlu1 %v8743_v14, %s8614_s30  ;;  %466 = vrot.lane.b32.xlu0 %v8743_v14, %s8615_s15 }
  0xd0   :  { %v8891_v55 = vpop.f32.mrf.mxu1 }
  0xd2   :  { %v7873_v57 = vpop.f32.mrf.mxu1 }
  0xd3   :  { %795 = vrot.lane.b32.xlu1 %v8743_v14, %s8616_s16  ;;  %629 = vrot.lane.b32.xlu0 %v8743_v14, %s8617_s17  ;;  %v8899_v58 = vadd.f32 %v7873_v57, %v8896_v56 }
  0xd4   :  { %v161_v59 = vpop.f32.mrf.mxu1 }
  0xd5   :  { %v8905_v61 = vadd.f32 %v8896_v56, %v161_v59 }
  0xd6   :  { %v7884_v62 = vpop.f32.mrf.mxu1 }
  0xd7   :  { %960 = vrot.lane.b32.xlu1 %v8743_v14, %s8618_s18  ;;  %793 = vrot.lane.b32.xlu0 %v8743_v14, %s8619_s19  ;;  %v8907_v63 = vadd.f32 %v7884_v62, %v7364_v60 }
  0xd8   :  { %v258_v0 = vpop.f32.mrf.mxu1 }
  0xd9   :  { %v8909_v1 = vadd.f32 %v7364_v60, %v258_v0 }
  0xda   :  { %v7887_v2 = vpop.f32.mrf.mxu1 }
  0xdb   :  { %1141 = vrot.lane.b32.xlu1 %v8757_v15, %s8615_s15  ;;  %958 = vrot.lane.b32.xlu0 %v8743_v14, %s8620_s20  ;;  %v8911_v7 = vadd.f32 %v7887_v2, %v7364_v60 }
  0xdc   :  { %v268_v8 = vpop.f32.mrf.mxu1 }
  0xdd   :  { %v8916_v11 = vadd.f32 %v7364_v60, %v268_v8 }
  0xde   :  { %v7909_v12 = vpop.f32.mrf.mxu1 }
  0xdf   :  { %1301 = vrot.lane.b32.xlu1 %v8757_v15, %s8614_s30  ;;  %1303 = vrot.lane.b32.xlu0 %v8757_v15, %s8617_s17  ;;  %v8918_v13 = vadd.f32 %v7909_v12, %v7372_v9 }
  0xe3   :  { %1467 = vrot.lane.b32.xlu1 %v8757_v15, %s8619_s19  ;;  %1469 = vrot.lane.b32.xlu0 %v8757_v15, %s8616_s16 }
  0xe7   :  { %1632 = vrot.lane.b32.xlu1 %v8757_v15, %s8620_s20  ;;  %1634 = vrot.lane.b32.xlu0 %v8757_v15, %s8618_s18 }
 0x141   :  { %v628_v40 = vpop.permute.xlu1 %627  ;;  %v467_v41 = vpop.permute.xlu0 %466 }
 0x142   :  { %7911 = vmatpush3.xpose.msk.msra.mxu0 %vm468_vm2, %v467_v41 }
 0x143   :  { %7920 = vmatprep.subr.mxu0 %v8612_v10 }
 0x145   :  { %v796_v42 = vpop.permute.xlu1 %795  ;;  %7913 = vmatmul.mubr.msk.f32.vlgmr.msra.gmra.mxu0 %vm468_vm2, %v8743_v14  ;;  %v630_v43 = vpop.permute.xlu0 %629 }
 0x146   :  { %7921 = vmatpush3.xpose.msk.msra.mxu0 %vm468_vm2, %v630_v43  ;;  %7922 = vmatprep.mubr.msk.f32.mxu0 %vm8613_vm1, %v8612_v10  ;;  %v450_v14 = vpop.f32.mrf.mxu1 }
 0x147   :  { %7930 = vmatprep.subr.mxu0 %v8612_v10 }
 0x149   :  { %v961_v44 = vpop.permute.xlu1 %960  ;;  %7923 = vmatmul.mubr.msk.f32.vlgmr.msra.gmra.mxu0 %vm468_vm2, %v628_v40  ;;  %v794_v45 = vpop.permute.xlu0 %793 }
 0x14a   :  { %7931 = vmatpush3.xpose.msk.msra.mxu0 %vm468_vm2, %v796_v42  ;;  %7932 = vmatprep.mubr.msk.f32.mxu0 %vm8613_vm1, %v8612_v10 }
 0x14b   :  { %7940 = vmatprep.subr.mxu0 %v8612_v10 }
 0x14d   :  { %7933 = vmatmul.mubr.msk.f32.vlgmr.msra.gmra.mxu0 %vm468_vm2, %v794_v45  ;;  %v959_v46 = vpop.permute.xlu0 %958  ;;  %v1142_v47 = vpop.permute.xlu1 %1141 }
 0x14e   :  { %7941 = vmatpush3.xpose.msk.msra.mxu0 %vm468_vm2, %v961_v44  ;;  %7942 = vmatprep.mubr.msk.f32.mxu0 %vm8613_vm1, %v8612_v10 }
 0x14f   :  { %7950 = vmatprep.subr.mxu0 %v8612_v10 }
 0x151   :  { %7943 = vmatmul.mubr.msk.f32.vlgmr.msra.gmra.mxu0 %vm468_vm2, %v959_v46  ;;  %v1304_v48 = vpop.permute.xlu0 %1303  ;;  %v1302_v49 = vpop.permute.xlu1 %1301 }
 0x152   :  { %7951 = vmatpush3.xpose.msk.msra.mxu0 %vm468_vm2, %v1142_v47  ;;  %7952 = vmatprep.mubr.msk.f32.mxu0 %vm8613_vm1, %v8612_v10 }
 0x153   :  { %7960 = vmatprep.subr.mxu0 %v8612_v10 }
 0x155   :  { %7953 = vmatmul.mubr.msk.f32.vlgmr.msra.gmra.mxu0 %vm468_vm2, %v8757_v15  ;;  %v1470_v50 = vpop.permute.xlu0 %1469  ;;  %v1468_v51 = vpop.permute.xlu1 %1467  ;;  %v451_v15 = vadd.f32 %v7372_v9, %v450_v14 }
 0x156   :  { %7961 = vmatpush3.xpose.msk.msra.mxu0 %vm468_vm2, %v1304_v48  ;;  %7962 = vmatprep.mubr.msk.f32.mxu0 %vm8613_vm1, %v8612_v10 }
 0x157   :  { %7970 = vmatprep.subr.mxu0 %v8612_v10  ;;  %7916 = vmatpush3.msra.mxu1 %v451_v15 }
 0x158   :  { %7925 = vmatprep.subr.mxu1 %v8612_v10 }
 0x159   :  { %7963 = vmatmul.mubr.msk.f32.vlgmr.msra.gmra.mxu0 %vm468_vm2, %v1302_v49  ;;  %v1635_v52 = vpop.permute.xlu0 %1634  ;;  %v1633_v53 = vpop.permute.xlu1 %1632 }
 0x15a   :  { %7971 = vmatpush3.xpose.msk.msra.mxu0 %vm468_vm2, %v1470_v50  ;;  %7972 = vmatprep.mubr.msk.f32.mxu0 %vm8613_vm1, %v8612_v10 }
 0x15b   :  { %7980 = vmatprep.subr.mxu0 %v8612_v10 }
 0x15d   :  { %7973 = vmatmul.mubr.msk.f32.vlgmr.msra.gmra.mxu0 %vm468_vm2, %v1468_v51 }
 0x15e   :  { %7981 = vmatpush3.xpose.msk.msra.mxu0 %vm468_vm2, %v1635_v52  ;;  %7982 = vmatprep.mubr.msk.f32.mxu0 %vm8613_vm1, %v8612_v10 }
 0x161   :  { %7983 = vmatmul.mubr.msk.f32.vlgmr.msra.gmra.mxu0 %vm468_vm2, %v1633_v53 }
 0x205   :  { %v539_v16 = vpop.f32.mrf.mxu0 }
 0x206   :  { %v543_v17 = vsel %vm468_vm2, %v539_v16, -inf }
 0x207   :  { %544 = vmax.xlane.f32.xlu0 %v543_v17  ;;  %v7914_v18 = vpop.f32.mrf.mxu0 }
 0x209   :  { %v701_v19 = vpop.f32.mrf.mxu0 }
 0x20a   :  { %v705_v20 = vsel %vm468_vm2, %v701_v19, -inf }
 0x20b   :  { %706 = vmax.xlane.f32.xlu1 %v705_v20  ;;  %v7924_v21 = vpop.f32.mrf.mxu0 }
 0x20d   :  { %v867_v22 = vpop.f32.mrf.mxu0 }
 0x20e   :  { %v871_v23 = vsel %vm468_vm2, %v867_v22, -inf }
 0x20f   :  { %872 = vmax.xlane.f32.xlu0 %v871_v23  ;;  %v7934_v24 = vpop.f32.mrf.mxu0 }
 0x211   :  { %v1032_v25 = vpop.f32.mrf.mxu0 }
 0x212   :  { %v1036_v26 = vsel %vm468_vm2, %v1032_v25, -inf }
 0x213   :  { %1037 = vmax.xlane.f32.xlu0 %v1036_v26  ;;  %v7944_v27 = vpop.f32.mrf.mxu0 }
 0x215   :  { %v8925_v28 = vpop.f32.mrf.mxu0 }
 0x216   :  { %v1217_v29 = vsel %vm468_vm2, %v8925_v28, -inf }
 0x217   :  { %1218 = vmax.xlane.f32.xlu1 %v1217_v29  ;;  %v7954_v30 = vpop.f32.mrf.mxu0 }
 0x219   :  { %v1375_v31 = vpop.f32.mrf.mxu0 }
 0x21a   :  { %v1379_v32 = vsel %vm468_vm2, %v1375_v31, -inf }
 0x21b   :  { %1380 = vmax.xlane.f32.xlu0 %v1379_v32  ;;  %v7964_v33 = vpop.f32.mrf.mxu0 }
 0x21d   :  { %v1541_v34 = vpop.f32.mrf.mxu0 }
 0x21e   :  { %v1545_v35 = vsel %vm468_vm2, %v1541_v34, -inf }
 0x21f   :  { %1546 = vmax.xlane.f32.xlu1 %v1545_v35  ;;  %v7974_v36 = vpop.f32.mrf.mxu0 }
 0x221   :  { %v1706_v37 = vpop.f32.mrf.mxu0 }
 0x222   :  { %v1710_v38 = vsel %vm468_vm2, %v1706_v37, -inf }
 0x223   :  { %1711 = vmax.xlane.f32.xlu0 %v1710_v38  ;;  %v7984_v39 = vpop.f32.mrf.mxu0 }
 0x230   :  { %717 = vrot.lane.b32.xlu1 %v451_v15, %s8614_s30 }
 0x290   :  { %v545_v40 = vpop.xlane.xlu0 %544 }
 0x291   :  { %v546_v41 = vsub.f32 %v539_v16, %v545_v40 }
 0x293   :  { %v547_v42 = vmul.f32 1.442695, %v546_v41 }
 0x294   :  { %v707_v43 = vpop.xlane.xlu1 %706 }
 0x295   :  { %8454 = vpow2.f32 %v547_v42  ;;  %v708_v44 = vsub.f32 %v701_v19, %v707_v43 }
 0x297   :  { %v709_v45 = vmul.f32 1.442695, %v708_v44 }
 0x298   :  { %v873_v50 = vpop.xlane.xlu0 %872 }
 0x299   :  { %8456 = vpow2.f32 %v709_v45  ;;  %v874_v51 = vsub.f32 %v867_v22, %v873_v50 }
 0x29b   :  { %v875_v53 = vmul.f32 1.442695, %v874_v51 }
 0x29c   :  { %v1038_v52 = vpop.xlane.xlu0 %1037 }
 0x29d   :  { %v1039_v57 = vsub.f32 %v1032_v25, %v1038_v52  ;;  %8458 = vpow2.f32 %v875_v53 }
 0x29f   :  { %v1040_v60 = vmul.f32 1.442695, %v1039_v57 }
 0x2a0   :  { %v1219_v21 = vpop.xlane.xlu1 %1218 }
 0x2a1   :  { %8460 = vpow2.f32 %v1040_v60  ;;  %v1220_v22 = vsub.f32 %v8925_v28, %v1219_v21  ;;  %v7376_v21 = vld [vmem:[%s9950_s6 + $0x28] sm:$0xff] }
 0x2a2   :  { %v8455_v46 = vpop.eup %8454 }
 0x2a3   :  { %v549_v47 = vsel %vm468_vm2, %v8455_v46, 0.0  ;;  %v1221_v24 = vmul.f32 1.442695, %v1220_v22  ;;  %v7375_v22 = vld [vmem:[%s9950_s6 + $0x20] sm:$0xff] }
 0x2a4   :  { %550 = vadd.xlane.f32.xlu1 %v549_v47  ;;  %v1381_v59 = vpop.xlane.xlu0 %1380 }
 0x2a5   :  { %v1382_v62 = vsub.f32 %v1375_v31, %v1381_v59 }
 0x2a6   :  { %v8457_v48 = vpop.eup %8456 }
 0x2a7   :  { %v711_v49 = vsel %vm468_vm2, %v8457_v48, 0.0  ;;  %v1383_v2 = vmul.f32 1.442695, %v1382_v62 }
 0x2a8   :  { %712 = vadd.xlane.f32.xlu0 %v711_v49  ;;  %v1547_v23 = vpop.xlane.xlu1 %1546 }
 0x2a9   :  { %8462 = vpow2.f32 %v1383_v2  ;;  %v1548_v25 = vsub.f32 %v1541_v34, %v1547_v23 }
 0x2aa   :  { %v8459_v12 = vpop.eup %8458 }
 0x2ab   :  { %v877_v14 = vsel %vm468_vm2, %v8459_v12, 0.0  ;;  %v1549_v26 = vmul.f32 1.442695, %v1548_v25 }
 0x2ac   :  { %v1712_v0 = vpop.xlane.xlu0 %1711  ;;  %v718_v28 = vpop.permute.xlu1 %717 }
 0x2ad   :  { %v1713_v8 = vsub.f32 %v1706_v37, %v1712_v0 }
 0x2ae   :  { %v8461_v16 = vpop.eup %8460 }
 0x2af   :  { %v1714_v9 = vmul.f32 1.442695, %v1713_v8 }
 0x2b1   :  { %8464 = vpow2.f32 %v1714_v9 }
 0x2b2   :  { %8466 = vpow2.f32 %v1221_v24 }
 0x2b3   :  { %8468 = vpow2.f32 %v1549_v26 }
 0x2b5   :  { %1047 = vrot.lane.b32.xlu1 %v451_v15, %s8620_s20 }
 0x2b6   :  { %v8939_v17 = vpop.eup %8462 }
 0x2b7   :  { %v1385_v18 = vsel %vm468_vm2, %v8939_v17, 0.0 }
 0x2be   :  { %882 = vrot.lane.b32.xlu0 %v451_v15, %s8619_s19  ;;  %v1042_v15 = vsel %vm468_vm2, %v8461_v16, 0.0  ;;  %v8943_v19 = vpop.eup %8464 }
 0x2bf   :  { %v1716_v20 = vsel %vm468_vm2, %v8943_v19, 0.0  ;;  %v8467_v27 = vpop.eup %8466 }
 0x2c0   :  { %v1223_v29 = vsel %vm468_vm2, %v8467_v27, 0.0  ;;  %v8953_v30 = vpop.eup %8468 }
 0x2c1   :  { %v1551_v31 = vsel %vm468_vm2, %v8953_v30, 0.0 }
 0x2d9   :  { %878 = vadd.xlane.f32.xlu1 %v877_v14 }
 0x2dd   :  { %1043 = vadd.xlane.f32.xlu0 %v1042_v15 }
 0x2e1   :  { %1386 = vadd.xlane.f32.xlu0 %v1385_v18 }
 0x2e5   :  { %1717 = vadd.xlane.f32.xlu0 %v1716_v20  ;;  %v7377_v20 = vld [vmem:[%s9950_s6 + $0x30] sm:$0xff] }
 0x2ea   :  { %1391 = vrot.lane.b32.xlu1 %v8918_v13, %s8614_s30 }
 0x2fb   :  { %1556 = vrot.lane.b32.xlu0 %v8918_v13, %s8619_s19 }
 0x30e   :  { %1224 = vadd.xlane.f32.xlu1 %v1223_v29 }
 0x312   :  { %1552 = vadd.xlane.f32.xlu1 %v1551_v31 }
 0x323   :  { %1721 = vrot.lane.b32.xlu1 %v8918_v13, %s8620_s20 }
 0x32d   :  { %v551_v32 = vpop.xlane.xlu1 %550 }
 0x32e   :  { %8470 = vrcp.f32 %v551_v32 }
 0x331   :  { %v713_v33 = vpop.xlane.xlu0 %712  ;;  %v1048_v39 = vpop.permute.xlu1 %1047 }
 0x332   :  { %8472 = vrcp.f32 %v713_v33 }
 0x335   :  { %v883_v38 = vpop.permute.xlu0 %882 }
 0x33b   :  { %v8471_v34 = vpop.eup %8470 }
 0x33c   :  { %v553_v35 = vmul.f32 %v8471_v34, %v8455_v46 }
 0x33e   :  { %7918 = vmatmul.mubr.msk.f32.vlgmr.msra.gmra.mxu1 %vm468_vm2, %v553_v35 }
 0x33f   :  { %v8473_v36 = vpop.eup %8472  ;;  %7926 = vmatpush3.msra.mxu1 %v718_v28  ;;  %7927 = vmatprep.mubr.msk.f32.mxu1 %vm8613_vm1, %v8612_v10 }
 0x340   :  { %7935 = vmatprep.subr.mxu1 %v8612_v10  ;;  %v715_v37 = vmul.f32 %v8473_v36, %v8457_v48 }
 0x342   :  { %7928 = vmatmul.mubr.msk.f32.vlgmr.msra.gmra.mxu1 %vm468_vm2, %v715_v37 }
 0x343   :  { %7936 = vmatpush3.msra.mxu1 %v883_v38  ;;  %7937 = vmatprep.mubr.msk.f32.mxu1 %vm8613_vm1, %v8612_v10 }
 0x344   :  { %7945 = vmatprep.subr.mxu1 %v8612_v10 }
 0x362   :  { %v879_v40 = vpop.xlane.xlu1 %878 }
 0x363   :  { %8474 = vrcp.f32 %v879_v40 }
 0x366   :  { %v1044_v41 = vpop.xlane.xlu0 %1043  ;;  %v1392_v46 = vpop.permute.xlu1 %1391 }
 0x367   :  { %8476 = vrcp.f32 %v1044_v41 }
 0x36a   :  { %v1387_v47 = vpop.xlane.xlu0 %1386 }
 0x36e   :  { %v1718_v50 = vpop.xlane.xlu0 %1717 }
 0x370   :  { %v8475_v42 = vpop.eup %8474 }
 0x371   :  { %v881_v43 = vmul.f32 %v8475_v42, %v8459_v12  ;;  %v9018_v42 = vadd.f32 %v8889_v54, %v8896_v56  ;;  %v7403_v54 = vld [vmem:[%s9952_s12 + $0x1] ss:$0 sm:$0xff] }
 0x372   :  { %v1557_v59 = vpop.permute.xlu0 %1556 }
 0x373   :  { %7938 = vmatmul.mubr.msk.f32.vlgmr.msra.gmra.mxu1 %vm468_vm2, %v881_v43 }
 0x374   :  { %v8477_v44 = vpop.eup %8476  ;;  %7946 = vmatpush3.msra.mxu1 %v1048_v39  ;;  %7947 = vmatprep.mubr.msk.f32.mxu1 %vm8613_vm1, %v8612_v10 }
 0x375   :  { %7955 = vmatprep.subr.mxu1 %v8612_v10  ;;  %v1046_v45 = vmul.f32 %v8477_v44, %v8461_v16  ;;  %v9029_v44 = vadd.f32 %v8896_v56, %v8891_v55 }
 0x377   :  { %7948 = vmatmul.mubr.msk.f32.vlgmr.msra.gmra.mxu1 %vm468_vm2, %v1046_v45 }
 0x378   :  { %7956 = vmatpush3.msra.mxu1 %v8918_v13  ;;  %7957 = vmatprep.mubr.msk.f32.mxu1 %vm8613_vm1, %v8612_v10 }
 0x379   :  { %7965 = vmatprep.subr.mxu1 %v8612_v10 }
 0x397   :  { %v1225_v48 = vpop.xlane.xlu1 %1224 }
 0x398   :  { %8478 = vrcp.f32 %v1225_v48 }
 0x399   :  { %8480 = vrcp.f32 %v1387_v47 }
 0x39b   :  { %v1553_v49 = vpop.xlane.xlu1 %1552 }
 0x39c   :  { %8482 = vrcp.f32 %v1553_v49 }
 0x39d   :  { %8484 = vrcp.f32 %v1718_v50 }
 0x39f   :  { %v1722_v0 = vpop.permute.xlu1 %1721 }
 0x3a5   :  { %v8479_v51 = vpop.eup %8478 }
 0x3a6   :  { %v1227_v52 = vmul.f32 %v8479_v51, %v8467_v27  ;;  %v8481_v53 = vpop.eup %8480 }
 0x3a7   :  { %v1389_v13 = vmul.f32 %v8481_v53, %v8939_v17 }
 0x3a8   :  { %7958 = vmatmul.mubr.msk.f32.vlgmr.msra.gmra.mxu1 %vm468_vm2, %v1227_v52 }
 0x3a9   :  { %7966 = vmatpush3.msra.mxu1 %v1392_v46  ;;  %7967 = vmatprep.mubr.msk.f32.mxu1 %vm8613_vm1, %v8612_v10  ;;  %v8483_v57 = vpop.eup %8482 }
 0x3aa   :  { %7975 = vmatprep.subr.mxu1 %v8612_v10  ;;  %v1555_v60 = vmul.f32 %v8483_v57, %v8953_v30  ;;  %v8485_v62 = vpop.eup %8484 }
 0x3ab   :  { %v1720_v2 = vmul.f32 %v8485_v62, %v8943_v19  ;;  %v7378_v19 = vld [vmem:[%s9950_s6 + $0x38] sm:$0xff] }
 0x3ac   :  { %7968 = vmatmul.mubr.msk.f32.vlgmr.msra.gmra.mxu1 %vm468_vm2, %v1389_v13  ;;  %7990 = vmatprep.subr.mxu0 %v7378_v19 }
 0x3ad   :  { %7976 = vmatpush3.msra.mxu1 %v1557_v59  ;;  %7977 = vmatprep.mubr.msk.f32.mxu1 %vm8613_vm1, %v8612_v10 }
 0x3ae   :  { %7985 = vmatprep.subr.mxu1 %v8612_v10  ;;  %7991 = vmatpush3.msra.mxu0 %v7378_v19 }
 0x3af   :  { %7992 = vmatprep.subr.mxu0 %v7377_v20 }
 0x3b0   :  { %7978 = vmatmul.mubr.msk.f32.vlgmr.msra.gmra.mxu1 %vm468_vm2, %v1555_v60  ;;  %7993 = vmatpush3.msra.mxu0 %v7377_v20  ;;  %v7406_v20 = vld [vmem:[%s9952_s12 + $0x5] ss:$0 sm:$0xff] }
 0x3b1   :  { %7986 = vmatpush3.msra.mxu1 %v1722_v0  ;;  %7987 = vmatprep.mubr.msk.f32.mxu1 %vm8613_vm1, %v8612_v10 }
 0x3b2   :  { %7994 = vmatprep.subr.mxu0 %v7376_v21 }
 0x3b3   :  { %7995 = vmatpush3.msra.mxu0 %v7376_v21 }
 0x3b4   :  { %7988 = vmatmul.mubr.msk.f32.vlgmr.msra.gmra.mxu1 %vm468_vm2, %v1720_v2  ;;  %7996 = vmatprep.subr.mxu0 %v7375_v22  ;;  %v7410_v2 = vld [vmem:[%s9950_s6 + $0x50] sm:$0xff] }
 0x3b5   :  { %7997 = vmatpush3.msra.mxu0 %v7375_v22  ;;  %v7407_v22 = vld [vmem:[%s9952_s12 + $0x6] ss:$0 sm:$0xff] }
 0x3b6   :  { %8012 = vmatprep.subr.mxu0 %v8612_v10 }
 0x3fe   :  { %v623_v8 = vpop.f32.mrf.mxu1 }
 0x400   :  { %v7919_v9 = vpop.f32.mrf.mxu1 }
 0x401   :  { %v7408_v9 = vld [vmem:[%s9950_s6 + $0x40] sm:$0xff] }
 0x402   :  { %v789_v12 = vpop.f32.mrf.mxu1 }
 0x403   :  { %1124 = vrot.lane.b32.xlu0 %v789_v12, %s8621_s8 }
 0x404   :  { %v7929_v14 = vpop.f32.mrf.mxu1 }
 0x433   :  { %v954_v16 = vpop.f32.mrf.mxu1 }
 0x434   :  { %1128 = vrot.lane.b32.xlu1 %v954_v16, %s8622_s22 }
 0x435   :  { %v7939_v15 = vpop.f32.mrf.mxu1 }
 0x437   :  { %v1119_v17 = vpop.f32.mrf.mxu1 }
 0x438   :  { %1132 = vrot.lane.b32.xlu1 %v1119_v17, %s8623_s23 }
 0x439   :  { %v7949_v18 = vpop.f32.mrf.mxu1 }
 0x468   :  { %v1297_v23 = vpop.f32.mrf.mxu1 }
 0x46a   :  { %v7959_v24 = vpop.f32.mrf.mxu1 }
 0x46c   :  { %v1463_v25 = vpop.f32.mrf.mxu1 }
 0x46d   :  { %1798 = vrot.lane.b32.xlu0 %v1463_v25, %s8621_s8 }
 0x46e   :  { %v7969_v26 = vpop.f32.mrf.mxu1 }
 0x470   :  { %v1628_v27 = vpop.f32.mrf.mxu1 }
 0x471   :  { %1802 = vrot.lane.b32.xlu0 %v1628_v27, %s8622_s22 }
 0x472   :  { %v7979_v29 = vpop.f32.mrf.mxu1 }
 0x474   :  { %v1793_v30 = vpop.f32.mrf.mxu1 }
 0x475   :  { %1806 = vrot.lane.b32.xlu1 %v1793_v30, %s8623_s23  ;;  %v1125_v28 = vpop.permute.xlu0 %1124 }
 0x476   :  { %v7989_v31 = vpop.f32.mrf.mxu1  ;;  %v1135_v33 = vsel %vm468_vm2, %v623_v8, %v1125_v28  ;;  %v7409_v8 = vld [vmem:[%s9950_s6 + $0x48] sm:$0xff] }
 0x4a6   :  { %v1129_v32 = vpop.permute.xlu1 %1128 }
 0x4a7   :  { %v1137_v34 = vsel %vm1136_vm3, %v1135_v33, %v1129_v32 }
 0x4aa   :  { %v1133_v35 = vpop.permute.xlu1 %1132 }
 0x4ab   :  { %v1139_v36 = vsel %vm1138_vm4, %v1137_v34, %v1133_v35 }
 0x4ac   :  { %7998 = vmatprep.mubr.msk.f32.mxu0 %vm72_vm0, %v1139_v36 }
 0x4df   :  { %v1799_v37 = vpop.permute.xlu0 %1798 }
 0x4e0   :  { %v1809_v39 = vsel %vm468_vm2, %v1297_v23, %v1799_v37 }
 0x4e3   :  { %v1803_v38 = vpop.permute.xlu0 %1802 }
 0x4e4   :  { %v1810_v40 = vsel %vm1136_vm3, %v1809_v39, %v1803_v38 }
 0x4e7   :  { %v1807_v41 = vpop.permute.xlu1 %1806 }
 0x4e8   :  { %v1811_v43 = vsel %vm1138_vm4, %v1810_v40, %v1807_v41 }
 0x4e9   :  { %7999 = vmatmul.mubr.msk.f32.vlgmr.msra.gmra.mxu0 %vm72_vm0, %v1811_v43 }
 0x4ea   :  { %8013 = vmatpush3.xpose.msk.msra.mxu0 %vm468_vm2, %v9018_v42  ;;  %8016 = vmatprep.mubr.msk.f32.mxu0 %vm8613_vm1, %v8612_v10 }
 0x4eb   :  { %8014 = vmatprep.subr.mxu0 %v8612_v10 }
 0x4ee   :  { %8015 = vmatpush3.xpose.msk.msra.mxu0 %vm468_vm2, %v9029_v44 }
 0x4ef   :  { %8033 = vmatprep.subr.mxu0 %v8612_v10 }
 0x5a9   :  { %v8000_v45 = vpop.f32.mrf.mxu0 }
 0x5aa   :  { %v1894_v46 = vadd.f32 %v8000_v45, %v7403_v54 }
 0x5ab   :  { %v1888_v47 = vpop.f32.mrf.mxu0 }
 0x5ac   :  { %v1889_v48 = vadd.f32 %v7403_v54, %v1888_v47  ;;  %v1898_v49 = vadd.f32 %v1894_v46, %v8716_v4 }
 0x5ae   :  { %v1904_v50 = vsel %vm72_vm0, %v1898_v49, 0.0  ;;  %v1897_v55 = vadd.f32 %v1889_v48, %v8711_v3  ;;  %v7411_v3 = vld [vmem:[%s9950_s6 + $0x58] sm:$0xff] }
 0x5af   :  { %1905 = vadd.xlane.f32.xlu1 %v1904_v50  ;;  %8001 = vmatprep.subr.mxu1 %v7411_v3 }
 0x5b0   :  { %v1901_v56 = vsel %vm72_vm0, %v1897_v55, 0.0  ;;  %8002 = vmatpush3.msra.mxu1 %v7411_v3 }
 0x5b1   :  { %1902 = vadd.xlane.f32.xlu0 %v1901_v56  ;;  %8003 = vmatprep.subr.mxu1 %v7410_v2 }
 0x5b2   :  { %8004 = vmatpush3.msra.mxu1 %v7410_v2 }
 0x5b3   :  { %8005 = vmatprep.subr.mxu1 %v7409_v8 }
 0x5b4   :  { %8006 = vmatpush3.msra.mxu1 %v7409_v8 }
 0x5b5   :  { %8007 = vmatprep.subr.mxu1 %v7408_v9 }
 0x5b6   :  { %8008 = vmatpush3.msra.mxu1 %v7408_v9 }
 0x5b7   :  { %8019 = vmatprep.subr.mxu1 %v8612_v10 }
 0x638   :  { %v1906_v51 = vpop.xlane.xlu1 %1905 }
 0x639   :  { %v1909_v52 = vmul.f32 0.03125, %v1906_v51 }
 0x63a   :  { %v1903_v53 = vpop.xlane.xlu0 %1902 }
 0x63b   :  { %v1908_v13 = vmul.f32 0.03125, %v1903_v53  ;;  %v1911_v57 = vsub.f32 %v1898_v49, %v1909_v52 }
 0x63d   :  { %v1910_v59 = vsub.f32 %v1897_v55, %v1908_v13  ;;  %v1913_v0 = vmul.f32 %v1911_v57, %v1911_v57 }
 0x63f   :  { %v1912_v60 = vmul.f32 %v1910_v59, %v1910_v59  ;;  %v1917_v4 = vsel %vm72_vm0, %v1913_v0, 0.0 }
 0x641   :  { %v1914_v62 = vsel %vm72_vm0, %v1912_v60, 0.0 }
 0x642   :  { %1915 = vadd.xlane.f32.xlu0 %v1914_v62 }
 0x646   :  { %1918 = vadd.xlane.f32.xlu0 %v1917_v4 }
 0x6cb   :  { %v1916_v12 = vpop.xlane.xlu0 %1915 }
 0x6cc   :  { %v1920_v14 = vmul.f32 0.03125, %v1916_v12 }
 0x6ce   :  { %v1922_v16 = vadd.f32 1e-05, %v1920_v14 }
 0x6cf   :  { %v1919_v15 = vpop.xlane.xlu0 %1918 }
 0x6d0   :  { %8486 = vrsqrt.f32 %v1922_v16  ;;  %v1921_v17 = vmul.f32 0.03125, %v1919_v15 }
 0x6d2   :  { %v1923_v18 = vadd.f32 1e-05, %v1921_v17 }
 0x6d4   :  { %8488 = vrsqrt.f32 %v1923_v18 }
 0x6dd   :  { %v8487_v19 = vpop.eup %8486 }
 0x6de   :  { %v1926_v21 = vmul.f32 %v8487_v19, %v1910_v59 }
 0x6e0   :  { %v1932_v23 = vmul.f32 %v7406_v20, %v1926_v21 }
 0x6e1   :  { %v8489_v24 = vpop.eup %8488 }
 0x6e2   :  { %v1927_v25 = vmul.f32 %v8489_v24, %v1911_v57  ;;  %v9062_v26 = vadd.f32 %v7407_v22, %v1932_v23 }
 0x6e4   :  { %v1933_v27 = vmul.f32 %v7406_v20, %v1927_v25  ;;  %v1940_v29 = vadd.f32 %v9062_v26, %v8721_v5  ;;  %v7412_v5 = vld [vmem:[%s9952_s12 + $0x2] ss:$0 sm:$0xff] }
 0x6e6   :  { %v9066_v30 = vadd.f32 %v7407_v22, %v1933_v27  ;;  %8009 = vmatprep.mubr.msk.f32.mxu1 %vm72_vm0, %v1940_v29 }
 0x6e8   :  { %v1941_v31 = vadd.f32 %v9066_v30, %v8726_v6 }
 0x6ea   :  { %8010 = vmatmul.mubr.msk.f32.vlgmr.msra.gmra.mxu1 %vm72_vm0, %v1941_v31 }
 0x6eb   :  { %8020 = vmatpush3.msra.mxu1 %v8907_v63  ;;  %8023 = vmatprep.mubr.msk.f32.mxu1 %vm8613_vm1, %v8612_v10 }
 0x6ec   :  { %8021 = vmatprep.subr.mxu1 %v8612_v10 }
 0x6ed   :  { %8022 = vmatpush3.msra.mxu1 %v8909_v1 }
 0x6ee   :  { %8026 = vmatprep.subr.mxu1 %v8612_v10 }
 0x7aa   :  { %v8011_v28 = vpop.f32.mrf.mxu1 }
 0x7ab   :  { %v9081_v32 = vadd.f32 %v8011_v28, %v7412_v5 }
 0x7ac   :  { %v2024_v6 = vpop.f32.mrf.mxu1 }
 0x7ad   :  { %v9083_v33 = vadd.f32 %v7412_v5, %v2024_v6 }
 0x7af   :  { %8017 = vmatmul.mubr.msk.f32.vlgmr.msra.gmra.mxu0 %vm468_vm2, %v9083_v33 }
 0x7b0   :  { %8037 = vmatprep.mubr.msk.f32.mxu0 %vm8613_vm1, %v8612_v10 }
 0x86f   :  { %v2114_v34 = vpop.f32.mrf.mxu0 }
 0x870   :  { %v2118_v35 = vsel %vm1136_vm3, %v2114_v34, -inf }
 0x871   :  { %2119 = vmax.xlane.f32.xlu1 %v2118_v35  ;;  %v8018_v36 = vpop.f32.mrf.mxu0 }
 0x882   :  { %2206 = vrot.lane.b32.xlu1 %v9018_v42, %s8614_s30 }
 0x886   :  { %2202 = vrot.lane.b32.xlu1 %v9083_v33, %s8614_s30 }
 0x8fa   :  { %v2120_v37 = vpop.xlane.xlu1 %2119 }
 0x8fb   :  { %v2121_v38 = vsub.f32 %v2114_v34, %v2120_v37 }
 0x8fd   :  { %v2122_v39 = vmul.f32 1.442695, %v2121_v38 }
 0x8fe   :  { %v2207_v46 = vpop.permute.xlu1 %2206 }
 0x8ff   :  { %8490 = vpow2.f32 %v2122_v39 }
 0x902   :  { %v2203_v48 = vpop.permute.xlu1 %2202 }
 0x90c   :  { %v8491_v40 = vpop.eup %8490 }
 0x90d   :  { %v2124_v41 = vsel %vm1136_vm3, %v8491_v40, 0.0 }
 0x90e   :  { %2125 = vadd.xlane.f32.xlu0 %v2124_v41 }
 0x924   :  { %2204 = vrot.lane.b32.xlu0 %v9029_v44, %s8614_s30 }
 0x997   :  { %v2126_v43 = vpop.xlane.xlu0 %2125 }
 0x998   :  { %8492 = vrcp.f32 %v2126_v43 }
 0x99b   :  { %v2205_v47 = vpop.permute.xlu0 %2204 }
 0x9a5   :  { %v8493_v54 = vpop.eup %8492 }
 0x9a6   :  { %v2128_v45 = vmul.f32 %v8493_v54, %v8491_v40 }
 0x9a8   :  { %8024 = vmatmul.mubr.msk.f32.vlgmr.msra.gmra.mxu1 %vm1136_vm3, %v2128_v45 }
 0x9a9   :  { %8027 = vmatpush3.xpose.msk.msra.mxu1 %vm468_vm2, %v2207_v46  ;;  %8030 = vmatprep.mubr.msk.f32.mxu1 %vm8613_vm1, %v8612_v10 }
 0x9aa   :  { %8028 = vmatprep.subr.mxu1 %v8612_v10 }
 0x9ad   :  { %8029 = vmatpush3.xpose.msk.msra.mxu1 %vm468_vm2, %v2205_v47 }
 0x9ae   :  { %8047 = vmatprep.subr.mxu1 %v8612_v10 }
 0x9b0   :  { %8031 = vmatmul.mubr.msk.f32.vlgmr.msra.gmra.mxu1 %vm468_vm2, %v2203_v48 }
 0x9b1   :  { %8051 = vmatprep.mubr.msk.f32.mxu1 %vm8613_vm1, %v8612_v10 }
 0xa68   :  { %v9107_v49 = vpop.f32.mrf.mxu1 }
 0xa6a   :  { %v8025_v50 = vpop.f32.mrf.mxu1 }
 0xa70   :  { %v2280_v55 = vpop.f32.mrf.mxu1 }
 0xa71   :  { %v2284_v56 = vsel %vm1136_vm3, %v2280_v55, -inf }
 0xa72   :  { %2285 = vmax.xlane.f32.xlu1 %v2284_v56  ;;  %v8032_v51 = vpop.f32.mrf.mxu1 }
 0xa83   :  { %2297 = vrot.lane.b32.xlu1 %v8909_v1, %s8614_s30 }
 0xa87   :  { %2380 = vrot.lane.b32.xlu1 %v9018_v42, %s8619_s19 }
 0xa8b   :  { %2376 = vrot.lane.b32.xlu1 %v9083_v33, %s8619_s19 }
 0xa8f   :  { %2469 = vrot.lane.b32.xlu1 %v8909_v1, %s8619_s19 }
 0xafb   :  { %v2286_v52 = vpop.xlane.xlu1 %2285 }
 0xafc   :  { %v2287_v53 = vsub.f32 %v2280_v55, %v2286_v52 }
 0xafe   :  { %v2288_v13 = vmul.f32 1.442695, %v2287_v53 }
 0xaff   :  { %v2298_v0 = vpop.permute.xlu1 %2297 }
 0xb00   :  { %8494 = vpow2.f32 %v2288_v13 }
 0xb03   :  { %v2381_v2 = vpop.permute.xlu1 %2380 }
 0xb07   :  { %v2377_v9 = vpop.permute.xlu1 %2376 }
 0xb0b   :  { %v2470_v22 = vpop.permute.xlu1 %2469 }
 0xb0d   :  { %v8495_v57 = vpop.eup %8494 }
 0xb0e   :  { %v2290_v59 = vsel %vm1136_vm3, %v8495_v57, 0.0 }
 0xb0f   :  { %2291 = vadd.xlane.f32.xlu0 %v2290_v59 }
 0xb25   :  { %2299 = vrot.lane.b32.xlu0 %v8907_v63, %s8614_s30 }
 0xb29   :  { %2378 = vrot.lane.b32.xlu0 %v9029_v44, %s8619_s19 }
 0xb98   :  { %v2292_v60 = vpop.xlane.xlu0 %2291 }
 0xb99   :  { %8496 = vrcp.f32 %v2292_v60 }
 0xb9c   :  { %v2300_v62 = vpop.permute.xlu0 %2299 }
 0xb9d   :  { %8034 = vmatpush3.msra.mxu0 %v2300_v62 }
 0xb9e   :  { %8035 = vmatprep.subr.mxu0 %v8612_v10 }
 0xb9f   :  { %8036 = vmatpush3.msra.mxu0 %v2298_v0 }
 0xba0   :  { %8040 = vmatprep.subr.mxu0 %v8612_v10  ;;  %v2379_v8 = vpop.permute.xlu0 %2378 }
 0xba6   :  { %v8497_v4 = vpop.eup %8496 }
 0xba7   :  { %v2294_v3 = vmul.f32 %v8497_v4, %v8495_v57 }
 0xba9   :  { %8038 = vmatmul.mubr.msk.f32.vlgmr.msra.gmra.mxu0 %vm1136_vm3, %v2294_v3 }
 0xbaa   :  { %8041 = vmatpush3.xpose.msk.msra.mxu0 %vm468_vm2, %v2381_v2  ;;  %8044 = vmatprep.mubr.msk.f32.mxu0 %vm8613_vm1, %v8612_v10 }
 0xbab   :  { %8042 = vmatprep.subr.mxu0 %v8612_v10 }
 0xbae   :  { %8043 = vmatpush3.xpose.msk.msra.mxu0 %vm468_vm2, %v2379_v8 }
 0xbaf   :  { %8061 = vmatprep.subr.mxu0 %v8612_v10 }
 0xbb1   :  { %8045 = vmatmul.mubr.msk.f32.vlgmr.msra.gmra.mxu0 %vm468_vm2, %v2377_v9 }
 0xbb2   :  { %8065 = vmatprep.mubr.msk.f32.mxu0 %vm8613_vm1, %v8612_v10 }
 0xc69   :  { %v9135_v12 = vpop.f32.mrf.mxu0 }
 0xc6b   :  { %v8039_v14 = vpop.f32.mrf.mxu0 }
 0xc71   :  { %v2454_v16 = vpop.f32.mrf.mxu0 }
 0xc72   :  { %v2458_v15 = vsel %vm1136_vm3, %v2454_v16, -inf }
 0xc73   :  { %2459 = vmax.xlane.f32.xlu0 %v2458_v15  ;;  %v8046_v17 = vpop.f32.mrf.mxu0 }
 0xc89   :  { %2471 = vrot.lane.b32.xlu0 %v8907_v63, %s8619_s19 }
 0xc8d   :  { %2552 = vrot.lane.b32.xlu0 %v9018_v42, %s8620_s20 }
 0xc91   :  { %2548 = vrot.lane.b32.xlu0 %v9083_v33, %s8620_s20 }
 0xcfc   :  { %v2460_v18 = vpop.xlane.xlu0 %2459 }
 0xcfd   :  { %v2461_v19 = vsub.f32 %v2454_v16, %v2460_v18 }
 0xcff   :  { %v2462_v20 = vmul.f32 1.442695, %v2461_v19 }
 0xd00   :  { %v2472_v21 = vpop.permute.xlu0 %2471 }
 0xd01   :  { %8498 = vpow2.f32 %v2462_v20  ;;  %8048 = vmatpush3.msra.mxu1 %v2472_v21 }
 0xd02   :  { %8049 = vmatprep.subr.mxu1 %v8612_v10 }
 0xd03   :  { %8050 = vmatpush3.msra.mxu1 %v2470_v22 }
 0xd04   :  { %8054 = vmatprep.subr.mxu1 %v8612_v10  ;;  %v2553_v31 = vpop.permute.xlu0 %2552 }
 0xd08   :  { %v2549_v28 = vpop.permute.xlu0 %2548 }
 0xd0e   :  { %v8499_v23 = vpop.eup %8498 }
 0xd0f   :  { %v2464_v24 = vsel %vm1136_vm3, %v8499_v23, 0.0 }
 0xd10   :  { %2465 = vadd.xlane.f32.xlu1 %v2464_v24 }
 0xd21   :  { %2550 = vrot.lane.b32.xlu1 %v9029_v44, %s8620_s20 }
 0xd99   :  { %v2466_v25 = vpop.xlane.xlu1 %2465 }
 0xd9a   :  { %8500 = vrcp.f32 %v2466_v25 }
 0xd9d   :  { %v2551_v5 = vpop.permute.xlu1 %2550 }
 0xda7   :  { %v8501_v27 = vpop.eup %8500 }
 0xda8   :  { %v2468_v29 = vmul.f32 %v8501_v27, %v8499_v23 }
 0xdaa   :  { %8052 = vmatmul.mubr.msk.f32.vlgmr.msra.gmra.mxu1 %vm1136_vm3, %v2468_v29 }
 0xdab   :  { %8055 = vmatpush3.xpose.msk.msra.mxu1 %vm468_vm2, %v2553_v31  ;;  %8058 = vmatprep.mubr.msk.f32.mxu1 %vm8613_vm1, %v8612_v10 }
 0xdac   :  { %8056 = vmatprep.subr.mxu1 %v8612_v10 }
 0xdaf   :  { %8057 = vmatpush3.xpose.msk.msra.mxu1 %vm468_vm2, %v2551_v5 }
 0xdb0   :  { %8075 = vmatprep.subr.mxu1 %v8612_v10 }
 0xdb2   :  { %8059 = vmatmul.mubr.msk.f32.vlgmr.msra.gmra.mxu1 %vm468_vm2, %v2549_v28 }
 0xdb3   :  { %8076 = vmatpush3.msra.mxu1 %v8911_v7  ;;  %8079 = vmatprep.mubr.msk.f32.mxu1 %vm8613_vm1, %v8612_v10 }
 0xdb4   :  { %8077 = vmatprep.subr.mxu1 %v8612_v10 }
 0xdb5   :  { %8078 = vmatpush3.msra.mxu1 %v8916_v11 }
 0xdb6   :  { %8082 = vmatprep.subr.mxu1 %v8612_v10 }
 0xe6a   :  { %v9163_v6 = vpop.f32.mrf.mxu1 }
 0xe6c   :  { %v8053_v33 = vpop.f32.mrf.mxu1 }
 0xe72   :  { %v2626_v34 = vpop.f32.mrf.mxu1 }
 0xe73   :  { %v2630_v35 = vsel %vm1136_vm3, %v2626_v34, -inf }
 0xe74   :  { %2631 = vmax.xlane.f32.xlu1 %v2630_v35  ;;  %v8060_v36 = vpop.f32.mrf.mxu1 }
 0xe85   :  { %2641 = vrot.lane.b32.xlu1 %v8909_v1, %s8620_s20 }
 0xefd   :  { %v2632_v37 = vpop.xlane.xlu1 %2631 }
 0xefe   :  { %v2633_v38 = vsub.f32 %v2626_v34, %v2632_v37 }
 0xf00   :  { %v2634_v39 = vmul.f32 1.442695, %v2633_v38 }
 0xf01   :  { %v2642_v45 = vpop.permute.xlu1 %2641 }
 0xf02   :  { %8502 = vpow2.f32 %v2634_v39 }
 0xf0f   :  { %v8503_v40 = vpop.eup %8502 }
 0xf10   :  { %v2636_v41 = vsel %vm1136_vm3, %v8503_v40, 0.0 }
 0xf11   :  { %2637 = vadd.xlane.f32.xlu0 %v2636_v41 }
 0xf27   :  { %2643 = vrot.lane.b32.xlu0 %v8907_v63, %s8620_s20 }
 0xf9a   :  { %v2638_v43 = vpop.xlane.xlu0 %2637 }
 0xf9b   :  { %8504 = vrcp.f32 %v2638_v43 }
 0xf9e   :  { %v2644_v54 = vpop.permute.xlu0 %2643 }
 0xf9f   :  { %8062 = vmatpush3.msra.mxu0 %v2644_v54 }
 0xfa0   :  { %8063 = vmatprep.subr.mxu0 %v8612_v10 }
 0xfa1   :  { %8064 = vmatpush3.msra.mxu0 %v2642_v45 }
 0xfa2   :  { %8068 = vmatprep.subr.mxu0 %v8612_v10 }
 0xfa8   :  { %v8505_v46 = vpop.eup %8504 }
 0xfa9   :  { %v2640_v47 = vmul.f32 %v8505_v46, %v8503_v40 }
 0xfab   :  { %8066 = vmatmul.mubr.msk.f32.vlgmr.msra.gmra.mxu0 %vm1136_vm3, %v2640_v47 }
 0xfac   :  { %8069 = vmatpush3.xpose.msk.msra.mxu0 %vm468_vm2, %v8899_v58  ;;  %8072 = vmatprep.mubr.msk.f32.mxu0 %vm8613_vm1, %v8612_v10 }
 0xfad   :  { %8070 = vmatprep.subr.mxu0 %v8612_v10 }
 0xfb0   :  { %8071 = vmatpush3.xpose.msk.msra.mxu0 %vm468_vm2, %v8905_v61 }
 0xfb1   :  { %8089 = vmatprep.subr.mxu0 %v8612_v10 }
 0xfb3   :  { %8073 = vmatmul.mubr.msk.f32.vlgmr.msra.gmra.mxu0 %vm468_vm2, %v9081_v32 }
 0xfb4   :  { %8093 = vmatprep.mubr.msk.f32.mxu0 %vm8613_vm1, %v8612_v10 }
0x106b   :  { %v9186_v48 = vpop.f32.mrf.mxu0 }
0x106d   :  { %v8067_v50 = vpop.f32.mrf.mxu0 }
0x1073   :  { %v2810_v55 = vpop.f32.mrf.mxu0 }
0x1074   :  { %v2814_v56 = vsel %vm1136_vm3, %v2810_v55, -inf }
0x1075   :  { %2815 = vmax.xlane.f32.xlu1 %v2814_v56  ;;  %v8074_v51 = vpop.f32.mrf.mxu0 }
0x1086   :  { %2900 = vrot.lane.b32.xlu1 %v8905_v61, %s8614_s30 }
0x108a   :  { %2898 = vrot.lane.b32.xlu1 %v9081_v32, %s8614_s30 }
0x108e   :  { %2993 = vrot.lane.b32.xlu1 %v8916_v11, %s8614_s30 }
0x10fe   :  { %v2816_v52 = vpop.xlane.xlu1 %2815 }
0x10ff   :  { %v2817_v53 = vsub.f32 %v2810_v55, %v2816_v52 }
0x1101   :  { %v2818_v13 = vmul.f32 1.442695, %v2817_v53 }
0x1102   :  { %v2901_v3 = vpop.permute.xlu1 %2900 }
0x1103   :  { %8506 = vpow2.f32 %v2818_v13 }
0x1106   :  { %v2899_v2 = vpop.permute.xlu1 %2898 }
0x110a   :  { %v2994_v21 = vpop.permute.xlu1 %2993 }
0x1110   :  { %v8507_v57 = vpop.eup %8506 }
0x1111   :  { %v2820_v59 = vsel %vm1136_vm3, %v8507_v57, 0.0 }
0x1112   :  { %2821 = vadd.xlane.f32.xlu0 %v2820_v59 }
0x1128   :  { %2902 = vrot.lane.b32.xlu0 %v8899_v58, %s8614_s30 }
0x119b   :  { %v2822_v60 = vpop.xlane.xlu0 %2821 }
0x119c   :  { %8508 = vrcp.f32 %v2822_v60 }
0x119f   :  { %v2903_v4 = vpop.permute.xlu0 %2902 }
0x11a9   :  { %v8509_v62 = vpop.eup %8508 }
0x11aa   :  { %v2824_v0 = vmul.f32 %v8509_v62, %v8507_v57 }
0x11ac   :  { %8080 = vmatmul.mubr.msk.f32.vlgmr.msra.gmra.mxu1 %vm1136_vm3, %v2824_v0 }
0x11ad   :  { %8083 = vmatpush3.xpose.msk.msra.mxu1 %vm468_vm2, %v2903_v4  ;;  %8086 = vmatprep.mubr.msk.f32.mxu1 %vm8613_vm1, %v8612_v10 }
0x11ae   :  { %8084 = vmatprep.subr.mxu1 %v8612_v10 }
0x11b1   :  { %8085 = vmatpush3.xpose.msk.msra.mxu1 %vm468_vm2, %v2901_v3 }
0x11b2   :  { %8103 = vmatprep.subr.mxu1 %v8612_v10 }
0x11b4   :  { %8087 = vmatmul.mubr.msk.f32.vlgmr.msra.gmra.mxu1 %vm468_vm2, %v2899_v2 }
0x11b5   :  { %8107 = vmatprep.mubr.msk.f32.mxu1 %vm8613_vm1, %v8612_v10 }
0x126c   :  { %v9208_v8 = vpop.f32.mrf.mxu1 }
0x126e   :  { %v8081_v9 = vpop.f32.mrf.mxu1 }
0x1274   :  { %v2976_v14 = vpop.f32.mrf.mxu1 }
0x1275   :  { %v2980_v16 = vsel %vm1136_vm3, %v2976_v14, -inf }
0x1276   :  { %2981 = vmax.xlane.f32.xlu0 %v2980_v16  ;;  %v8088_v15 = vpop.f32.mrf.mxu1 }
0x128c   :  { %2995 = vrot.lane.b32.xlu0 %v8911_v7, %s8614_s30 }
0x1290   :  { %3076 = vrot.lane.b32.xlu0 %v8899_v58, %s8619_s19 }
0x1294   :  { %3072 = vrot.lane.b32.xlu0 %v9081_v32, %s8619_s19 }
0x12ff   :  { %v2982_v17 = vpop.xlane.xlu0 %2981 }
0x1300   :  { %v2983_v18 = vsub.f32 %v2976_v14, %v2982_v17 }
0x1302   :  { %v2984_v19 = vmul.f32 1.442695, %v2983_v18 }
0x1303   :  { %v2996_v20 = vpop.permute.xlu0 %2995 }
0x1304   :  { %8510 = vpow2.f32 %v2984_v19  ;;  %8090 = vmatpush3.msra.mxu0 %v2996_v20  ;;  %v7415_v20 = vld [vmem:[%s9950_s6 + $0x60] sm:$0xff] }
0x1305   :  { %8091 = vmatprep.subr.mxu0 %v8612_v10 }
0x1306   :  { %8092 = vmatpush3.msra.mxu0 %v2994_v21 }
0x1307   :  { %8096 = vmatprep.subr.mxu0 %v8612_v10  ;;  %v3077_v29 = vpop.permute.xlu0 %3076 }
0x130b   :  { %v3073_v5 = vpop.permute.xlu0 %3072 }
0x1311   :  { %v8511_v22 = vpop.eup %8510 }
0x1312   :  { %v2986_v23 = vsel %vm1136_vm3, %v8511_v22, 0.0 }
0x1313   :  { %2987 = vadd.xlane.f32.xlu1 %v2986_v23 }
0x1324   :  { %3074 = vrot.lane.b32.xlu1 %v8905_v61, %s8619_s19 }
0x139c   :  { %v2988_v24 = vpop.xlane.xlu1 %2987 }
0x139d   :  { %8512 = vrcp.f32 %v2988_v24 }
0x13a0   :  { %v3075_v31 = vpop.permute.xlu1 %3074 }
0x13aa   :  { %v8513_v25 = vpop.eup %8512 }
0x13ab   :  { %v2990_v27 = vmul.f32 %v8513_v25, %v8511_v22 }
0x13ad   :  { %8094 = vmatmul.mubr.msk.f32.vlgmr.msra.gmra.mxu0 %vm1136_vm3, %v2990_v27 }
0x13ae   :  { %8097 = vmatpush3.xpose.msk.msra.mxu0 %vm468_vm2, %v3077_v29  ;;  %8100 = vmatprep.mubr.msk.f32.mxu0 %vm8613_vm1, %v8612_v10 }
0x13af   :  { %8098 = vmatprep.subr.mxu0 %v8612_v10 }
0x13b2   :  { %8099 = vmatpush3.xpose.msk.msra.mxu0 %vm468_vm2, %v3075_v31 }
0x13b3   :  { %8117 = vmatprep.subr.mxu0 %v8612_v10 }
0x13b5   :  { %8101 = vmatmul.mubr.msk.f32.vlgmr.msra.gmra.mxu0 %vm468_vm2, %v3073_v5  ;;  %v7451_v5 = vld [vmem:[%s9952_s12 + $0x3] ss:$0 sm:$0xff] }
0x13b6   :  { %8121 = vmatprep.mubr.msk.f32.mxu0 %vm8613_vm1, %v8612_v10 }
0x146d   :  { %v3068_v28 = vpop.f32.mrf.mxu0 }
0x146f   :  { %v8095_v33 = vpop.f32.mrf.mxu0 }
0x1475   :  { %v3150_v34 = vpop.f32.mrf.mxu0 }
0x1476   :  { %v3154_v35 = vsel %vm1136_vm3, %v3150_v34, -inf }
0x1477   :  { %3155 = vmax.xlane.f32.xlu1 %v3154_v35  ;;  %v8102_v36 = vpop.f32.mrf.mxu0 }
0x1488   :  { %3165 = vrot.lane.b32.xlu1 %v8916_v11, %s8619_s19 }
0x148c   :  { %3248 = vrot.lane.b32.xlu1 %v8899_v58, %s8620_s20 }
0x1490   :  { %3244 = vrot.lane.b32.xlu1 %v9081_v32, %s8620_s20 }
0x1500   :  { %v3156_v37 = vpop.xlane.xlu1 %3155 }
0x1501   :  { %v3157_v38 = vsub.f32 %v3150_v34, %v3156_v37 }
0x1503   :  { %v3158_v39 = vmul.f32 1.442695, %v3157_v38 }
0x1504   :  { %v3166_v45 = vpop.permute.xlu1 %3165 }
0x1505   :  { %8514 = vpow2.f32 %v3158_v39 }
0x1508   :  { %v3249_v47 = vpop.permute.xlu1 %3248 }
0x150c   :  { %v3245_v55 = vpop.permute.xlu1 %3244 }
0x1512   :  { %v8515_v40 = vpop.eup %8514 }
0x1513   :  { %v3160_v41 = vsel %vm1136_vm3, %v8515_v40, 0.0 }
0x1514   :  { %3161 = vadd.xlane.f32.xlu0 %v3160_v41 }
0x152a   :  { %3167 = vrot.lane.b32.xlu0 %v8911_v7, %s8619_s19 }
0x152e   :  { %3246 = vrot.lane.b32.xlu0 %v8905_v61, %s8620_s20 }
0x159d   :  { %v3162_v43 = vpop.xlane.xlu0 %3161 }
0x159e   :  { %8516 = vrcp.f32 %v3162_v43 }
0x15a1   :  { %v3168_v54 = vpop.permute.xlu0 %3167 }
0x15a2   :  { %8104 = vmatpush3.msra.mxu1 %v3168_v54 }
0x15a3   :  { %8105 = vmatprep.subr.mxu1 %v8612_v10 }
0x15a4   :  { %8106 = vmatpush3.msra.mxu1 %v3166_v45 }
0x15a5   :  { %8110 = vmatprep.subr.mxu1 %v8612_v10  ;;  %v3247_v50 = vpop.permute.xlu0 %3246 }
0x15ab   :  { %v8517_v32 = vpop.eup %8516 }
0x15ac   :  { %v3164_v46 = vmul.f32 %v8517_v32, %v8515_v40 }
0x15ae   :  { %8108 = vmatmul.mubr.msk.f32.vlgmr.msra.gmra.mxu1 %vm1136_vm3, %v3164_v46 }
0x15af   :  { %8111 = vmatpush3.xpose.msk.msra.mxu1 %vm468_vm2, %v3249_v47  ;;  %8114 = vmatprep.mubr.msk.f32.mxu1 %vm8613_vm1, %v8612_v10 }
0x15b0   :  { %8112 = vmatprep.subr.mxu1 %v8612_v10 }
0x15b3   :  { %8113 = vmatpush3.xpose.msk.msra.mxu1 %vm468_vm2, %v3247_v50  ;;  %v3560_v50 = vld [vmem:[%s9953_s9 + $0x10] sm:$0xff] }
0x15b6   :  { %8115 = vmatmul.mubr.msk.f32.vlgmr.msra.gmra.mxu1 %vm468_vm2, %v3245_v55  ;;  %v3559_v55 = vld [vmem:[%s9953_s9 + $0x8] sm:$0xff] }
0x166e   :  { %v3240_v56 = vpop.f32.mrf.mxu1 }
0x1670   :  { %v8109_v51 = vpop.f32.mrf.mxu1 }
0x1671   :  { %v3657_v51 = vld [vmem:[%s9954_s10 + $0x38] sm:$0xff] }
0x1676   :  { %v3322_v52 = vpop.f32.mrf.mxu1 }
0x1677   :  { %v3326_v53 = vsel %vm1136_vm3, %v3322_v52, -inf }
0x1678   :  { %3327 = vmax.xlane.f32.xlu0 %v3326_v53  ;;  %v8116_v13 = vpop.f32.mrf.mxu1  ;;  %v3655_v53 = vld [vmem:[%s9954_s10 + $0x28] sm:$0xff] }
0x1679   :  { %v3654_v13 = vld [vmem:[%s9954_s10 + $0x20] sm:$0xff] }
0x168e   :  { %3339 = vrot.lane.b32.xlu0 %v8911_v7, %s8620_s20 }
0x1692   :  { %2721 = vrot.lane.b32.xlu0 %v9135_v12, %s8621_s8 }
0x1696   :  { %3417 = vrot.lane.b32.xlu0 %v3068_v28, %s8621_s8 }
0x169a   :  { %3421 = vrot.lane.b32.xlu0 %v3240_v56, %s8622_s22  ;;  %v3558_v56 = vld [vmem:[%s9953_s9] sm:$0xff] }
0x1701   :  { %v3328_v57 = vpop.xlane.xlu0 %3327 }
0x1702   :  { %v3329_v59 = vsub.f32 %v3322_v52, %v3328_v57  ;;  %v3656_v52 = vld [vmem:[%s9954_s10 + $0x30] sm:$0xff] }
0x1704   :  { %v3330_v60 = vmul.f32 1.442695, %v3329_v59 }
0x1705   :  { %v3340_v62 = vpop.permute.xlu0 %3339 }
0x1706   :  { %8518 = vpow2.f32 %v3330_v60  ;;  %8118 = vmatpush3.msra.mxu0 %v3340_v62 }
0x1707   :  { %8119 = vmatprep.subr.mxu0 %v8612_v10 }
0x1709   :  { %v2722_v9 = vpop.permute.xlu0 %2721 }
0x170a   :  { %v2732_v15 = vsel %vm468_vm2, %v9107_v49, %v2722_v9  ;;  %v7416_v49 = vld [vmem:[%s9950_s6 + $0x68] sm:$0xff] }
0x170b   :  { %v7455_v9 = vld [vmem:[%s9952_s12 + $0x8] ss:$0 sm:$0xff] }
0x170d   :  { %v3418_v23 = vpop.permute.xlu0 %3417 }
0x170e   :  { %v3428_v25 = vsel %vm468_vm2, %v9208_v8, %v3418_v23 }
0x1711   :  { %v3422_v24 = vpop.permute.xlu0 %3421 }
0x1712   :  { %v3429_v27 = vsel %vm1136_vm3, %v3428_v25, %v3422_v24 }
0x1713   :  { %v8519_v0 = vpop.eup %8518 }
0x1714   :  { %v3332_v4 = vsel %vm1136_vm3, %v8519_v0, 0.0 }
0x1715   :  { %3333 = vadd.xlane.f32.xlu1 %v3332_v4 }
0x1726   :  { %3337 = vrot.lane.b32.xlu1 %v8916_v11, %s8620_s20 }
0x172a   :  { %2725 = vrot.lane.b32.xlu1 %v9163_v6, %s8622_s22  ;;  %v7418_v6 = vld [vmem:[%s9950_s6 + $0x78] sm:$0xff] }
0x172e   :  { %2729 = vrot.lane.b32.xlu1 %v9186_v48, %s8623_s23  ;;  %v7417_v48 = vld [vmem:[%s9950_s6 + $0x70] sm:$0xff] }
0x179e   :  { %v3334_v12 = vpop.xlane.xlu1 %3333 }
0x179f   :  { %8520 = vrcp.f32 %v3334_v12 }
0x17a2   :  { %v3338_v3 = vpop.permute.xlu1 %3337 }
0x17a3   :  { %8120 = vmatpush3.msra.mxu0 %v3338_v3  ;;  %v7454_v3 = vld [vmem:[%s9952_s12 + $0x7] ss:$0 sm:$0xff] }
0x17a4   :  { %8124 = vmatprep.subr.mxu0 %v7418_v6 }
0x17a6   :  { %v2726_v2 = vpop.permute.xlu1 %2725 }
0x17a7   :  { %v2733_v18 = vsel %vm1136_vm3, %v2732_v15, %v2726_v2 }
0x17aa   :  { %v2730_v16 = vpop.permute.xlu1 %2729 }
0x17ab   :  { %v2734_v19 = vsel %vm1138_vm4, %v2733_v18, %v2730_v16 }
0x17ac   :  { %v8521_v14 = vpop.eup %8520 }
0x17ad   :  { %v3336_v17 = vmul.f32 %v8521_v14, %v8519_v0 }
0x17af   :  { %8122 = vmatmul.mubr.msk.f32.vlgmr.msra.gmra.mxu0 %vm1136_vm3, %v3336_v17 }
0x17b0   :  { %8132 = vmatprep.mubr.msk.f32.mxu0 %vm72_vm0, %v2734_v19  ;;  %8125 = vmatpush3.msra.mxu0 %v7418_v6  ;;  %v3653_v6 = vld [vmem:[%s9954_s10 + $0x18] sm:$0xff] }
0x17b1   :  { %8126 = vmatprep.subr.mxu0 %v7417_v48 }
0x17b2   :  { %8127 = vmatpush3.msra.mxu0 %v7417_v48  ;;  %v3652_v48 = vld [vmem:[%s9954_s10 + $0x10] sm:$0xff] }
0x17b3   :  { %8128 = vmatprep.subr.mxu0 %v7416_v49 }
0x17b4   :  { %8129 = vmatpush3.msra.mxu0 %v7416_v49  ;;  %v3651_v49 = vld [vmem:[%s9954_s10 + $0x8] sm:$0xff] }
0x17b5   :  { %8130 = vmatprep.subr.mxu0 %v7415_v20 }
0x17b6   :  { %8131 = vmatpush3.msra.mxu0 %v7415_v20  ;;  %v3650_v20 = vld [vmem:[%s9954_s10] sm:$0xff] }
0x17b7   :  { %8146 = vmatprep.subr.mxu0 %v3657_v51 }
0x186f   :  { %v3412_v21 = vpop.f32.mrf.mxu0 }
0x1870   :  { %3425 = vrot.lane.b32.xlu1 %v3412_v21, %s8623_s23  ;;  %v7456_v21 = vld [vmem:[%s9955_s11] ss:$0 sm:$0xff] }
0x1871   :  { %v8123_v22 = vpop.f32.mrf.mxu0 }
0x18e2   :  { %v3426_v29 = vpop.permute.xlu1 %3425 }
0x18e3   :  { %v3430_v31 = vsel %vm1138_vm4, %v3429_v27, %v3426_v29 }
0x18e4   :  { %8133 = vmatmul.mubr.msk.f32.vlgmr.msra.gmra.mxu0 %vm72_vm0, %v3430_v31  ;;  %v7459_v31 = vld [vmem:[%s9952_s12 + $0x4] ss:$0 sm:$0xff] }
0x18e5   :  { %8147 = vmatpush3.msra.mxu0 %v3657_v51 }
0x18e6   :  { %8148 = vmatprep.subr.mxu0 %v3656_v52 }
0x18e7   :  { %8149 = vmatpush3.msra.mxu0 %v3656_v52 }
0x18e8   :  { %8150 = vmatprep.subr.mxu0 %v3655_v53 }
0x18e9   :  { %8151 = vmatpush3.msra.mxu0 %v3655_v53 }
0x18ea   :  { %8152 = vmatprep.subr.mxu0 %v3654_v13 }
0x18eb   :  { %8153 = vmatpush3.msra.mxu0 %v3654_v13 }
0x18ec   :  { %8154 = vmatprep.subr.mxu0 %v3653_v6 }
0x18ed   :  { %8155 = vmatpush3.msra.mxu0 %v3653_v6  ;;  %v7473_v6 = vld [vmem:[%s9950_s6 + $0x90] sm:$0xff] }
0x18ee   :  { %8156 = vmatprep.subr.mxu0 %v3652_v48 }
0x18ef   :  { %8157 = vmatpush3.msra.mxu0 %v3652_v48  ;;  %v7472_v48 = vld [vmem:[%s9950_s6 + $0x88] sm:$0xff] }
0x18f0   :  { %8158 = vmatprep.subr.mxu0 %v3651_v49 }
0x18f1   :  { %8159 = vmatpush3.msra.mxu0 %v3651_v49  ;;  %v7471_v49 = vld [vmem:[%s9950_s6 + $0x80] sm:$0xff] }
0x18f2   :  { %8160 = vmatprep.subr.mxu0 %v3650_v20 }
0x18f3   :  { %8161 = vmatpush3.msra.mxu0 %v3650_v20 }
0x18f4   :  { %8187 = vmatprep.subr.mxu0 %v8612_v10 }
0x19a4   :  { %v8134_v28 = vpop.f32.mrf.mxu0 }
0x19a5   :  { %v3513_v33 = vadd.f32 %v8134_v28, %v7451_v5 }
0x19a6   :  { %v3507_v34 = vpop.f32.mrf.mxu0 }
0x19a7   :  { %v3517_v35 = vadd.f32 %v3513_v33, %v9066_v30  ;;  %v3508_v36 = vadd.f32 %v7451_v5, %v3507_v34 }
0x19a9   :  { %v3516_v37 = vadd.f32 %v3508_v36, %v9062_v26  ;;  %v3523_v8 = vsel %vm72_vm0, %v3517_v35, 0.0  ;;  %v3561_v26 = vld [vmem:[%s9953_s9 + $0x18] sm:$0xff] }
0x19aa   :  { %3524 = vadd.xlane.f32.xlu1 %v3523_v8  ;;  %8135 = vmatprep.subr.mxu1 %v3561_v26 }
0x19ab   :  { %v3520_v38 = vsel %vm72_vm0, %v3516_v37, 0.0  ;;  %8136 = vmatpush3.msra.mxu1 %v3561_v26  ;;  %v7466_v26 = vld [vmem:[%s9943_s4 + $0x30] sm:$0xff] }
0x19ac   :  { %3521 = vadd.xlane.f32.xlu0 %v3520_v38  ;;  %8137 = vmatprep.subr.mxu1 %v3560_v50 }
0x19ad   :  { %8138 = vmatpush3.msra.mxu1 %v3560_v50  ;;  %v7465_v50 = vld [vmem:[%s9943_s4 + $0x28] sm:$0xff] }
0x19ae   :  { %8139 = vmatprep.subr.mxu1 %v3559_v55 }
0x19af   :  { %8140 = vmatpush3.msra.mxu1 %v3559_v55  ;;  %v7464_v55 = vld [vmem:[%s9943_s4 + $0x20] sm:$0xff] }
0x19b0   :  { %8141 = vmatprep.subr.mxu1 %v3558_v56 }
0x19b1   :  { %8142 = vmatpush3.msra.mxu1 %v3558_v56  ;;  %v7474_v56 = vld [vmem:[%s9950_s6 + $0x98] sm:$0xff] }
0x1a33   :  { %v3525_v39 = vpop.xlane.xlu1 %3524 }
0x1a34   :  { %v3527_v40 = vmul.f32 0.03125, %v3525_v39 }
0x1a35   :  { %v3522_v41 = vpop.xlane.xlu0 %3521 }
0x1a36   :  { %v3526_v43 = vmul.f32 0.03125, %v3522_v41  ;;  %v3529_v54 = vsub.f32 %v3517_v35, %v3527_v40 }
0x1a38   :  { %v3528_v45 = vsub.f32 %v3516_v37, %v3526_v43  ;;  %v3531_v47 = vmul.f32 %v3529_v54, %v3529_v54 }
0x1a3a   :  { %v3530_v32 = vmul.f32 %v3528_v45, %v3528_v45  ;;  %v3535_v30 = vsel %vm72_vm0, %v3531_v47, 0.0 }
0x1a3c   :  { %v3532_v46 = vsel %vm72_vm0, %v3530_v32, 0.0 }
0x1a3d   :  { %3533 = vadd.xlane.f32.xlu0 %v3532_v46 }
0x1a41   :  { %3536 = vadd.xlane.f32.xlu0 %v3535_v30  ;;  %v7467_v30 = vld [vmem:[%s9943_s4 + $0x38] sm:$0xff] }
0x1a42   :  { %8165 = vmatprep.subr.mxu1 %v7467_v30 }
0x1ac6   :  { %v3534_v57 = vpop.xlane.xlu0 %3533 }
0x1ac7   :  { %v3538_v59 = vmul.f32 0.03125, %v3534_v57 }
0x1ac9   :  { %v3540_v60 = vadd.f32 1e-05, %v3538_v59 }
0x1aca   :  { %v3537_v62 = vpop.xlane.xlu0 %3536 }
0x1acb   :  { %8522 = vrsqrt.f32 %v3540_v60  ;;  %v3539_v0 = vmul.f32 0.03125, %v3537_v62  ;;  %v7462_v62 = vld [vmem:[%s9952_s12 + $0x9] ss:$0 sm:$0xff] }
0x1acd   :  { %v3541_v4 = vadd.f32 1e-05, %v3539_v0 }
0x1acf   :  { %8524 = vrsqrt.f32 %v3541_v4 }
0x1ad8   :  { %v8523_v12 = vpop.eup %8522 }
0x1ad9   :  { %v3544_v2 = vmul.f32 %v8523_v12, %v3528_v45  ;;  %v7463_v12 = vld [vmem:[%s9952_s12 + $0xa] ss:$0 sm:$0xff] }
0x1adb   :  { %v3550_v14 = vmul.f32 %v7454_v3, %v3544_v2 }
0x1adc   :  { %v8525_v16 = vpop.eup %8524 }
0x1add   :  { %v3545_v15 = vmul.f32 %v8525_v16, %v3529_v54  ;;  %v3556_v17 = vadd.f32 %v7455_v9, %v3550_v14 }
0x1adf   :  { %v3551_v18 = vmul.f32 %v7454_v3, %v3545_v15  ;;  %8143 = vmatprep.mubr.msk.f32.mxu1 %vm72_vm0, %v3556_v17  ;;  %v9388_v15 = vld [vmem:[%s9945_s2] sm:$0xff] }
0x1ae1   :  { %v3557_v19 = vadd.f32 %v7455_v9, %v3551_v18  ;;  %v9395_v18 = vld [vmem:[%s9945_s2 + $0x8] sm:$0xff] }
0x1ae3   :  { %8144 = vmatmul.mubr.msk.f32.vlgmr.msra.gmra.mxu1 %vm72_vm0, %v3557_v19 }
0x1ae4   :  { %8166 = vmatpush3.msra.mxu1 %v7467_v30 }
0x1ae5   :  { %8167 = vmatprep.subr.mxu1 %v7466_v26 }
0x1ae6   :  { %8168 = vmatpush3.msra.mxu1 %v7466_v26 }
0x1ae7   :  { %8169 = vmatprep.subr.mxu1 %v7465_v50 }
0x1ae8   :  { %8170 = vmatpush3.msra.mxu1 %v7465_v50 }
0x1ae9   :  { %8171 = vmatprep.subr.mxu1 %v7464_v55 }
0x1aea   :  { %8172 = vmatpush3.msra.mxu1 %v7464_v55 }
0x1aeb   :  { %8176 = vmatprep.subr.mxu1 %v7474_v56 }
0x1ba3   :  { %v8145_v22 = vpop.f32.mrf.mxu1 }
0x1ba4   :  { %v3645_v23 = vadd.f32 %v8145_v22, %v7456_v21 }
0x1ba5   :  { %v3639_v24 = vpop.f32.mrf.mxu1 }
0x1ba6   :  { %v3640_v25 = vadd.f32 %v7456_v21, %v3639_v24  ;;  %v3649_v29 = vmax.f32 %v3645_v23, 0.0  ;;  %v7468_v21 = vld [vmem:[%s9946_s5 + $0x1] ss:$0 sm:$0xff]  ;;  %v7476_v24 = vld [vmem:[%s9952_s12 + $0x10] ss:$0 sm:$0xff] }
0x1ba8   :  { %v3648_v27 = vmax.f32 %v3640_v25, 0.0 }
0x1baa   :  { %8162 = vmatprep.mubr.msk.f32.mxu0 %vm3663_vm5, %v3648_v27 }
0x1bab   :  { %8163 = vmatmul.mubr.msk.f32.vlgmr.msra.gmra.mxu0 %vm3663_vm5, %v3649_v29 }
0x1bac   :  { %8189 = vmatprep.mubr.msk.f32.mxu0 %vm8613_vm1, %v8612_v10 }
0x1c6b   :  { %v8164_v5 = vpop.f32.mrf.mxu0 }
0x1c6c   :  { %v3742_v28 = vadd.f32 %v8164_v5, %v7459_v31 }
0x1c6d   :  { %v3736_v33 = vpop.f32.mrf.mxu0 }
0x1c6e   :  { %v3746_v34 = vadd.f32 %v3742_v28, %v3557_v19  ;;  %v3737_v35 = vadd.f32 %v7459_v31, %v3736_v33 }
0x1c70   :  { %v3745_v36 = vadd.f32 %v3737_v35, %v3556_v17  ;;  %v3752_v37 = vsel %vm72_vm0, %v3746_v34, 0.0 }
0x1c71   :  { %3753 = vadd.xlane.f32.xlu0 %v3752_v37 }
0x1c72   :  { %v3749_v8 = vsel %vm72_vm0, %v3745_v36, 0.0 }
0x1c73   :  { %3750 = vadd.xlane.f32.xlu1 %v3749_v8 }
0x1cfa   :  { %v3754_v38 = vpop.xlane.xlu0 %3753 }
0x1cfb   :  { %v3756_v39 = vmul.f32 0.03125, %v3754_v38 }
0x1cfc   :  { %v3751_v40 = vpop.xlane.xlu1 %3750 }
0x1cfd   :  { %v3758_v41 = vsub.f32 %v3746_v34, %v3756_v39  ;;  %v3755_v43 = vmul.f32 0.03125, %v3751_v40 }
0x1cff   :  { %v3757_v54 = vsub.f32 %v3745_v36, %v3755_v43  ;;  %v3760_v45 = vmul.f32 %v3758_v41, %v3758_v41 }
0x1d01   :  { %v3764_v32 = vsel %vm72_vm0, %v3760_v45, 0.0  ;;  %v3759_v46 = vmul.f32 %v3757_v54, %v3757_v54 }
0x1d02   :  { %3765 = vadd.xlane.f32.xlu0 %v3764_v32 }
0x1d03   :  { %v3761_v47 = vsel %vm72_vm0, %v3759_v46, 0.0 }
0x1d04   :  { %3762 = vadd.xlane.f32.xlu1 %v3761_v47 }
0x1d8b   :  { %v3766_v51 = vpop.xlane.xlu0 %3765 }
0x1d8c   :  { %v3768_v52 = vmul.f32 0.03125, %v3766_v51 }
0x1d8d   :  { %v3763_v53 = vpop.xlane.xlu1 %3762 }
0x1d8e   :  { %v3770_v13 = vadd.f32 1e-05, %v3768_v52  ;;  %v3767_v57 = vmul.f32 0.03125, %v3763_v53 }
0x1d90   :  { %8526 = vrsqrt.f32 %v3770_v13  ;;  %v3769_v59 = vadd.f32 1e-05, %v3767_v57 }
0x1d92   :  { %8528 = vrsqrt.f32 %v3769_v59 }
0x1d9d   :  { %v8527_v60 = vpop.eup %8526 }
0x1d9e   :  { %v3774_v0 = vmul.f32 %v8527_v60, %v3758_v41 }
0x1d9f   :  { %v8529_v4 = vpop.eup %8528 }
0x1da0   :  { %v3773_v3 = vmul.f32 %v8529_v4, %v3757_v54  ;;  %v3780_v2 = vmul.f32 %v7462_v62, %v3774_v0 }
0x1da2   :  { %v3779_v9 = vmul.f32 %v7462_v62, %v3773_v3  ;;  %v9381_v14 = vadd.f32 %v7463_v12, %v3780_v2 }
0x1da4   :  { %v9383_v16 = vadd.f32 %v7463_v12, %v3779_v9  ;;  %v3788_v19 = vadd.f32 %v9395_v18, %v9381_v14 }
0x1da6   :  { %v3787_v17 = vadd.f32 %v9388_v15, %v9383_v16 }
0x1da8   :  { %8173 = vmatprep.mubr.msk.f32.mxu1 %vm72_vm0, %v3787_v17 }
0x1da9   :  { %8174 = vmatmul.mubr.msk.f32.vlgmr.msra.gmra.mxu1 %vm72_vm0, %v3788_v19 }
0x1daa   :  { %8177 = vmatpush3.msra.mxu1 %v7474_v56  ;;  %8184 = vmatprep.mubr.msk.f32.mxu1 %vm72_vm0, %v9383_v16 }
0x1dab   :  { %8178 = vmatprep.subr.mxu1 %v7473_v6 }
0x1dac   :  { %8179 = vmatpush3.msra.mxu1 %v7473_v6 }
0x1dad   :  { %8180 = vmatprep.subr.mxu1 %v7472_v48 }
0x1dae   :  { %8181 = vmatpush3.msra.mxu1 %v7472_v48 }
0x1daf   :  { %8182 = vmatprep.subr.mxu1 %v7471_v49 }
0x1db0   :  { %8183 = vmatpush3.msra.mxu1 %v7471_v49 }
0x1db1   :  { %8185 = vmatmul.mubr.msk.f32.vlgmr.msra.gmra.mxu1 %vm72_vm0, %v9381_v14  ;;  %8192 = vmatprep.subr.mxu1 %v8612_v10 }
0x1db2   :  { %8194 = vmatprep.mubr.msk.f32.mxu1 %vm8613_vm1, %v8612_v10 }
0x1e69   :  { %v8175_v20 = vpop.f32.mrf.mxu1 }
0x1e6a   :  { %v3877_v5 = vadd.f32 %v8175_v20, %v7468_v21 }
0x1e6b   :  { %v3871_v22 = vpop.f32.mrf.mxu1 }
0x1e6c   :  { %v3872_v23 = vadd.f32 %v7468_v21, %v3871_v22 }
0x1e6e   :  { %4141 = vrot.lane.b32.xlu0 %v3872_v23, %s8617_s17  ;;  %3979 = vrot.lane.b32.xlu1 %v3872_v23, %s8615_s15 }
0x1e71   :  { %v8186_v25 = vpop.f32.mrf.mxu1 }
0x1e72   :  { %v9425_v27 = vadd.f32 %v8186_v25, %v7476_v24  ;;  %4305 = vrot.lane.b32.xlu0 %v3872_v23, %s8619_s19  ;;  %4139 = vrot.lane.b32.xlu1 %v3872_v23, %s8614_s30 }
0x1e73   :  { %v3963_v29 = vpop.f32.mrf.mxu1 }
0x1e74   :  { %v9429_v31 = vadd.f32 %v7476_v24, %v3963_v29 }
0x1e76   :  { %8193 = vmatpush3.msra.mxu1 %v9429_v31  ;;  %4470 = vrot.lane.b32.xlu0 %v3872_v23, %s8620_s20 }
0x1e77   :  { %4307 = vrot.lane.b32.xlu1 %v3872_v23, %s8616_s16  ;;  %8202 = vmatprep.subr.mxu1 %v8612_v10 }
0x1e7a   :  { %4813 = vrot.lane.b32.xlu0 %v3877_v5, %s8617_s17 }
0x1e7b   :  { %4472 = vrot.lane.b32.xlu1 %v3872_v23, %s8618_s18 }
0x1e7e   :  { %4979 = vrot.lane.b32.xlu0 %v3877_v5, %s8616_s16 }
0x1e7f   :  { %4651 = vrot.lane.b32.xlu1 %v3877_v5, %s8615_s15 }
0x1e82   :  { %5144 = vrot.lane.b32.xlu0 %v3877_v5, %s8618_s18 }
0x1e83   :  { %4811 = vrot.lane.b32.xlu1 %v3877_v5, %s8614_s30 }
0x1e87   :  { %4977 = vrot.lane.b32.xlu1 %v3877_v5, %s8619_s19 }
0x1e8b   :  { %5142 = vrot.lane.b32.xlu1 %v3877_v5, %s8620_s20 }
0x1ee0   :  { %v4142_v28 = vpop.permute.xlu0 %4141  ;;  %v3980_v33 = vpop.permute.xlu1 %3979 }
0x1ee1   :  { %8188 = vmatpush3.xpose.msk.msra.mxu0 %vm468_vm2, %v3980_v33 }
0x1ee2   :  { %8197 = vmatprep.subr.mxu0 %v8612_v10 }
0x1ee4   :  { %8190 = vmatmul.mubr.msk.f32.vlgmr.msra.gmra.mxu0 %vm468_vm2, %v3872_v23  ;;  %v4140_v34 = vpop.permute.xlu1 %4139  ;;  %v4306_v35 = vpop.permute.xlu0 %4305 }
0x1ee5   :  { %8198 = vmatpush3.xpose.msk.msra.mxu0 %vm468_vm2, %v4142_v28  ;;  %8199 = vmatprep.mubr.msk.f32.mxu0 %vm8613_vm1, %v8612_v10 }
0x1ee6   :  { %8207 = vmatprep.subr.mxu0 %v8612_v10 }
0x1ee8   :  { %8200 = vmatmul.mubr.msk.f32.vlgmr.msra.gmra.mxu0 %vm468_vm2, %v4140_v34  ;;  %v4471_v37 = vpop.permute.xlu0 %4470 }
0x1ee9   :  { %v4308_v36 = vpop.permute.xlu1 %4307  ;;  %8209 = vmatprep.mubr.msk.f32.mxu0 %vm8613_vm1, %v8612_v10 }
0x1eea   :  { %8208 = vmatpush3.xpose.msk.msra.mxu0 %vm468_vm2, %v4308_v36 }
0x1eeb   :  { %8217 = vmatprep.subr.mxu0 %v8612_v10 }
0x1eec   :  { %v4814_v38 = vpop.permute.xlu0 %4813 }
0x1eed   :  { %8210 = vmatmul.mubr.msk.f32.vlgmr.msra.gmra.mxu0 %vm468_vm2, %v4306_v35  ;;  %v4473_v8 = vpop.permute.xlu1 %4472 }
0x1eee   :  { %8218 = vmatpush3.xpose.msk.msra.mxu0 %vm468_vm2, %v4473_v8  ;;  %8219 = vmatprep.mubr.msk.f32.mxu0 %vm8613_vm1, %v8612_v10 }
0x1eef   :  { %8227 = vmatprep.subr.mxu0 %v8612_v10 }
0x1ef0   :  { %v4980_v41 = vpop.permute.xlu0 %4979 }
0x1ef1   :  { %8220 = vmatmul.mubr.msk.f32.vlgmr.msra.gmra.mxu0 %vm468_vm2, %v4471_v37  ;;  %v4652_v39 = vpop.permute.xlu1 %4651 }
0x1ef2   :  { %8228 = vmatpush3.xpose.msk.msra.mxu0 %vm468_vm2, %v4652_v39  ;;  %8229 = vmatprep.mubr.msk.f32.mxu0 %vm8613_vm1, %v8612_v10 }
0x1ef3   :  { %8237 = vmatprep.subr.mxu0 %v8612_v10 }
0x1ef4   :  { %v5145_v54 = vpop.permute.xlu0 %5144 }
0x1ef5   :  { %8230 = vmatmul.mubr.msk.f32.vlgmr.msra.gmra.mxu0 %vm468_vm2, %v3877_v5  ;;  %v4812_v40 = vpop.permute.xlu1 %4811 }
0x1ef6   :  { %8238 = vmatpush3.xpose.msk.msra.mxu0 %vm468_vm2, %v4814_v38  ;;  %8239 = vmatprep.mubr.msk.f32.mxu0 %vm8613_vm1, %v8612_v10 }
0x1ef7   :  { %8247 = vmatprep.subr.mxu0 %v8612_v10 }
0x1ef9   :  { %8240 = vmatmul.mubr.msk.f32.vlgmr.msra.gmra.mxu0 %vm468_vm2, %v4812_v40  ;;  %v4978_v43 = vpop.permute.xlu1 %4977 }
0x1efa   :  { %8248 = vmatpush3.xpose.msk.msra.mxu0 %vm468_vm2, %v4980_v41  ;;  %8249 = vmatprep.mubr.msk.f32.mxu0 %vm8613_vm1, %v8612_v10 }
0x1efb   :  { %8257 = vmatprep.subr.mxu0 %v8612_v10 }
0x1efd   :  { %8250 = vmatmul.mubr.msk.f32.vlgmr.msra.gmra.mxu0 %vm468_vm2, %v4978_v43  ;;  %v5143_v45 = vpop.permute.xlu1 %5142 }
0x1efe   :  { %8258 = vmatpush3.xpose.msk.msra.mxu0 %vm468_vm2, %v5145_v54  ;;  %8259 = vmatprep.mubr.msk.f32.mxu0 %vm8613_vm1, %v8612_v10 }
0x1f01   :  { %8260 = vmatmul.mubr.msk.f32.vlgmr.msra.gmra.mxu0 %vm468_vm2, %v5143_v45 }
0x1fa4   :  { %v4051_v32 = vpop.f32.mrf.mxu0 }
0x1fa5   :  { %v4055_v46 = vsel %vm468_vm2, %v4051_v32, -inf }
0x1fa6   :  { %4056 = vmax.xlane.f32.xlu0 %v4055_v46  ;;  %v8191_v47 = vpop.f32.mrf.mxu0 }
0x1fa8   :  { %v4213_v30 = vpop.f32.mrf.mxu0 }
0x1fa9   :  { %v4217_v26 = vsel %vm468_vm2, %v4213_v30, -inf }
0x1faa   :  { %4218 = vmax.xlane.f32.xlu1 %v4217_v26  ;;  %v8201_v50 = vpop.f32.mrf.mxu0 }
0x1fad   :  { %v4379_v55 = vpop.f32.mrf.mxu0 }
0x1fae   :  { %v4383_v56 = vsel %vm468_vm2, %v4379_v55, -inf }
0x1faf   :  { %4384 = vmax.xlane.f32.xlu0 %v4383_v56  ;;  %v8211_v51 = vpop.f32.mrf.mxu0 }
0x1fb1   :  { %v4544_v52 = vpop.f32.mrf.mxu0 }
0x1fb2   :  { %v4548_v53 = vsel %vm468_vm2, %v4544_v52, -inf }
0x1fb3   :  { %4549 = vmax.xlane.f32.xlu0 %v4548_v53  ;;  %v8221_v13 = vpop.f32.mrf.mxu0 }
0x1fb5   :  { %v9484_v57 = vpop.f32.mrf.mxu0 }
0x1fb6   :  { %v4727_v59 = vsel %vm468_vm2, %v9484_v57, -inf }
0x1fb7   :  { %4728 = vmax.xlane.f32.xlu1 %v4727_v59  ;;  %v8231_v60 = vpop.f32.mrf.mxu0 }
0x1fb9   :  { %v4885_v62 = vpop.f32.mrf.mxu0 }
0x1fba   :  { %v4889_v0 = vsel %vm468_vm2, %v4885_v62, -inf }
0x1fbb   :  { %4890 = vmax.xlane.f32.xlu0 %v4889_v0  ;;  %v8241_v4 = vpop.f32.mrf.mxu0 }
0x1fbd   :  { %v5051_v12 = vpop.f32.mrf.mxu0 }
0x1fbe   :  { %v5055_v3 = vsel %vm468_vm2, %v5051_v12, -inf }
0x1fbf   :  { %5056 = vmax.xlane.f32.xlu1 %v5055_v3  ;;  %v8251_v2 = vpop.f32.mrf.mxu0 }
0x1fc1   :  { %v5216_v9 = vpop.f32.mrf.mxu0 }
0x1fc2   :  { %v5220_v17 = vsel %vm468_vm2, %v5216_v9, -inf }
0x1fc3   :  { %5221 = vmax.xlane.f32.xlu0 %v5220_v17  ;;  %v8261_v19 = vpop.f32.mrf.mxu0 }
0x1fd0   :  { %4229 = vrot.lane.b32.xlu1 %v9429_v31, %s8614_s30 }
0x202f   :  { %v4057_v6 = vpop.xlane.xlu0 %4056 }
0x2030   :  { %v4058_v48 = vsub.f32 %v4051_v32, %v4057_v6 }
0x2032   :  { %v4059_v49 = vmul.f32 1.442695, %v4058_v48 }
0x2033   :  { %v4219_v20 = vpop.xlane.xlu1 %4218 }
0x2034   :  { %8530 = vpow2.f32 %v4059_v49  ;;  %v4220_v21 = vsub.f32 %v4213_v30, %v4219_v20 }
0x2036   :  { %v4221_v22 = vmul.f32 1.442695, %v4220_v21 }
0x2038   :  { %8532 = vpow2.f32 %v4221_v22  ;;  %v4385_v5 = vpop.xlane.xlu0 %4384 }
0x2039   :  { %v4386_v28 = vsub.f32 %v4379_v55, %v4385_v5 }
0x203b   :  { %v4387_v34 = vmul.f32 1.442695, %v4386_v28 }
0x203c   :  { %v4550_v33 = vpop.xlane.xlu0 %4549 }
0x203d   :  { %v4551_v35 = vsub.f32 %v4544_v52, %v4550_v33  ;;  %8534 = vpow2.f32 %v4387_v34 }
0x203f   :  { %v4552_v37 = vmul.f32 1.442695, %v4551_v35 }
0x2040   :  { %v4729_v26 = vpop.xlane.xlu1 %4728 }
0x2041   :  { %v8531_v23 = vpop.eup %8530  ;;  %8536 = vpow2.f32 %v4552_v37  ;;  %v4730_v50 = vsub.f32 %v9484_v57, %v4729_v26  ;;  %v7479_v26 = vld [vmem:[%s9950_s6 + $0xa0] sm:$0xff] }
0x2042   :  { %v4061_v24 = vsel %vm468_vm2, %v8531_v23, 0.0 }
0x2043   :  { %4062 = vadd.xlane.f32.xlu1 %v4061_v24  ;;  %v4731_v56 = vmul.f32 1.442695, %v4730_v50 }
0x2044   :  { %v4891_v36 = vpop.xlane.xlu0 %4890 }
0x2045   :  { %v8533_v25 = vpop.eup %8532  ;;  %v4892_v8 = vsub.f32 %v4885_v62, %v4891_v36 }
0x2046   :  { %v4223_v29 = vsel %vm468_vm2, %v8533_v25, 0.0 }
0x2047   :  { %4224 = vadd.xlane.f32.xlu0 %v4223_v29  ;;  %v4893_v39 = vmul.f32 1.442695, %v4892_v8 }
0x2048   :  { %v5057_v55 = vpop.xlane.xlu1 %5056 }
0x2049   :  { %8538 = vpow2.f32 %v4893_v39  ;;  %v5058_v51 = vsub.f32 %v5051_v12, %v5057_v55 }
0x204a   :  { %v8535_v43 = vpop.eup %8534 }
0x204b   :  { %v4389_v54 = vsel %vm468_vm2, %v8535_v43, 0.0  ;;  %v5059_v52 = vmul.f32 1.442695, %v5058_v51 }
0x204c   :  { %v5222_v38 = vpop.xlane.xlu0 %5221  ;;  %v4230_v57 = vpop.permute.xlu1 %4229 }
0x204d   :  { %v5223_v40 = vsub.f32 %v5216_v9, %v5222_v38 }
0x204e   :  { %v8537_v45 = vpop.eup %8536 }
0x204f   :  { %v5224_v41 = vmul.f32 1.442695, %v5223_v40 }
0x2051   :  { %8540 = vpow2.f32 %v5224_v41 }
0x2052   :  { %8542 = vpow2.f32 %v4731_v56 }
0x2053   :  { %8544 = vpow2.f32 %v5059_v52 }
0x2054   :  { %4559 = vrot.lane.b32.xlu1 %v9429_v31, %s8620_s20 }
0x2056   :  { %v9501_v32 = vpop.eup %8538 }
0x2057   :  { %v4895_v46 = vsel %vm468_vm2, %v9501_v32, 0.0 }
0x205d   :  { %4394 = vrot.lane.b32.xlu0 %v9429_v31, %s8619_s19  ;;  %v4554_v31 = vsel %vm468_vm2, %v8537_v45, 0.0 }
0x205e   :  { %v9505_v47 = vpop.eup %8540 }
0x205f   :  { %v5226_v30 = vsel %vm468_vm2, %v9505_v47, 0.0  ;;  %v8543_v53 = vpop.eup %8542 }
0x2060   :  { %v4733_v13 = vsel %vm468_vm2, %v8543_v53, 0.0  ;;  %v9515_v59 = vpop.eup %8544 }
0x2061   :  { %v5061_v60 = vsel %vm468_vm2, %v9515_v59, 0.0 }
0x2078   :  { %4390 = vadd.xlane.f32.xlu1 %v4389_v54 }
0x207c   :  { %4555 = vadd.xlane.f32.xlu0 %v4554_v31 }
0x2080   :  { %4896 = vadd.xlane.f32.xlu0 %v4895_v46  ;;  %v7482_v46 = vld [vmem:[%s9950_s6 + $0xb8] sm:$0xff] }
0x2081   :  { %8267 = vmatprep.subr.mxu0 %v7482_v46 }
0x2082   :  { %8268 = vmatpush3.msra.mxu0 %v7482_v46 }
0x2084   :  { %5227 = vadd.xlane.f32.xlu0 %v5226_v30  ;;  %v7480_v30 = vld [vmem:[%s9950_s6 + $0xa8] sm:$0xff] }
0x2089   :  { %4901 = vrot.lane.b32.xlu1 %v9425_v27, %s8614_s30 }
0x209a   :  { %5066 = vrot.lane.b32.xlu0 %v9425_v27, %s8619_s19 }
0x20ad   :  { %4734 = vadd.xlane.f32.xlu1 %v4733_v13 }
0x20b1   :  { %5062 = vadd.xlane.f32.xlu1 %v5061_v60 }
0x20c2   :  { %5231 = vrot.lane.b32.xlu1 %v9425_v27, %s8620_s20 }
0x20cc   :  { %v4063_v62 = vpop.xlane.xlu1 %4062 }
0x20cd   :  { %8546 = vrcp.f32 %v4063_v62 }
0x20d0   :  { %v4225_v0 = vpop.xlane.xlu0 %4224  ;;  %v4560_v17 = vpop.permute.xlu1 %4559 }
0x20d1   :  { %8548 = vrcp.f32 %v4225_v0 }
0x20d4   :  { %v4395_v9 = vpop.permute.xlu0 %4394 }
0x20da   :  { %v8547_v4 = vpop.eup %8546 }
0x20db   :  { %v4065_v12 = vmul.f32 %v8547_v4, %v8531_v23 }
0x20dd   :  { %8195 = vmatmul.mubr.msk.f32.vlgmr.msra.gmra.mxu1 %vm468_vm2, %v4065_v12 }
0x20de   :  { %v8549_v3 = vpop.eup %8548  ;;  %8203 = vmatpush3.msra.mxu1 %v4230_v57  ;;  %8204 = vmatprep.mubr.msk.f32.mxu1 %vm8613_vm1, %v8612_v10 }
0x20df   :  { %8212 = vmatprep.subr.mxu1 %v8612_v10  ;;  %v4227_v2 = vmul.f32 %v8549_v3, %v8533_v25 }
0x20e1   :  { %8205 = vmatmul.mubr.msk.f32.vlgmr.msra.gmra.mxu1 %vm468_vm2, %v4227_v2 }
0x20e2   :  { %8213 = vmatpush3.msra.mxu1 %v4395_v9  ;;  %8214 = vmatprep.mubr.msk.f32.mxu1 %vm8613_vm1, %v8612_v10 }
0x20e3   :  { %8222 = vmatprep.subr.mxu1 %v8612_v10 }
0x2101   :  { %v4391_v19 = vpop.xlane.xlu1 %4390 }
0x2102   :  { %8550 = vrcp.f32 %v4391_v19 }
0x2105   :  { %v4556_v6 = vpop.xlane.xlu0 %4555  ;;  %v4902_v22 = vpop.permute.xlu1 %4901 }
0x2106   :  { %8552 = vrcp.f32 %v4556_v6 }
0x2109   :  { %v4897_v23 = vpop.xlane.xlu0 %4896 }
0x210d   :  { %v5228_v29 = vpop.xlane.xlu0 %5227 }
0x210f   :  { %v8551_v48 = vpop.eup %8550 }
0x2110   :  { %v4393_v49 = vmul.f32 %v8551_v48, %v8535_v43  ;;  %v7508_v48 = vld [vmem:[%s9952_s12 + $0x11] ss:$0 sm:$0xff] }
0x2111   :  { %v5067_v35 = vpop.permute.xlu0 %5066 }
0x2112   :  { %8215 = vmatmul.mubr.msk.f32.vlgmr.msra.gmra.mxu1 %vm468_vm2, %v4393_v49 }
0x2113   :  { %v8553_v20 = vpop.eup %8552  ;;  %8223 = vmatpush3.msra.mxu1 %v4560_v17  ;;  %8224 = vmatprep.mubr.msk.f32.mxu1 %vm8613_vm1, %v8612_v10 }
0x2114   :  { %8232 = vmatprep.subr.mxu1 %v8612_v10  ;;  %v4558_v21 = vmul.f32 %v8553_v20, %v8537_v45 }
0x2116   :  { %8225 = vmatmul.mubr.msk.f32.vlgmr.msra.gmra.mxu1 %vm468_vm2, %v4558_v21 }
0x2117   :  { %8233 = vmatpush3.msra.mxu1 %v9425_v27  ;;  %8234 = vmatprep.mubr.msk.f32.mxu1 %vm8613_vm1, %v8612_v10 }
0x2118   :  { %8242 = vmatprep.subr.mxu1 %v8612_v10 }
0x2136   :  { %v4735_v24 = vpop.xlane.xlu1 %4734 }
0x2137   :  { %8554 = vrcp.f32 %v4735_v24 }
0x2138   :  { %8556 = vrcp.f32 %v4897_v23 }
0x213a   :  { %v5063_v25 = vpop.xlane.xlu1 %5062 }
0x213b   :  { %8558 = vrcp.f32 %v5063_v25 }
0x213c   :  { %8560 = vrcp.f32 %v5228_v29 }
0x213e   :  { %v5232_v8 = vpop.permute.xlu1 %5231 }
0x2144   :  { %v8555_v5 = vpop.eup %8554 }
0x2145   :  { %v4737_v28 = vmul.f32 %v8555_v5, %v8543_v53  ;;  %v8557_v33 = vpop.eup %8556 }
0x2146   :  { %v4899_v27 = vmul.f32 %v8557_v33, %v9501_v32 }
0x2147   :  { %8235 = vmatmul.mubr.msk.f32.vlgmr.msra.gmra.mxu1 %vm468_vm2, %v4737_v28 }
0x2148   :  { %8243 = vmatpush3.msra.mxu1 %v4902_v22  ;;  %8244 = vmatprep.mubr.msk.f32.mxu1 %vm8613_vm1, %v8612_v10  ;;  %v8559_v34 = vpop.eup %8558 }
0x2149   :  { %8252 = vmatprep.subr.mxu1 %v8612_v10  ;;  %v5065_v36 = vmul.f32 %v8559_v34, %v9515_v59  ;;  %v8561_v37 = vpop.eup %8560 }
0x214a   :  { %v5230_v38 = vmul.f32 %v8561_v37, %v9505_v47  ;;  %v7481_v47 = vld [vmem:[%s9950_s6 + $0xb0] sm:$0xff] }
0x214b   :  { %8245 = vmatmul.mubr.msk.f32.vlgmr.msra.gmra.mxu1 %vm468_vm2, %v4899_v27  ;;  %8269 = vmatprep.subr.mxu0 %v7481_v47 }
0x214c   :  { %8253 = vmatpush3.msra.mxu1 %v5067_v35  ;;  %8254 = vmatprep.mubr.msk.f32.mxu1 %vm8613_vm1, %v8612_v10 }
0x214d   :  { %8262 = vmatprep.subr.mxu1 %v8612_v10  ;;  %8270 = vmatpush3.msra.mxu0 %v7481_v47 }
0x214e   :  { %8271 = vmatprep.subr.mxu0 %v7480_v30 }
0x214f   :  { %8255 = vmatmul.mubr.msk.f32.vlgmr.msra.gmra.mxu1 %vm468_vm2, %v5065_v36  ;;  %8272 = vmatpush3.msra.mxu0 %v7480_v30 }
0x2150   :  { %8263 = vmatpush3.msra.mxu1 %v5232_v8  ;;  %8264 = vmatprep.mubr.msk.f32.mxu1 %vm8613_vm1, %v8612_v10 }
0x2151   :  { %8273 = vmatprep.subr.mxu0 %v7479_v26 }
0x2152   :  { %8274 = vmatpush3.msra.mxu0 %v7479_v26  ;;  %v7513_v26 = vld [vmem:[%s9952_s12 + $0x15] ss:$0 sm:$0xff] }
0x2153   :  { %8265 = vmatmul.mubr.msk.f32.vlgmr.msra.gmra.mxu1 %vm468_vm2, %v5230_v38  ;;  %8289 = vmatprep.subr.mxu0 %v8612_v10  ;;  %v7518_v38 = vld [vmem:[%s9950_s6 + $0xd8] sm:$0xff] }
0x2154   :  { %8278 = vmatprep.subr.mxu1 %v7518_v38 }
0x2155   :  { %8279 = vmatpush3.msra.mxu1 %v7518_v38 }
0x219d   :  { %v4135_v39 = vpop.f32.mrf.mxu1 }
0x219f   :  { %v8196_v40 = vpop.f32.mrf.mxu1 }
0x21a0   :  { %v7516_v40 = vld [vmem:[%s9950_s6 + $0xc8] sm:$0xff] }
0x21a1   :  { %v4301_v41 = vpop.f32.mrf.mxu1 }
0x21a2   :  { %4636 = vrot.lane.b32.xlu0 %v4301_v41, %s8621_s8  ;;  %v7515_v41 = vld [vmem:[%s9950_s6 + $0xc0] sm:$0xff] }
0x21a3   :  { %v8206_v43 = vpop.f32.mrf.mxu1 }
0x21d2   :  { %v4466_v54 = vpop.f32.mrf.mxu1 }
0x21d3   :  { %4640 = vrot.lane.b32.xlu1 %v4466_v54, %s8622_s22 }
0x21d4   :  { %v8216_v45 = vpop.f32.mrf.mxu1 }
0x21d6   :  { %v4631_v31 = vpop.f32.mrf.mxu1 }
0x21d7   :  { %4644 = vrot.lane.b32.xlu1 %v4631_v31, %s8623_s23 }
0x21d8   :  { %v8226_v32 = vpop.f32.mrf.mxu1 }
0x2207   :  { %v4807_v50 = vpop.f32.mrf.mxu1 }
0x2209   :  { %v8236_v55 = vpop.f32.mrf.mxu1 }
0x220a   :  { %v7514_v55 = vld [vmem:[%s9952_s12 + $0x16] ss:$0 sm:$0xff] }
0x220b   :  { %v4973_v56 = vpop.f32.mrf.mxu1 }
0x220c   :  { %5308 = vrot.lane.b32.xlu0 %v4973_v56, %s8621_s8 }
0x220d   :  { %v8246_v51 = vpop.f32.mrf.mxu1 }
0x220f   :  { %v5138_v52 = vpop.f32.mrf.mxu1 }
0x2210   :  { %5312 = vrot.lane.b32.xlu0 %v5138_v52, %s8622_s22 }
0x2211   :  { %v8256_v53 = vpop.f32.mrf.mxu1 }
0x2213   :  { %v5303_v13 = vpop.f32.mrf.mxu1 }
0x2214   :  { %5316 = vrot.lane.b32.xlu1 %v5303_v13, %s8623_s23  ;;  %v4637_v60 = vpop.permute.xlu0 %4636 }
0x2215   :  { %v8266_v59 = vpop.f32.mrf.mxu1  ;;  %v4647_v62 = vsel %vm468_vm2, %v4135_v39, %v4637_v60  ;;  %v7517_v39 = vld [vmem:[%s9950_s6 + $0xd0] sm:$0xff] }
0x2216   :  { %8280 = vmatprep.subr.mxu1 %v7517_v39 }
0x2217   :  { %8281 = vmatpush3.msra.mxu1 %v7517_v39 }
0x2218   :  { %8282 = vmatprep.subr.mxu1 %v7516_v40 }
0x2219   :  { %8283 = vmatpush3.msra.mxu1 %v7516_v40 }
0x221a   :  { %8284 = vmatprep.subr.mxu1 %v7515_v41 }
0x221b   :  { %8285 = vmatpush3.msra.mxu1 %v7515_v41 }
0x221c   :  { %8296 = vmatprep.subr.mxu1 %v8612_v10 }
0x2245   :  { %v4641_v57 = vpop.permute.xlu1 %4640 }
0x2246   :  { %v4648_v0 = vsel %vm1136_vm3, %v4647_v62, %v4641_v57  ;;  %v7520_v62 = vld [vmem:[%s9952_s12 + $0x12] ss:$0 sm:$0xff] }
0x2249   :  { %v4645_v4 = vpop.permute.xlu1 %4644 }
0x224a   :  { %v4649_v12 = vsel %vm1138_vm4, %v4648_v0, %v4645_v4 }
0x224b   :  { %8275 = vmatprep.mubr.msk.f32.mxu0 %vm72_vm0, %v4649_v12 }
0x227e   :  { %v5309_v3 = vpop.permute.xlu0 %5308 }
0x227f   :  { %v5319_v9 = vsel %vm468_vm2, %v4807_v50, %v5309_v3 }
0x2282   :  { %v5313_v2 = vpop.permute.xlu0 %5312 }
0x2283   :  { %v5320_v17 = vsel %vm1136_vm3, %v5319_v9, %v5313_v2 }
0x2286   :  { %v5317_v19 = vpop.permute.xlu1 %5316 }
0x2287   :  { %v5321_v6 = vsel %vm1138_vm4, %v5320_v17, %v5317_v19 }
0x2288   :  { %8276 = vmatmul.mubr.msk.f32.vlgmr.msra.gmra.mxu0 %vm72_vm0, %v5321_v6 }
0x2289   :  { %8293 = vmatprep.mubr.msk.f32.mxu0 %vm8613_vm1, %v8612_v10 }
0x2348   :  { %v8277_v49 = vpop.f32.mrf.mxu0 }
0x2349   :  { %v5404_v20 = vadd.f32 %v8277_v49, %v7508_v48 }
0x234a   :  { %v5398_v21 = vpop.f32.mrf.mxu0 }
0x234b   :  { %v5408_v22 = vadd.f32 %v5404_v20, %v9381_v14  ;;  %v5399_v23 = vadd.f32 %v7508_v48, %v5398_v21 }
0x234d   :  { %v5407_v24 = vadd.f32 %v5399_v23, %v9383_v16  ;;  %v5414_v25 = vsel %vm72_vm0, %v5408_v22, 0.0 }
0x234e   :  { %5415 = vadd.xlane.f32.xlu1 %v5414_v25 }
0x234f   :  { %v5411_v29 = vsel %vm72_vm0, %v5407_v24, 0.0 }
0x2350   :  { %5412 = vadd.xlane.f32.xlu0 %v5411_v29 }
0x235f   :  { %5550 = vrot.lane.b32.xlu1 %v9018_v42, %s8615_s15 }
0x23d7   :  { %v5416_v5 = vpop.xlane.xlu1 %5415 }
0x23d8   :  { %v5418_v28 = vmul.f32 0.03125, %v5416_v5 }
0x23d9   :  { %v5413_v33 = vpop.xlane.xlu0 %5412 }
0x23da   :  { %v5417_v27 = vmul.f32 0.03125, %v5413_v33  ;;  %v5420_v35 = vsub.f32 %v5408_v22, %v5418_v28 }
0x23db   :  { %v5551_v34 = vpop.permute.xlu1 %5550 }
0x23dc   :  { %v5419_v36 = vsub.f32 %v5407_v24, %v5417_v27  ;;  %8290 = vmatpush3.xpose.msk.msra.mxu0 %vm468_vm2, %v5551_v34  ;;  %v5422_v37 = vmul.f32 %v5420_v35, %v5420_v35 }
0x23dd   :  { %8291 = vmatprep.subr.mxu0 %v8612_v10 }
0x23de   :  { %v5421_v14 = vmul.f32 %v5419_v36, %v5419_v36  ;;  %v5426_v8 = vsel %vm72_vm0, %v5422_v37, 0.0 }
0x23e0   :  { %v5423_v16 = vsel %vm72_vm0, %v5421_v14, 0.0 }
0x23e1   :  { %5424 = vadd.xlane.f32.xlu0 %v5423_v16 }
0x23e5   :  { %5427 = vadd.xlane.f32.xlu0 %v5426_v8 }
0x23fb   :  { %5548 = vrot.lane.b32.xlu0 %v9029_v44, %s8615_s15 }
0x246a   :  { %v5425_v43 = vpop.xlane.xlu0 %5424 }
0x246b   :  { %v5429_v54 = vmul.f32 0.03125, %v5425_v43 }
0x246d   :  { %v5431_v45 = vadd.f32 1e-05, %v5429_v54 }
0x246e   :  { %v5428_v31 = vpop.xlane.xlu0 %5427 }
0x246f   :  { %8562 = vrsqrt.f32 %v5431_v45  ;;  %v5430_v32 = vmul.f32 0.03125, %v5428_v31 }
0x2471   :  { %v5432_v46 = vadd.f32 1e-05, %v5430_v32 }
0x2472   :  { %v5549_v47 = vpop.permute.xlu0 %5548 }
0x2473   :  { %8564 = vrsqrt.f32 %v5432_v46  ;;  %8292 = vmatpush3.xpose.msk.msra.mxu0 %vm468_vm2, %v5549_v47 }
0x2474   :  { %8310 = vmatprep.subr.mxu0 %v8612_v10 }
0x247c   :  { %v8563_v30 = vpop.eup %8562 }
0x247d   :  { %v5435_v50 = vmul.f32 %v8563_v30, %v5419_v36 }
0x247f   :  { %v5441_v56 = vmul.f32 %v7513_v26, %v5435_v50 }
0x2480   :  { %v8565_v51 = vpop.eup %8564 }
0x2481   :  { %v5436_v52 = vmul.f32 %v8565_v51, %v5420_v35  ;;  %v9618_v53 = vadd.f32 %v7514_v55, %v5441_v56 }
0x2483   :  { %v5442_v13 = vmul.f32 %v7513_v26, %v5436_v52  ;;  %v5449_v59 = vadd.f32 %v9388_v15, %v9618_v53 }
0x2485   :  { %v9622_v60 = vadd.f32 %v7514_v55, %v5442_v13  ;;  %8286 = vmatprep.mubr.msk.f32.mxu1 %vm72_vm0, %v5449_v59 }
0x2487   :  { %v5450_v57 = vadd.f32 %v9395_v18, %v9622_v60 }
0x2489   :  { %8287 = vmatmul.mubr.msk.f32.vlgmr.msra.gmra.mxu1 %vm72_vm0, %v5450_v57 }
0x248a   :  { %8300 = vmatprep.mubr.msk.f32.mxu1 %vm8613_vm1, %v8612_v10 }
0x2549   :  { %v8288_v0 = vpop.f32.mrf.mxu1 }
0x254a   :  { %v9633_v4 = vadd.f32 %v8288_v0, %v7520_v62 }
0x254b   :  { %v5533_v15 = vpop.f32.mrf.mxu1 }
0x254c   :  { %v9635_v12 = vadd.f32 %v7520_v62, %v5533_v15 }
0x254e   :  { %8294 = vmatmul.mubr.msk.f32.vlgmr.msra.gmra.mxu0 %vm468_vm2, %v9635_v12 }
0x254f   :  { %8314 = vmatprep.mubr.msk.f32.mxu0 %vm8613_vm1, %v8612_v10 }
0x260e   :  { %v5625_v18 = vpop.f32.mrf.mxu0 }
0x260f   :  { %v5629_v3 = vsel %vm1136_vm3, %v5625_v18, -inf }
0x2610   :  { %5630 = vmax.xlane.f32.xlu1 %v5629_v3  ;;  %v8295_v2 = vpop.f32.mrf.mxu0 }
0x2621   :  { %5642 = vrot.lane.b32.xlu1 %v8907_v63, %s8615_s15 }
0x2625   :  { %5723 = vrot.lane.b32.xlu1 %v9018_v42, %s8617_s17 }
0x2629   :  { %5721 = vrot.lane.b32.xlu1 %v9029_v44, %s8617_s17 }
0x2699   :  { %v5631_v9 = vpop.xlane.xlu1 %5630 }
0x269a   :  { %v5632_v17 = vsub.f32 %v5625_v18, %v5631_v9 }
0x269c   :  { %v5633_v19 = vmul.f32 1.442695, %v5632_v17 }
0x269d   :  { %v5643_v6 = vpop.permute.xlu1 %5642 }
0x269e   :  { %8566 = vpow2.f32 %v5633_v19  ;;  %8297 = vmatpush3.msra.mxu1 %v5643_v6 }
0x269f   :  { %8298 = vmatprep.subr.mxu1 %v8612_v10 }
0x26a1   :  { %v5724_v23 = vpop.permute.xlu1 %5723 }
0x26a5   :  { %v5722_v25 = vpop.permute.xlu1 %5721 }
0x26ab   :  { %v8567_v48 = vpop.eup %8566 }
0x26ac   :  { %v5635_v49 = vsel %vm1136_vm3, %v8567_v48, 0.0 }
0x26ad   :  { %5636 = vadd.xlane.f32.xlu0 %v5635_v49 }
0x26c3   :  { %5640 = vrot.lane.b32.xlu0 %v8909_v1, %s8615_s15 }
0x26c7   :  { %5719 = vrot.lane.b32.xlu0 %v9635_v12, %s8614_s30 }
0x2736   :  { %v5637_v20 = vpop.xlane.xlu0 %5636 }
0x2737   :  { %8568 = vrcp.f32 %v5637_v20 }
0x273a   :  { %v5641_v21 = vpop.permute.xlu0 %5640 }
0x273b   :  { %8299 = vmatpush3.msra.mxu1 %v5641_v21 }
0x273c   :  { %8303 = vmatprep.subr.mxu1 %v8612_v10 }
0x273e   :  { %v5720_v29 = vpop.permute.xlu0 %5719 }
0x2744   :  { %v8569_v22 = vpop.eup %8568 }
0x2745   :  { %v5639_v24 = vmul.f32 %v8569_v22, %v8567_v48 }
0x2747   :  { %8301 = vmatmul.mubr.msk.f32.vlgmr.msra.gmra.mxu1 %vm1136_vm3, %v5639_v24 }
0x2748   :  { %8304 = vmatpush3.xpose.msk.msra.mxu1 %vm468_vm2, %v5724_v23  ;;  %8307 = vmatprep.mubr.msk.f32.mxu1 %vm8613_vm1, %v8612_v10 }
0x2749   :  { %8305 = vmatprep.subr.mxu1 %v8612_v10 }
0x274c   :  { %8306 = vmatpush3.xpose.msk.msra.mxu1 %vm468_vm2, %v5722_v25 }
0x274d   :  { %8324 = vmatprep.subr.mxu1 %v8612_v10 }
0x274f   :  { %8308 = vmatmul.mubr.msk.f32.vlgmr.msra.gmra.mxu1 %vm468_vm2, %v5720_v29 }
0x2750   :  { %8328 = vmatprep.mubr.msk.f32.mxu1 %vm8613_vm1, %v8612_v10 }
0x2807   :  { %v9665_v5 = vpop.f32.mrf.mxu1 }
0x2809   :  { %v8302_v28 = vpop.f32.mrf.mxu1 }
0x280f   :  { %v5797_v33 = vpop.f32.mrf.mxu1 }
0x2810   :  { %v5801_v27 = vsel %vm1136_vm3, %v5797_v33, -inf }
0x2811   :  { %5802 = vmax.xlane.f32.xlu1 %v5801_v27  ;;  %v8309_v34 = vpop.f32.mrf.mxu1 }
0x2822   :  { %5812 = vrot.lane.b32.xlu1 %v8909_v1, %s8617_s17 }
0x2826   :  { %5895 = vrot.lane.b32.xlu1 %v9018_v42, %s8616_s16 }
0x282a   :  { %5891 = vrot.lane.b32.xlu1 %v9635_v12, %s8619_s19 }
0x282e   :  { %5984 = vrot.lane.b32.xlu1 %v8909_v1, %s8616_s16 }
0x289a   :  { %v5803_v35 = vpop.xlane.xlu1 %5802 }
0x289b   :  { %v5804_v36 = vsub.f32 %v5797_v33, %v5803_v35 }
0x289d   :  { %v5805_v14 = vmul.f32 1.442695, %v5804_v36 }
0x289e   :  { %v5813_v39 = vpop.permute.xlu1 %5812 }
0x289f   :  { %8570 = vpow2.f32 %v5805_v14 }
0x28a2   :  { %v5896_v43 = vpop.permute.xlu1 %5895 }
0x28a6   :  { %v5892_v45 = vpop.permute.xlu1 %5891 }
0x28aa   :  { %v5985_v51 = vpop.permute.xlu1 %5984 }
0x28ac   :  { %v8571_v16 = vpop.eup %8570 }
0x28ad   :  { %v5807_v37 = vsel %vm1136_vm3, %v8571_v16, 0.0 }
0x28ae   :  { %5808 = vadd.xlane.f32.xlu0 %v5807_v37 }
0x28c4   :  { %5814 = vrot.lane.b32.xlu0 %v8907_v63, %s8617_s17 }
0x28c8   :  { %5893 = vrot.lane.b32.xlu0 %v9029_v44, %s8616_s16 }
0x2937   :  { %v5809_v8 = vpop.xlane.xlu0 %5808 }
0x2938   :  { %8572 = vrcp.f32 %v5809_v8 }
0x293b   :  { %v5815_v38 = vpop.permute.xlu0 %5814 }
0x293c   :  { %8311 = vmatpush3.msra.mxu0 %v5815_v38 }
0x293d   :  { %8312 = vmatprep.subr.mxu0 %v8612_v10 }
0x293e   :  { %8313 = vmatpush3.msra.mxu0 %v5813_v39 }
0x293f   :  { %8317 = vmatprep.subr.mxu0 %v8612_v10  ;;  %v5894_v54 = vpop.permute.xlu0 %5893 }
0x2945   :  { %v8573_v40 = vpop.eup %8572 }
0x2946   :  { %v5811_v41 = vmul.f32 %v8573_v40, %v8571_v16 }
0x2948   :  { %8315 = vmatmul.mubr.msk.f32.vlgmr.msra.gmra.mxu0 %vm1136_vm3, %v5811_v41 }
0x2949   :  { %8318 = vmatpush3.xpose.msk.msra.mxu0 %vm468_vm2, %v5896_v43  ;;  %8321 = vmatprep.mubr.msk.f32.mxu0 %vm8613_vm1, %v8612_v10 }
0x294a   :  { %8319 = vmatprep.subr.mxu0 %v8612_v10 }
0x294d   :  { %8320 = vmatpush3.xpose.msk.msra.mxu0 %vm468_vm2, %v5894_v54 }
0x294e   :  { %8338 = vmatprep.subr.mxu0 %v8612_v10 }
0x2950   :  { %8322 = vmatmul.mubr.msk.f32.vlgmr.msra.gmra.mxu0 %vm468_vm2, %v5892_v45 }
0x2951   :  { %8342 = vmatprep.mubr.msk.f32.mxu0 %vm8613_vm1, %v8612_v10 }
0x2a08   :  { %v9693_v31 = vpop.f32.mrf.mxu0 }
0x2a0a   :  { %v8316_v32 = vpop.f32.mrf.mxu0 }
0x2a10   :  { %v5969_v46 = vpop.f32.mrf.mxu0 }
0x2a11   :  { %v5973_v47 = vsel %vm1136_vm3, %v5969_v46, -inf }
0x2a12   :  { %5974 = vmax.xlane.f32.xlu0 %v5973_v47  ;;  %v8323_v30 = vpop.f32.mrf.mxu0 }
0x2a28   :  { %5986 = vrot.lane.b32.xlu0 %v8907_v63, %s8616_s16 }
0x2a2c   :  { %6067 = vrot.lane.b32.xlu0 %v9018_v42, %s8618_s18 }
0x2a30   :  { %6063 = vrot.lane.b32.xlu0 %v9635_v12, %s8620_s20 }
0x2a9b   :  { %v5975_v26 = vpop.xlane.xlu0 %5974 }
0x2a9c   :  { %v5976_v50 = vsub.f32 %v5969_v46, %v5975_v26 }
0x2a9e   :  { %v5977_v55 = vmul.f32 1.442695, %v5976_v50 }
0x2a9f   :  { %v5987_v56 = vpop.permute.xlu0 %5986 }
0x2aa0   :  { %8574 = vpow2.f32 %v5977_v55  ;;  %8325 = vmatpush3.msra.mxu1 %v5987_v56 }
0x2aa1   :  { %8326 = vmatprep.subr.mxu1 %v8612_v10 }
0x2aa2   :  { %8327 = vmatpush3.msra.mxu1 %v5985_v51 }
0x2aa3   :  { %8331 = vmatprep.subr.mxu1 %v8612_v10  ;;  %v6068_v62 = vpop.permute.xlu0 %6067 }
0x2aad   :  { %v8575_v52 = vpop.eup %8574 }
0x2aae   :  { %v5979_v13 = vsel %vm1136_vm3, %v8575_v52, 0.0 }
0x2aaf   :  { %5980 = vadd.xlane.f32.xlu1 %v5979_v13 }
0x2ac0   :  { %6065 = vrot.lane.b32.xlu1 %v9029_v44, %s8618_s18  ;;  %v6064_v44 = vpop.permute.xlu0 %6063 }
0x2b38   :  { %v5981_v42 = vpop.xlane.xlu1 %5980 }
0x2b39   :  { %8576 = vrcp.f32 %v5981_v42 }
0x2b3c   :  { %v6066_v0 = vpop.permute.xlu1 %6065 }
0x2b46   :  { %v8577_v59 = vpop.eup %8576 }
0x2b47   :  { %v5983_v57 = vmul.f32 %v8577_v59, %v8575_v52 }
0x2b49   :  { %8329 = vmatmul.mubr.msk.f32.vlgmr.msra.gmra.mxu1 %vm1136_vm3, %v5983_v57 }
0x2b4a   :  { %8332 = vmatpush3.xpose.msk.msra.mxu1 %vm468_vm2, %v6068_v62  ;;  %8335 = vmatprep.mubr.msk.f32.mxu1 %vm8613_vm1, %v8612_v10 }
0x2b4b   :  { %8333 = vmatprep.subr.mxu1 %v8612_v10 }
0x2b4e   :  { %8334 = vmatpush3.xpose.msk.msra.mxu1 %vm468_vm2, %v6066_v0 }
0x2b4f   :  { %8352 = vmatprep.subr.mxu1 %v8612_v10 }
0x2b51   :  { %8336 = vmatmul.mubr.msk.f32.vlgmr.msra.gmra.mxu1 %vm468_vm2, %v6064_v44 }
0x2b52   :  { %8356 = vmatprep.mubr.msk.f32.mxu1 %vm8613_vm1, %v8612_v10 }
0x2c09   :  { %v9717_v15 = vpop.f32.mrf.mxu1 }
0x2c0b   :  { %v8330_v12 = vpop.f32.mrf.mxu1 }
0x2c11   :  { %v6141_v18 = vpop.f32.mrf.mxu1 }
0x2c12   :  { %v6145_v3 = vsel %vm1136_vm3, %v6141_v18, -inf }
0x2c13   :  { %6146 = vmax.xlane.f32.xlu1 %v6145_v3  ;;  %v8337_v2 = vpop.f32.mrf.mxu1 }
0x2c24   :  { %6156 = vrot.lane.b32.xlu1 %v8909_v1, %s8618_s18 }
0x2c28   :  { %6252 = vrot.lane.b32.xlu1 %v8899_v58, %s8615_s15 }
0x2c9c   :  { %v6147_v9 = vpop.xlane.xlu1 %6146 }
0x2c9d   :  { %v6148_v17 = vsub.f32 %v6141_v18, %v6147_v9 }
0x2c9f   :  { %v6149_v19 = vmul.f32 1.442695, %v6148_v17 }
0x2ca0   :  { %v6157_v20 = vpop.permute.xlu1 %6156 }
0x2ca1   :  { %8578 = vpow2.f32 %v6149_v19 }
0x2ca4   :  { %v6253_v23 = vpop.permute.xlu1 %6252 }
0x2cae   :  { %v8579_v6 = vpop.eup %8578 }
0x2caf   :  { %v6151_v48 = vsel %vm1136_vm3, %v8579_v6, 0.0 }
0x2cb0   :  { %6152 = vadd.xlane.f32.xlu0 %v6151_v48 }
0x2cc6   :  { %6158 = vrot.lane.b32.xlu0 %v8907_v63, %s8618_s18 }
0x2cca   :  { %6250 = vrot.lane.b32.xlu0 %v8905_v61, %s8615_s15 }
0x2d39   :  { %v6153_v49 = vpop.xlane.xlu0 %6152 }
0x2d3a   :  { %8580 = vrcp.f32 %v6153_v49 }
0x2d3d   :  { %v6159_v1 = vpop.permute.xlu0 %6158 }
0x2d3e   :  { %8339 = vmatpush3.msra.mxu0 %v6159_v1 }
0x2d3f   :  { %8340 = vmatprep.subr.mxu0 %v8612_v10 }
0x2d40   :  { %8341 = vmatpush3.msra.mxu0 %v6157_v20 }
0x2d41   :  { %8345 = vmatprep.subr.mxu0 %v8612_v10  ;;  %v6251_v63 = vpop.permute.xlu0 %6250 }
0x2d47   :  { %v8581_v21 = vpop.eup %8580 }
0x2d48   :  { %v6155_v22 = vmul.f32 %v8581_v21, %v8579_v6 }
0x2d4a   :  { %8343 = vmatmul.mubr.msk.f32.vlgmr.msra.gmra.mxu0 %vm1136_vm3, %v6155_v22 }
0x2d4b   :  { %8346 = vmatpush3.xpose.msk.msra.mxu0 %vm468_vm2, %v6253_v23  ;;  %8349 = vmatprep.mubr.msk.f32.mxu0 %vm8613_vm1, %v8612_v10 }
0x2d4c   :  { %8347 = vmatprep.subr.mxu0 %v8612_v10 }
0x2d4f   :  { %8348 = vmatpush3.xpose.msk.msra.mxu0 %vm468_vm2, %v6251_v63 }
0x2d50   :  { %8366 = vmatprep.subr.mxu0 %v8612_v10 }
0x2d52   :  { %8350 = vmatmul.mubr.msk.f32.vlgmr.msra.gmra.mxu0 %vm468_vm2, %v9633_v4 }
0x2d53   :  { %8370 = vmatprep.mubr.msk.f32.mxu0 %vm8613_vm1, %v8612_v10 }
0x2e0a   :  { %v9742_v24 = vpop.f32.mrf.mxu0 }
0x2e0c   :  { %v8344_v25 = vpop.f32.mrf.mxu0 }
0x2e12   :  { %v6327_v29 = vpop.f32.mrf.mxu0 }
0x2e13   :  { %v6331_v28 = vsel %vm1136_vm3, %v6327_v29, -inf }
0x2e14   :  { %6332 = vmax.xlane.f32.xlu1 %v6331_v28  ;;  %v8351_v33 = vpop.f32.mrf.mxu0 }
0x2e25   :  { %6342 = vrot.lane.b32.xlu1 %v8916_v11, %s8615_s15 }
0x2e29   :  { %6425 = vrot.lane.b32.xlu1 %v8899_v58, %s8617_s17 }
0x2e2d   :  { %6421 = vrot.lane.b32.xlu1 %v9633_v4, %s8614_s30 }
0x2e31   :  { %6514 = vrot.lane.b32.xlu1 %v8916_v11, %s8617_s17 }
0x2e9d   :  { %v6333_v27 = vpop.xlane.xlu1 %6332 }
0x2e9e   :  { %v6334_v34 = vsub.f32 %v6327_v29, %v6333_v27 }
0x2ea0   :  { %v6335_v35 = vmul.f32 1.442695, %v6334_v34 }
0x2ea1   :  { %v6343_v8 = vpop.permute.xlu1 %6342 }
0x2ea2   :  { %8582 = vpow2.f32 %v6335_v35 }
0x2ea5   :  { %v6426_v40 = vpop.permute.xlu1 %6425 }
0x2ea9   :  { %v6422_v43 = vpop.permute.xlu1 %6421 }
0x2ead   :  { %v6515_v56 = vpop.permute.xlu1 %6514 }
0x2eaf   :  { %v8583_v36 = vpop.eup %8582 }
0x2eb0   :  { %v6337_v14 = vsel %vm1136_vm3, %v8583_v36, 0.0 }
0x2eb1   :  { %6338 = vadd.xlane.f32.xlu0 %v6337_v14 }
0x2ec7   :  { %6344 = vrot.lane.b32.xlu0 %v8911_v7, %s8615_s15 }
0x2ecb   :  { %6423 = vrot.lane.b32.xlu0 %v8905_v61, %s8617_s17 }
0x2f3a   :  { %v6339_v16 = vpop.xlane.xlu0 %6338 }
0x2f3b   :  { %8584 = vrcp.f32 %v6339_v16 }
0x2f3e   :  { %v6345_v37 = vpop.permute.xlu0 %6344 }
0x2f3f   :  { %8353 = vmatpush3.msra.mxu1 %v6345_v37 }
0x2f40   :  { %8354 = vmatprep.subr.mxu1 %v8612_v10 }
0x2f41   :  { %8355 = vmatpush3.msra.mxu1 %v6343_v8 }
0x2f42   :  { %8359 = vmatprep.subr.mxu1 %v8612_v10  ;;  %v6424_v41 = vpop.permute.xlu0 %6423 }
0x2f48   :  { %v8585_v38 = vpop.eup %8584 }
0x2f49   :  { %v6341_v39 = vmul.f32 %v8585_v38, %v8583_v36 }
0x2f4b   :  { %8357 = vmatmul.mubr.msk.f32.vlgmr.msra.gmra.mxu1 %vm1136_vm3, %v6341_v39 }
0x2f4c   :  { %8360 = vmatpush3.xpose.msk.msra.mxu1 %vm468_vm2, %v6426_v40  ;;  %8363 = vmatprep.mubr.msk.f32.mxu1 %vm8613_vm1, %v8612_v10 }
0x2f4d   :  { %8361 = vmatprep.subr.mxu1 %v8612_v10 }
0x2f50   :  { %8362 = vmatpush3.xpose.msk.msra.mxu1 %vm468_vm2, %v6424_v41  ;;  %v7523_v41 = vld [vmem:[%s9950_s6 + $0xe0] sm:$0xff] }
0x2f51   :  { %8380 = vmatprep.subr.mxu1 %v8612_v10 }
0x2f53   :  { %8364 = vmatmul.mubr.msk.f32.vlgmr.msra.gmra.mxu1 %vm468_vm2, %v6422_v43 }
0x2f54   :  { %8384 = vmatprep.mubr.msk.f32.mxu1 %vm8613_vm1, %v8612_v10 }
0x300b   :  { %v9770_v54 = vpop.f32.mrf.mxu1 }
0x300d   :  { %v8358_v45 = vpop.f32.mrf.mxu1 }
0x3013   :  { %v6499_v32 = vpop.f32.mrf.mxu1 }
0x3014   :  { %v6503_v46 = vsel %vm1136_vm3, %v6499_v32, -inf }
0x3015   :  { %6504 = vmax.xlane.f32.xlu0 %v6503_v46  ;;  %v8365_v47 = vpop.f32.mrf.mxu1 }
0x302b   :  { %6516 = vrot.lane.b32.xlu0 %v8911_v7, %s8617_s17 }
0x302f   :  { %6597 = vrot.lane.b32.xlu0 %v8899_v58, %s8616_s16 }
0x3033   :  { %6593 = vrot.lane.b32.xlu0 %v9633_v4, %s8619_s19 }
0x309e   :  { %v6505_v30 = vpop.xlane.xlu0 %6504 }
0x309f   :  { %v6506_v26 = vsub.f32 %v6499_v32, %v6505_v30 }
0x30a1   :  { %v6507_v50 = vmul.f32 1.442695, %v6506_v26 }
0x30a2   :  { %v6517_v55 = vpop.permute.xlu0 %6516 }
0x30a3   :  { %8586 = vpow2.f32 %v6507_v50  ;;  %8367 = vmatpush3.msra.mxu0 %v6517_v55  ;;  %v7560_v55 = vld [vmem:[%s9952_s12 + $0x13] ss:$0 sm:$0xff] }
0x30a4   :  { %8368 = vmatprep.subr.mxu0 %v8612_v10 }
0x30a5   :  { %8369 = vmatpush3.msra.mxu0 %v6515_v56 }
0x30a6   :  { %8373 = vmatprep.subr.mxu0 %v8612_v10  ;;  %v6598_v57 = vpop.permute.xlu0 %6597 }
0x30aa   :  { %v6594_v0 = vpop.permute.xlu0 %6593 }
0x30b0   :  { %v8587_v51 = vpop.eup %8586 }
0x30b1   :  { %v6509_v52 = vsel %vm1136_vm3, %v8587_v51, 0.0 }
0x30b2   :  { %6510 = vadd.xlane.f32.xlu1 %v6509_v52 }
0x30c3   :  { %6595 = vrot.lane.b32.xlu1 %v8905_v61, %s8616_s16 }
0x313b   :  { %v6511_v13 = vpop.xlane.xlu1 %6510 }
0x313c   :  { %8588 = vrcp.f32 %v6511_v13 }
0x313f   :  { %v6596_v62 = vpop.permute.xlu1 %6595 }
0x3149   :  { %v8589_v42 = vpop.eup %8588 }
0x314a   :  { %v6513_v59 = vmul.f32 %v8589_v42, %v8587_v51 }
0x314c   :  { %8371 = vmatmul.mubr.msk.f32.vlgmr.msra.gmra.mxu0 %vm1136_vm3, %v6513_v59 }
0x314d   :  { %8374 = vmatpush3.xpose.msk.msra.mxu0 %vm468_vm2, %v6598_v57  ;;  %8377 = vmatprep.mubr.msk.f32.mxu0 %vm8613_vm1, %v8612_v10 }
0x314e   :  { %8375 = vmatprep.subr.mxu0 %v8612_v10 }
0x3151   :  { %8376 = vmatpush3.xpose.msk.msra.mxu0 %vm468_vm2, %v6596_v62 }
0x3152   :  { %8394 = vmatprep.subr.mxu0 %v8612_v10 }
0x3154   :  { %8378 = vmatmul.mubr.msk.f32.vlgmr.msra.gmra.mxu0 %vm468_vm2, %v6594_v0 }
0x3155   :  { %8398 = vmatprep.mubr.msk.f32.mxu0 %vm8613_vm1, %v8612_v10 }
0x320c   :  { %v6589_v44 = vpop.f32.mrf.mxu0 }
0x320e   :  { %v8372_v12 = vpop.f32.mrf.mxu0 }
0x3214   :  { %v6671_v18 = vpop.f32.mrf.mxu0 }
0x3215   :  { %v6675_v3 = vsel %vm1136_vm3, %v6671_v18, -inf }
0x3216   :  { %6676 = vmax.xlane.f32.xlu1 %v6675_v3  ;;  %v8379_v2 = vpop.f32.mrf.mxu0 }
0x3227   :  { %6686 = vrot.lane.b32.xlu1 %v8916_v11, %s8616_s16 }
0x322b   :  { %6769 = vrot.lane.b32.xlu1 %v8899_v58, %s8618_s18 }
0x322f   :  { %6765 = vrot.lane.b32.xlu1 %v9633_v4, %s8620_s20 }
0x329f   :  { %v6677_v9 = vpop.xlane.xlu1 %6676 }
0x32a0   :  { %v6678_v17 = vsub.f32 %v6671_v18, %v6677_v9 }
0x32a2   :  { %v6679_v19 = vmul.f32 1.442695, %v6678_v17 }
0x32a3   :  { %v6687_v1 = vpop.permute.xlu1 %6686 }
0x32a4   :  { %8590 = vpow2.f32 %v6679_v19  ;;  %v7569_v19 = vld [vmem:[%s9953_s9 + $0x30] sm:$0xff] }
0x32a7   :  { %v6770_v21 = vpop.permute.xlu1 %6769 }
0x32ab   :  { %v6766_v22 = vpop.permute.xlu1 %6765 }
0x32b1   :  { %v8591_v6 = vpop.eup %8590 }
0x32b2   :  { %v6681_v48 = vsel %vm1136_vm3, %v8591_v6, 0.0 }
0x32b3   :  { %6682 = vadd.xlane.f32.xlu0 %v6681_v48  ;;  %v7567_v48 = vld [vmem:[%s9953_s9 + $0x20] sm:$0xff] }
0x32c9   :  { %6688 = vrot.lane.b32.xlu0 %v8911_v7, %s8616_s16 }
0x32cd   :  { %6767 = vrot.lane.b32.xlu0 %v8905_v61, %s8618_s18 }
0x333c   :  { %v6683_v49 = vpop.xlane.xlu0 %6682 }
0x333d   :  { %8592 = vrcp.f32 %v6683_v49  ;;  %v7581_v49 = vld [vmem:[%s9954_s10 + $0x78] sm:$0xff] }
0x3340   :  { %v6689_v58 = vpop.permute.xlu0 %6688 }
0x3341   :  { %8381 = vmatpush3.msra.mxu1 %v6689_v58  ;;  %v7580_v58 = vld [vmem:[%s9954_s10 + $0x70] sm:$0xff] }
0x3342   :  { %8382 = vmatprep.subr.mxu1 %v8612_v10 }
0x3343   :  { %8383 = vmatpush3.msra.mxu1 %v6687_v1  ;;  %v7579_v1 = vld [vmem:[%s9954_s10 + $0x68] sm:$0xff] }
0x3344   :  { %8387 = vmatprep.subr.mxu1 %v8612_v10  ;;  %v6768_v61 = vpop.permute.xlu0 %6767 }
0x334a   :  { %v8593_v4 = vpop.eup %8592 }
0x334b   :  { %v6685_v20 = vmul.f32 %v8593_v4, %v8591_v6  ;;  %v7568_v6 = vld [vmem:[%s9953_s9 + $0x28] sm:$0xff]  ;;  %v7578_v4 = vld [vmem:[%s9954_s10 + $0x60] sm:$0xff] }
0x334d   :  { %8385 = vmatmul.mubr.msk.f32.vlgmr.msra.gmra.mxu1 %vm1136_vm3, %v6685_v20 }
0x334e   :  { %8388 = vmatpush3.xpose.msk.msra.mxu1 %vm468_vm2, %v6770_v21  ;;  %8391 = vmatprep.mubr.msk.f32.mxu1 %vm8613_vm1, %v8612_v10 }
0x334f   :  { %8389 = vmatprep.subr.mxu1 %v8612_v10 }
0x3352   :  { %8390 = vmatpush3.xpose.msk.msra.mxu1 %vm468_vm2, %v6768_v61 }
0x3355   :  { %8392 = vmatmul.mubr.msk.f32.vlgmr.msra.gmra.mxu1 %vm468_vm2, %v6766_v22 }
0x340d   :  { %v6761_v23 = vpop.f32.mrf.mxu1 }
0x340f   :  { %v8386_v63 = vpop.f32.mrf.mxu1 }
0x3415   :  { %v6843_v25 = vpop.f32.mrf.mxu1 }
0x3416   :  { %v6847_v29 = vsel %vm1136_vm3, %v6843_v25, -inf }
0x3417   :  { %6848 = vmax.xlane.f32.xlu0 %v6847_v29  ;;  %v8393_v28 = vpop.f32.mrf.mxu1  ;;  %v7565_v29 = vld [vmem:[%s9952_s12 + $0x17] ss:$0 sm:$0xff] }
0x342d   :  { %6860 = vrot.lane.b32.xlu0 %v8911_v7, %s8618_s18 }
0x3431   :  { %6236 = vrot.lane.b32.xlu0 %v9693_v31, %s8621_s8 }
0x3435   :  { %6938 = vrot.lane.b32.xlu0 %v6589_v44, %s8621_s8 }
0x3439   :  { %6942 = vrot.lane.b32.xlu0 %v6761_v23, %s8622_s22 }
0x34a0   :  { %v6849_v33 = vpop.xlane.xlu0 %6848 }
0x34a1   :  { %v6850_v27 = vsub.f32 %v6843_v25, %v6849_v33  ;;  %v7566_v33 = vld [vmem:[%s9952_s12 + $0x18] ss:$0 sm:$0xff] }
0x34a3   :  { %v6851_v34 = vmul.f32 1.442695, %v6850_v27 }
0x34a4   :  { %v6861_v35 = vpop.permute.xlu0 %6860 }
0x34a5   :  { %8594 = vpow2.f32 %v6851_v34  ;;  %8395 = vmatpush3.msra.mxu0 %v6861_v35 }
0x34a6   :  { %8396 = vmatprep.subr.mxu0 %v8612_v10 }
0x34a8   :  { %v6237_v37 = vpop.permute.xlu0 %6236 }
0x34a9   :  { %v6247_v38 = vsel %vm468_vm2, %v9665_v5, %v6237_v37  ;;  %v7524_v5 = vld [vmem:[%s9950_s6 + $0xe8] sm:$0xff] }
0x34aa   :  { %v7575_v37 = vld [vmem:[%s9954_s10 + $0x48] sm:$0xff] }
0x34ac   :  { %v6939_v32 = vpop.permute.xlu0 %6938 }
0x34ad   :  { %v6949_v47 = vsel %vm468_vm2, %v9770_v54, %v6939_v32 }
0x34b0   :  { %v6943_v46 = vpop.permute.xlu0 %6942 }
0x34b1   :  { %v6950_v30 = vsel %vm1136_vm3, %v6949_v47, %v6943_v46 }
0x34b2   :  { %v8595_v36 = vpop.eup %8594 }
0x34b3   :  { %v6853_v14 = vsel %vm1136_vm3, %v8595_v36, 0.0 }
0x34b4   :  { %6854 = vadd.xlane.f32.xlu1 %v6853_v14 }
0x34c5   :  { %6858 = vrot.lane.b32.xlu1 %v8916_v11, %s8618_s18 }
0x34c9   :  { %6240 = vrot.lane.b32.xlu1 %v9717_v15, %s8622_s22  ;;  %v7526_v15 = vld [vmem:[%s9950_s6 + $0xf8] sm:$0xff] }
0x34cd   :  { %6244 = vrot.lane.b32.xlu1 %v9742_v24, %s8623_s23  ;;  %v7525_v24 = vld [vmem:[%s9950_s6 + $0xf0] sm:$0xff] }
0x353d   :  { %v6855_v7 = vpop.xlane.xlu1 %6854 }
0x353e   :  { %8596 = vrcp.f32 %v6855_v7 }
0x3541   :  { %v6859_v31 = vpop.permute.xlu1 %6858 }
0x3542   :  { %8397 = vmatpush3.msra.mxu0 %v6859_v31  ;;  %v7577_v31 = vld [vmem:[%s9954_s10 + $0x58] sm:$0xff] }
0x3543   :  { %8401 = vmatprep.subr.mxu0 %v7526_v15 }
0x3545   :  { %v6241_v16 = vpop.permute.xlu1 %6240 }
0x3546   :  { %v6248_v11 = vsel %vm1136_vm3, %v6247_v38, %v6241_v16  ;;  %v7576_v16 = vld [vmem:[%s9954_s10 + $0x50] sm:$0xff] }
0x3549   :  { %v6245_v8 = vpop.permute.xlu1 %6244 }
0x354a   :  { %v6249_v40 = vsel %vm1138_vm4, %v6248_v11, %v6245_v8  ;;  %v7571_v8 = vld [vmem:[%s9955_s11 + $0x1] ss:$0 sm:$0xff] }
0x354b   :  { %v8597_v10 = vpop.eup %8596 }
0x354c   :  { %v6857_v39 = vmul.f32 %v8597_v10, %v8595_v36  ;;  %v7574_v10 = vld [vmem:[%s9954_s10 + $0x40] sm:$0xff] }
0x354e   :  { %8399 = vmatmul.mubr.msk.f32.vlgmr.msra.gmra.mxu0 %vm1136_vm3, %v6857_v39 }
0x354f   :  { %8409 = vmatprep.mubr.msk.f32.mxu0 %vm72_vm0, %v6249_v40  ;;  %8402 = vmatpush3.msra.mxu0 %v7526_v15 }
0x3550   :  { %8403 = vmatprep.subr.mxu0 %v7525_v24 }
0x3551   :  { %8404 = vmatpush3.msra.mxu0 %v7525_v24 }
0x3552   :  { %8405 = vmatprep.subr.mxu0 %v7524_v5 }
0x3553   :  { %8406 = vmatpush3.msra.mxu0 %v7524_v5  ;;  %v7583_v5 = vld [vmem:[%s9952_s12 + $0x14] ss:$0 sm:$0xff] }
0x3554   :  { %8407 = vmatprep.subr.mxu0 %v7523_v41 }
0x3555   :  { %8408 = vmatpush3.msra.mxu0 %v7523_v41 }
0x3556   :  { %8423 = vmatprep.subr.mxu0 %v7581_v49 }
0x360e   :  { %v6933_v43 = vpop.f32.mrf.mxu0 }
0x360f   :  { %6946 = vrot.lane.b32.xlu1 %v6933_v43, %s8623_s23 }
0x3610   :  { %v8400_v45 = vpop.f32.mrf.mxu0 }
0x3681   :  { %v6947_v26 = vpop.permute.xlu1 %6946 }
0x3682   :  { %v6951_v50 = vsel %vm1138_vm4, %v6950_v30, %v6947_v26 }
0x3683   :  { %8410 = vmatmul.mubr.msk.f32.vlgmr.msra.gmra.mxu0 %vm72_vm0, %v6951_v50 }
0x3684   :  { %8424 = vmatpush3.msra.mxu0 %v7581_v49 }
0x3685   :  { %8425 = vmatprep.subr.mxu0 %v7580_v58 }
0x3686   :  { %8426 = vmatpush3.msra.mxu0 %v7580_v58 }
0x3687   :  { %8427 = vmatprep.subr.mxu0 %v7579_v1 }
0x3688   :  { %8428 = vmatpush3.msra.mxu0 %v7579_v1 }
0x3689   :  { %8429 = vmatprep.subr.mxu0 %v7578_v4 }
0x368a   :  { %8430 = vmatpush3.msra.mxu0 %v7578_v4 }
0x368b   :  { %8431 = vmatprep.subr.mxu0 %v7577_v31 }
0x368c   :  { %8432 = vmatpush3.msra.mxu0 %v7577_v31 }
0x368d   :  { %8433 = vmatprep.subr.mxu0 %v7576_v16 }
0x368e   :  { %8434 = vmatpush3.msra.mxu0 %v7576_v16  ;;  %v7590_v16 = vld [vmem:[%s9956_s13] ss:$0 sm:$0xff] }
0x368f   :  { %8435 = vmatprep.subr.mxu0 %v7575_v37 }
0x3690   :  { %8436 = vmatpush3.msra.mxu0 %v7575_v37 }
0x3691   :  { %8437 = vmatprep.subr.mxu0 %v7574_v10 }
0x3692   :  { %8438 = vmatpush3.msra.mxu0 %v7574_v10 }
0x3743   :  { %v8411_v56 = vpop.f32.mrf.mxu0 }
0x3744   :  { %v7034_v51 = vadd.f32 %v8411_v56, %v7560_v55 }
0x3745   :  { %v7028_v52 = vpop.f32.mrf.mxu0 }
0x3746   :  { %v7038_v13 = vadd.f32 %v7034_v51, %v9622_v60  ;;  %v7029_v42 = vadd.f32 %v7560_v55, %v7028_v52 }
0x3748   :  { %v7037_v59 = vadd.f32 %v7029_v42, %v9618_v53  ;;  %v7044_v54 = vsel %vm72_vm0, %v7038_v13, 0.0  ;;  %v7570_v53 = vld [vmem:[%s9953_s9 + $0x38] sm:$0xff] }
0x3749   :  { %7045 = vadd.xlane.f32.xlu1 %v7044_v54  ;;  %8412 = vmatprep.subr.mxu1 %v7570_v53 }
0x374a   :  { %v7041_v57 = vsel %vm72_vm0, %v7037_v59, 0.0  ;;  %8413 = vmatpush3.msra.mxu1 %v7570_v53  ;;  %v7589_v53 = vld [vmem:[%s9952_s12 + $0x1a] ss:$0 sm:$0xff] }
0x374b   :  { %7042 = vadd.xlane.f32.xlu0 %v7041_v57  ;;  %8414 = vmatprep.subr.mxu1 %v7569_v19 }
0x374c   :  { %8415 = vmatpush3.msra.mxu1 %v7569_v19 }
0x374d   :  { %8416 = vmatprep.subr.mxu1 %v7568_v6 }
0x374e   :  { %8417 = vmatpush3.msra.mxu1 %v7568_v6 }
0x374f   :  { %8418 = vmatprep.subr.mxu1 %v7567_v48 }
0x3750   :  { %8419 = vmatpush3.msra.mxu1 %v7567_v48 }
0x37d2   :  { %v7046_v62 = vpop.xlane.xlu1 %7045 }
0x37d3   :  { %v7048_v0 = vmul.f32 0.03125, %v7046_v62 }
0x37d4   :  { %v7043_v44 = vpop.xlane.xlu0 %7042 }
0x37d5   :  { %v7047_v12 = vmul.f32 0.03125, %v7043_v44  ;;  %v7050_v18 = vsub.f32 %v7038_v13, %v7048_v0 }
0x37d7   :  { %v7049_v3 = vsub.f32 %v7037_v59, %v7047_v12  ;;  %v7052_v17 = vmul.f32 %v7050_v18, %v7050_v18 }
0x37d9   :  { %v7051_v2 = vmul.f32 %v7049_v3, %v7049_v3  ;;  %v7056_v60 = vsel %vm72_vm0, %v7052_v17, 0.0 }
0x37db   :  { %v7053_v9 = vsel %vm72_vm0, %v7051_v2, 0.0 }
0x37dc   :  { %7054 = vadd.xlane.f32.xlu0 %v7053_v9  ;;  %v7588_v9 = vld [vmem:[%s9952_s12 + $0x19] ss:$0 sm:$0xff] }
0x37e0   :  { %7057 = vadd.xlane.f32.xlu0 %v7056_v60 }
0x3865   :  { %v7055_v20 = vpop.xlane.xlu0 %7054 }
0x3866   :  { %v7059_v21 = vmul.f32 0.03125, %v7055_v20 }
0x3868   :  { %v7061_v61 = vadd.f32 1e-05, %v7059_v21 }
0x3869   :  { %v7058_v22 = vpop.xlane.xlu0 %7057 }
0x386a   :  { %8598 = vrsqrt.f32 %v7061_v61  ;;  %v7060_v23 = vmul.f32 0.03125, %v7058_v22 }
0x386c   :  { %v7062_v63 = vadd.f32 1e-05, %v7060_v23 }
0x386e   :  { %8600 = vrsqrt.f32 %v7062_v63 }
0x3877   :  { %v8599_v25 = vpop.eup %8598 }
0x3878   :  { %v7065_v28 = vmul.f32 %v8599_v25, %v7049_v3 }
0x387a   :  { %v7071_v27 = vmul.f32 %v7565_v29, %v7065_v28 }
0x387b   :  { %v8601_v34 = vpop.eup %8600 }
0x387c   :  { %v7066_v35 = vmul.f32 %v8601_v34, %v7050_v18  ;;  %v7077_v36 = vadd.f32 %v7566_v33, %v7071_v27 }
0x387e   :  { %v7072_v14 = vmul.f32 %v7565_v29, %v7066_v35  ;;  %8420 = vmatprep.mubr.msk.f32.mxu1 %vm72_vm0, %v7077_v36 }
0x3880   :  { %v7078_v7 = vadd.f32 %v7566_v33, %v7072_v14 }
0x3882   :  { %8421 = vmatmul.mubr.msk.f32.vlgmr.msra.gmra.mxu1 %vm72_vm0, %v7078_v7 }
0x3942   :  { %v8422_v38 = vpop.f32.mrf.mxu1 }
0x3943   :  { %v7167_v39 = vadd.f32 %v8422_v38, %v7571_v8 }
0x3944   :  { %v7161_v11 = vpop.f32.mrf.mxu1 }
0x3945   :  { %v7162_v40 = vadd.f32 %v7571_v8, %v7161_v11  ;;  %v7171_v24 = vmax.f32 %v7167_v39, 0.0  ;;  %v7591_v8 = vld [vmem:[%s9956_s13 + $0x1] ss:$0 sm:$0xff] }
0x3947   :  { %v7170_v15 = vmax.f32 %v7162_v40, 0.0 }
0x3949   :  { %8439 = vmatprep.mubr.msk.f32.mxu0 %vm3663_vm5, %v7170_v15 }
0x394a   :  { %8440 = vmatmul.mubr.msk.f32.vlgmr.msra.gmra.mxu0 %vm3663_vm5, %v7171_v24 }
0x3a0a   :  { %v8441_v41 = vpop.f32.mrf.mxu0 }
0x3a0b   :  { %v7264_v43 = vadd.f32 %v8441_v41, %v7583_v5 }
0x3a0c   :  { %v7258_v45 = vpop.f32.mrf.mxu0 }
0x3a0d   :  { %v7268_v32 = vadd.f32 %v7264_v43, %v7078_v7  ;;  %v7259_v46 = vadd.f32 %v7583_v5, %v7258_v45 }
0x3a0f   :  { %v7267_v47 = vadd.f32 %v7259_v46, %v7077_v36  ;;  %v7274_v30 = vsel %vm72_vm0, %v7268_v32, 0.0 }
0x3a10   :  { %7275 = vadd.xlane.f32.xlu0 %v7274_v30 }
0x3a11   :  { %v7271_v26 = vsel %vm72_vm0, %v7267_v47, 0.0 }
0x3a12   :  { %7272 = vadd.xlane.f32.xlu1 %v7271_v26 }
0x3a99   :  { %v7276_v50 = vpop.xlane.xlu0 %7275 }
0x3a9a   :  { %v7278_v55 = vmul.f32 0.03125, %v7276_v50 }
0x3a9b   :  { %v7273_v56 = vpop.xlane.xlu1 %7272 }
0x3a9c   :  { %v7280_v51 = vsub.f32 %v7268_v32, %v7278_v55  ;;  %v7277_v52 = vmul.f32 0.03125, %v7273_v56 }
0x3a9e   :  { %v7279_v13 = vsub.f32 %v7267_v47, %v7277_v52  ;;  %v7282_v42 = vmul.f32 %v7280_v51, %v7280_v51 }
0x3aa0   :  { %v7286_v59 = vsel %vm72_vm0, %v7282_v42, 0.0  ;;  %v7281_v54 = vmul.f32 %v7279_v13, %v7279_v13 }
0x3aa1   :  { %7287 = vadd.xlane.f32.xlu0 %v7286_v59 }
0x3aa2   :  { %v7283_v57 = vsel %vm72_vm0, %v7281_v54, 0.0 }
0x3aa3   :  { %7284 = vadd.xlane.f32.xlu1 %v7283_v57 }
0x3b2a   :  { %v7288_v62 = vpop.xlane.xlu0 %7287 }
0x3b2b   :  { %v7290_v0 = vmul.f32 0.03125, %v7288_v62 }
0x3b2c   :  { %v7285_v44 = vpop.xlane.xlu1 %7284 }
0x3b2d   :  { %v7292_v12 = vadd.f32 1e-05, %v7290_v0  ;;  %v7289_v18 = vmul.f32 0.03125, %v7285_v44 }
0x3b2f   :  { %8602 = vrsqrt.f32 %v7292_v12  ;;  %v7291_v3 = vadd.f32 1e-05, %v7289_v18 }
0x3b31   :  { %8604 = vrsqrt.f32 %v7291_v3 }
0x3b3c   :  { %v8603_v2 = vpop.eup %8602 }
0x3b3d   :  { %v7296_v17 = vmul.f32 %v8603_v2, %v7280_v51 }
0x3b3e   :  { %v8605_v60 = vpop.eup %8604 }
0x3b3f   :  { %v7302_v19 = vmul.f32 %v7588_v9, %v7296_v17  ;;  %v7295_v6 = vmul.f32 %v8605_v60, %v7279_v13 }
0x3b41   :  { %v7308_v48 = vadd.f32 %v7589_v53, %v7302_v19  ;;  %v7301_v49 = vmul.f32 %v7588_v9, %v7295_v6 }
0x3b43   :  { %v7314_v58 = vsel %vm72_vm0, %v7308_v48, 0.0  ;;  %v7307_v1 = vadd.f32 %v7589_v53, %v7301_v49 }
0x3b44   :  { %7315 = vadd.xlane.f32.xlu0 %v7314_v58 }
0x3b45   :  { %v7311_v4 = vsel %vm72_vm0, %v7307_v1, 0.0 }
0x3b46   :  { %7312 = vadd.xlane.f32.xlu1 %v7311_v4 }
0x3bcd   :  { %v7316_v20 = vpop.xlane.xlu0 %7315 }
0x3bce   :  { %v7318_v21 = vmul.f32 0.03125, %v7316_v20 }
0x3bcf   :  { %v7313_v61 = vpop.xlane.xlu1 %7312 }
0x3bd0   :  { %v7320_v22 = vsub.f32 %v7308_v48, %v7318_v21  ;;  %v7317_v23 = vmul.f32 0.03125, %v7313_v61 }
0x3bd2   :  { %v7319_v63 = vsub.f32 %v7307_v1, %v7317_v23  ;;  %v7322_v25 = vmul.f32 %v7320_v22, %v7320_v22 }
0x3bd4   :  { %v7326_v29 = vsel %vm72_vm0, %v7322_v25, 0.0  ;;  %v7321_v28 = vmul.f32 %v7319_v63, %v7319_v63 }
0x3bd5   :  { %7327 = vadd.xlane.f32.xlu0 %v7326_v29 }
0x3bd6   :  { %v7323_v33 = vsel %vm72_vm0, %v7321_v28, 0.0 }
0x3bd7   :  { %7324 = vadd.xlane.f32.xlu1 %v7323_v33 }
0x3c5e   :  { %v7328_v27 = vpop.xlane.xlu0 %7327 }
0x3c5f   :  { %v7330_v34 = vmul.f32 0.03125, %v7328_v27 }
0x3c60   :  { %v7325_v35 = vpop.xlane.xlu1 %7324 }
0x3c61   :  { %v7332_v36 = vadd.f32 1e-05, %v7330_v34  ;;  %v7329_v14 = vmul.f32 0.03125, %v7325_v35 }
0x3c63   :  { %8606 = vrsqrt.f32 %v7332_v36  ;;  %v7331_v7 = vadd.f32 1e-05, %v7329_v14 }
0x3c65   :  { %8608 = vrsqrt.f32 %v7331_v7 }
0x3c70   :  { %v8607_v31 = vpop.eup %8606 }
0x3c71   :  { %v7336_v37 = vmul.f32 %v8607_v31, %v7320_v22 }
0x3c72   :  { %v8609_v10 = vpop.eup %8608 }
0x3c73   :  { %v7342_v38 = vmul.f32 %v7590_v16, %v7336_v37  ;;  %v7335_v39 = vmul.f32 %v8609_v10, %v7319_v63 }
0x3c75   :  { %v7348_v11 = vadd.f32 %v7591_v8, %v7342_v38  ;;  %v7341_v40 = vmul.f32 %v7590_v16, %v7335_v39 }
0x3c77   :  { %7350 = vst.msk [vmem:[%s9957_s14 + $0x8] sm:$0xff] %vm72_vm0, %v7348_v11  ;;  %v7347_v15 = vadd.f32 %v7591_v8, %v7341_v40 }
0x3c79   :  { %7349 = vst.msk [vmem:[%s9957_s14] sm:$0xff] %vm72_vm0, %v7347_v15 }

</bundles_post_ra>
